<compile_context>
chip_gen: v7x
topology: tpu7x:2x2x1
jax: 0.10.0
libtpu: 0.0.40
codegen_flags: <defaults>
</compile_context>

<pallas_src>
import math
import numpy as np
import jax
import jax.numpy as jnp
from jax import lax
from jax.experimental import pallas as pl
from jax.experimental.pallas import tpu as pltpu

# ---- configuration (small, consistent with the module) ----
N_HEADS = 4
D_MODEL = 32
CONTEXT_WINDOW = 16
BATCH = 2
SEQ = 16  # m <= context_window

NEG_INF = -1e30  # large finite negative: robust even for fully-masked rows


# ---------------------------------------------------------------------------
# Host-side precompute
# ---------------------------------------------------------------------------
def rotary_matrix(context_window, d):
    """Exact replica of RoPEMaskedAttentionHead.get_rotary_matrix.

    NOTE: keeps the module's theta = 10000 ** (-2*(i-1)/d) quirk (the exponent
    uses (i-1), not i).  Do not "fix" it here or in rope_cos_sin.
    """
    R = np.zeros((context_window, d, d), dtype=np.float32)
    for position in range(context_window):
        for i in range(d // 2):
            theta = 10000.0 ** (-2.0 * (i - 1) / d)
            m_theta = position * theta
            R[position, 2 * i, 2 * i] = np.cos(m_theta)
            R[position, 2 * i, 2 * i + 1] = -np.sin(m_theta)
            R[position, 2 * i + 1, 2 * i] = np.sin(m_theta)
            R[position, 2 * i + 1, 2 * i + 1] = np.cos(m_theta)
    return jnp.asarray(R)


def rope_cos_sin(m, d):
    """cos/sin vector form of the same rotation (same (i-1) quirk).

    With qs = pair-swap(q) (q[:,2i] <-> q[:,2i+1]):
        q_rot[:, 2i]   = q[:, 2i]   * cos + q[:, 2i+1] * sin
        q_rot[:, 2i+1] = q[:, 2i+1] * cos - q[:, 2i]   * sin
    i.e. q_rot = q * cos_vec + qs * sin_signed.
    """
    cos = np.zeros((m, d), dtype=np.float32)
    sin = np.zeros((m, d), dtype=np.float32)
    for position in range(m):
        for i in range(d // 2):
            theta = 10000.0 ** (-2.0 * (i - 1) / d)
            mt = position * theta
            cos[position, 2 * i] = np.cos(mt)
            cos[position, 2 * i + 1] = np.cos(mt)
            sin[position, 2 * i] = np.sin(mt)
            sin[position, 2 * i + 1] = -np.sin(mt)
    return cos, sin


# ---------------------------------------------------------------------------
# Kernel
# ---------------------------------------------------------------------------
def mha_kernel(x_ref, wbig_ref, cos_ref, sin_ref, wot_ref, bo_ref, mask_ref,
               out_ref):
    rows, d = x_ref.shape            # (chunk of B*m, d_model)
    HD = cos_ref.shape[-1]           # H * d
    H = HD // d

    x = x_ref[...]                   # (rows, d)
    cos = cos_ref[...]               # (rows, H*d)
    sin = sin_ref[...]
    mask_bias = mask_ref[...]        # (rows, rows) additive causal mask (Squeezed lead)

    # One lane-dense fused projection: [Q | Qswap | K | Kswap | V] (5*H*d lanes).
    xw = jnp.dot(x, wbig_ref[...], preferred_element_type=jnp.float32)
    q, qs = xw[:, 0 * HD:1 * HD], xw[:, 1 * HD:2 * HD]
    k, ks = xw[:, 2 * HD:3 * HD], xw[:, 3 * HD:4 * HD]
    v = xw[:, 4 * HD:5 * HD]

    # RoPE in cos/sin form -- pure elementwise VPU work (pair-swap folded into
    # the Qswap/Kswap weight columns; 1/sqrt(d) already folded into Wq).
    q_rot = q * cos + qs * sin
    k_rot = k * cos + ks * sin

    o_heads = []
    for h in range(H):               # H = 4, static unroll
        lo, hi = h * d, (h + 1) * d
        qh, kh, vh = q_rot[:, lo:hi], k_rot[:, lo:hi], v[:, lo:hi]
        # scores = qh @ kh.T without materializing a transpose
        s = lax.dot_general(qh, kh, (((1,), (1,)), ((), ())),
                            preferred_element_type=jnp.float32)
        s = s + mask_bias
        s = s - jnp.max(s, axis=-1, keepdims=True)
        p = jnp.exp(s)
        # exact reciprocal: keeps results within the 1e-4 reference tolerance
        # (approx=True would route to the EUP but perturbs normalization).
        p = p * pl.reciprocal(jnp.sum(p, axis=-1, keepdims=True), approx=False)
        o_heads.append(jnp.dot(p, vh, preferred_element_type=jnp.float32))

    # Head concat along lanes, then ONE fused output projection (K = H*d = 128)
    # instead of H serialized K=d matmuls + accumulates.
    o_all = jnp.concatenate(o_heads, axis=-1)                     # (rows, H*d)
    out = jnp.dot(o_all, wot_ref[...], preferred_element_type=jnp.float32)
    out_ref[...] = (out + bo_ref[...]).astype(out_ref.dtype)


# ---------------------------------------------------------------------------
# Wrapper
# ---------------------------------------------------------------------------
def _pick_grid(B, m):
    """Only split the batch into multiple grid steps when each chunk still
    keeps the MXU M-dim well fed (>= 128 rows).  At tiny sizes (B*m = 32 here)
    a single grid step avoids per-step overhead and duplicated weight DMAs,
    which dominate any parallelism win (incl. on dual-TC v7x)."""
    if B > 1 and m >= 128:
        return B
    return 1


def rope_mha(x, wq, wk, wv, wo, bo, grid_b=None):
    B, m, d = x.shape
    H = wq.shape[0]
    HD = H * d
    if grid_b is None:
        grid_b = _pick_grid(B, m)
    assert (B * m) % grid_b == 0
    chunk = (B * m) // grid_b
    # Each grid block must contain only whole sequences, otherwise the
    # diagonal-block mask slicing would silently drop same-sequence keys.
    assert chunk % m == 0, "chunk must be a multiple of the sequence length"

    scale = 1.0 / math.sqrt(d)
    # pair-swap permutation: within each (2i, 2i+1) pair, swap the columns
    perm = np.arange(d).reshape(-1, 2)[:, ::-1].reshape(-1)

    def flatten_heads(w):  # (H, d_in, d_out) -> (d_in, H*d_out), heads side by side
        return jnp.transpose(w, (1, 0, 2)).reshape(d, H * d)

    # pre-transposed (in, out) per-head weights; 1/sqrt(d) folded into Wq
    wq_t = jnp.transpose(wq, (0, 2, 1)) * scale
    wk_t = jnp.transpose(wk, (0, 2, 1))
    wv_t = jnp.transpose(wv, (0, 2, 1))
    w_big = jnp.concatenate(
        [flatten_heads(wq_t), flatten_heads(wq_t[:, :, perm]),
         flatten_heads(wk_t), flatten_heads(wk_t[:, :, perm]),
         flatten_heads(wv_t)], axis=1)                        # (d, 5*H*d)

    # output projection, pre-transposed once: (H*d, d)
    wo_t = jnp.transpose(wo)

    # RoPE cos/sin tables tiled over batch (rows) and heads (lanes)
    cos_md, sin_md = rope_cos_sin(m, d)
    cos_big = jnp.asarray(np.tile(cos_md, (B, H)))            # (B*m, H*d)
    sin_big = jnp.asarray(np.tile(sin_md, (B, H)))

    # additive block-diagonal causal mask over the flattened batch*seq axis,
    # pre-sliced into the per-grid-step diagonal blocks
    pos = np.arange(B * m)
    ok = ((pos[:, None] // m) == (pos[None, :] // m)) & \
         ((pos[None, :] % m) <= (pos[:, None] % m))
    bias_full = np.where(ok, 0.0, NEG_INF).astype(np.float32)
    mask_bias = jnp.asarray(np.stack(
        [bias_full[g * chunk:(g + 1) * chunk, g * chunk:(g + 1) * chunk]
         for g in range(grid_b)]))                            # (grid_b, chunk, chunk)

    x_flat = x.reshape(B * m, d)

    out_flat = pl.pallas_call(
        mha_kernel,
        out_shape=jax.ShapeDtypeStruct((B * m, d), x.dtype),
        grid=(grid_b,),
        in_specs=[
            pl.BlockSpec((chunk, d), lambda g: (g, 0)),            # x (flattened)
            pl.BlockSpec((d, 5 * HD), lambda g: (0, 0)),           # fused W_big
            pl.BlockSpec((chunk, HD), lambda g: (g, 0)),           # cos
            pl.BlockSpec((chunk, HD), lambda g: (g, 0)),           # sin (signed)
            pl.BlockSpec((HD, d), lambda g: (0, 0)),               # Wo^T (fused)
            pl.BlockSpec((1, d), lambda g: (0, 0)),                # output bias
            pl.BlockSpec((pl.Squeezed(), chunk, chunk),
                         lambda g: (g, 0, 0)),                     # causal mask
        ],
        out_specs=pl.BlockSpec((chunk, d), lambda g: (g, 0)),
        compiler_params=pltpu.CompilerParams(
            dimension_semantics=("parallel",)),
    )(x_flat, w_big, cos_big, sin_big, wo_t, bo, mask_bias)
    return out_flat.reshape(B, m, d)


# ---------------------------------------------------------------------------
# Pure-JAX reference with the original module's (eval-mode) semantics
# ---------------------------------------------------------------------------
def reference(x, wq, wk, wv, R, wo, bo):
    B, m, d = x.shape
    Rm = R[:m]
    heads = []
    for h in range(wq.shape[0]):
        q = x @ wq[h].T
        k = x @ wk[h].T
        v = x @ wv[h].T
        q_rot = jnp.einsum("bpc,pce->bpe", q, Rm)
        k_rot = jnp.einsum("bpc,pce->bpe", k, Rm)
        s = jnp.einsum("bqe,bke->bqk", q_rot, k_rot) / math.sqrt(d)
        mask = jnp.tril(jnp.ones((m, m), dtype=bool))
        s = jnp.where(mask, s, -jnp.inf)
        p = jax.nn.softmax(s, axis=-1)
        heads.append(jnp.einsum("bqk,bkd->bqd", p, v))
    cat = jnp.concatenate(heads, axis=-1)
    return cat @ wo.T + bo[0]


if __name__ == "__main__":
    # Full-precision f32 matmuls everywhere so the 1e-4 comparison is meaningful.
    jax.config.update("jax_default_matmul_precision", "highest")

    key = jax.random.PRNGKey(0)
    k_x, k_q, k_k, k_v, k_o, k_b = jax.random.split(key, 6)

    bound = 1.0 / math.sqrt(D_MODEL)
    bound_o = 1.0 / math.sqrt(N_HEADS * D_MODEL)

    x = jax.random.normal(k_x, (BATCH, SEQ, D_MODEL), dtype=jnp.float32)
    wq = jax.random.uniform(k_q, (N_HEADS, D_MODEL, D_MODEL),
                            minval=-bound, maxval=bound, dtype=jnp.float32)
    wk = jax.random.uniform(k_k, (N_HEADS, D_MODEL, D_MODEL),
                            minval=-bound, maxval=bound, dtype=jnp.float32)
    wv = jax.random.uniform(k_v, (N_HEADS, D_MODEL, D_MODEL),
                            minval=-bound, maxval=bound, dtype=jnp.float32)
    wo = jax.random.uniform(k_o, (D_MODEL, N_HEADS * D_MODEL),
                            minval=-bound_o, maxval=bound_o, dtype=jnp.float32)
    bo = jax.random.uniform(k_b, (1, D_MODEL),
                            minval=-bound_o, maxval=bound_o, dtype=jnp.float32)

    out = rope_mha(x, wq, wk, wv, wo, bo)
    out = jax.block_until_ready(out)

    R = rotary_matrix(CONTEXT_WINDOW, D_MODEL)
    ref = reference(x, wq, wk, wv, R, wo, bo)
    np.testing.assert_allclose(np.asarray(out), np.asarray(ref),
                               rtol=1e-4, atol=1e-4)
    print("KERNEL_OK")
</pallas_src>

<mosaic_0001>
module attributes {stable_mosaic.version = 11 : i64} {
  func.func @mha_kernel(%arg0: i32, %arg1: memref<32x32xf32, #tpu.memory_space<vmem>>, %arg2: memref<32x640xf32, #tpu.memory_space<vmem>>, %arg3: memref<32x128xf32, #tpu.memory_space<vmem>>, %arg4: memref<32x128xf32, #tpu.memory_space<vmem>>, %arg5: memref<128x32xf32, #tpu.memory_space<vmem>>, %arg6: memref<1x32xf32, #tpu.memory_space<vmem>>, %arg7: memref<1x32x32xf32, #tpu.memory_space<vmem>>, %arg8: memref<32x32xf32, #tpu.memory_space<vmem>>) attributes {dimension_semantics = [#tpu.dimension_semantics<parallel>], iteration_bounds = array<i64: 1>, scalar_prefetch = 0 : i64, scratch_operands = 0 : i64, tpu.core_type = #tpu.core_type<tc>, window_params = [{transform_indices = @transform_0, window_bounds = array<i64: 32, 32>}, {pipeline_mode = #tpu.pipeline_mode<synchronous>, transform_indices = @transform_1, window_bounds = array<i64: 32, 640>}, {transform_indices = @transform_2, window_bounds = array<i64: 32, 128>}, {transform_indices = @transform_3, window_bounds = array<i64: 32, 128>}, {pipeline_mode = #tpu.pipeline_mode<synchronous>, transform_indices = @transform_4, window_bounds = array<i64: 128, 32>}, {pipeline_mode = #tpu.pipeline_mode<synchronous>, transform_indices = @transform_5, window_bounds = array<i64: 1, 32>}, {transform_indices = @transform_6, window_bounds = array<i64: 1, 32, 32>}, {transform_indices = @transform_7, window_bounds = array<i64: 32, 32>}]} {
    %c0 = arith.constant 0 : index
    %c0_0 = arith.constant 0 : index
    %0 = vector.load %arg1[%c0, %c0_0] : memref<32x32xf32, #tpu.memory_space<vmem>>, vector<32x32xf32>
    %c0_1 = arith.constant 0 : index
    %c0_2 = arith.constant 0 : index
    %1 = vector.load %arg3[%c0_1, %c0_2] : memref<32x128xf32, #tpu.memory_space<vmem>>, vector<32x128xf32>
    %c0_3 = arith.constant 0 : index
    %c0_4 = arith.constant 0 : index
    %2 = vector.load %arg4[%c0_3, %c0_4] : memref<32x128xf32, #tpu.memory_space<vmem>>, vector<32x128xf32>
    %c0_5 = arith.constant 0 : index
    %c0_6 = arith.constant 0 : index
    %c0_7 = arith.constant 0 : index
    %3 = vector.load %arg7[%c0_5, %c0_6, %c0_7] : memref<1x32x32xf32, #tpu.memory_space<vmem>>, vector<1x32x32xf32>
    %4 = vector.shape_cast %3 : vector<1x32x32xf32> to vector<32x32xf32>
    %c0_8 = arith.constant 0 : index
    %c0_9 = arith.constant 0 : index
    %5 = vector.load %arg2[%c0_8, %c0_9] : memref<32x640xf32, #tpu.memory_space<vmem>>, vector<32x640xf32>
    %cst = arith.constant dense<0.000000e+00> : vector<32x640xf32>
    %6 = tpu.matmul %0, %5, %cst {dimension_numbers = #tpu.dot_dimension_numbers<[1], [0], [0], [1], [0, 0, 1, 1], [], []>, precision = #tpu.contract_precision<fp32>} : vector<32x32xf32>, vector<32x640xf32>, vector<32x640xf32> -> vector<32x640xf32>
    %7 = vector.extract_strided_slice %6 {offsets = [0, 0], sizes = [32, 128], strides = [1, 1]} : vector<32x640xf32> to vector<32x128xf32>
    %8 = vector.extract_strided_slice %6 {offsets = [0, 128], sizes = [32, 128], strides = [1, 1]} : vector<32x640xf32> to vector<32x128xf32>
    %9 = vector.extract_strided_slice %6 {offsets = [0, 256], sizes = [32, 128], strides = [1, 1]} : vector<32x640xf32> to vector<32x128xf32>
    %10 = vector.extract_strided_slice %6 {offsets = [0, 384], sizes = [32, 128], strides = [1, 1]} : vector<32x640xf32> to vector<32x128xf32>
    %11 = vector.extract_strided_slice %6 {offsets = [0, 512], sizes = [32, 128], strides = [1, 1]} : vector<32x640xf32> to vector<32x128xf32>
    %12 = arith.mulf %7, %1 : vector<32x128xf32>
    %13 = arith.mulf %8, %2 : vector<32x128xf32>
    %14 = arith.addf %12, %13 : vector<32x128xf32>
    %15 = arith.mulf %9, %1 : vector<32x128xf32>
    %16 = arith.mulf %10, %2 : vector<32x128xf32>
    %17 = arith.addf %15, %16 : vector<32x128xf32>
    %18 = vector.extract_strided_slice %14 {offsets = [0, 0], sizes = [32, 32], strides = [1, 1]} : vector<32x128xf32> to vector<32x32xf32>
    %19 = vector.extract_strided_slice %17 {offsets = [0, 0], sizes = [32, 32], strides = [1, 1]} : vector<32x128xf32> to vector<32x32xf32>
    %20 = vector.extract_strided_slice %11 {offsets = [0, 0], sizes = [32, 32], strides = [1, 1]} : vector<32x128xf32> to vector<32x32xf32>
    %cst_10 = arith.constant dense<0.000000e+00> : vector<32x32xf32>
    %21 = tpu.matmul %18, %19, %cst_10 {dimension_numbers = #tpu.dot_dimension_numbers<[1], [1], [0], [0], [0, 0, 1, 0], [], []>, precision = #tpu.contract_precision<fp32>} : vector<32x32xf32>, vector<32x32xf32>, vector<32x32xf32> -> vector<32x32xf32>
    %22 = arith.addf %21, %4 : vector<32x32xf32>
    %cst_11 = arith.constant dense<0xFF800000> : vector<32xf32>
    %23 = vector.multi_reduction <maximumf>, %22, %cst_11 [1] : vector<32x32xf32> to vector<32xf32>
    %24 = vector.shape_cast %23 : vector<32xf32> to vector<32x1xf32>
    %25 = vector.broadcast %24 : vector<32x1xf32> to vector<32x32xf32>
    %26 = arith.subf %22, %25 : vector<32x32xf32>
    %27 = math.exp %26 : vector<32x32xf32>
    %cst_12 = arith.constant dense<0.000000e+00> : vector<32xf32>
    %28 = vector.multi_reduction <add>, %27, %cst_12 [1] : vector<32x32xf32> to vector<32xf32>
    %29 = vector.shape_cast %28 : vector<32xf32> to vector<32x1xf32>
    %30 = tpu.reciprocal %29 : vector<32x1xf32> -> vector<32x1xf32>
    %31 = vector.broadcast %30 : vector<32x1xf32> to vector<32x32xf32>
    %32 = arith.mulf %27, %31 : vector<32x32xf32>
    %cst_13 = arith.constant dense<0.000000e+00> : vector<32x32xf32>
    %33 = tpu.matmul %32, %20, %cst_13 {dimension_numbers = #tpu.dot_dimension_numbers<[1], [0], [0], [1], [0, 0, 1, 1], [], []>, precision = #tpu.contract_precision<fp32>} : vector<32x32xf32>, vector<32x32xf32>, vector<32x32xf32> -> vector<32x32xf32>
    %34 = vector.extract_strided_slice %14 {offsets = [0, 32], sizes = [32, 32], strides = [1, 1]} : vector<32x128xf32> to vector<32x32xf32>
    %35 = vector.extract_strided_slice %17 {offsets = [0, 32], sizes = [32, 32], strides = [1, 1]} : vector<32x128xf32> to vector<32x32xf32>
    %36 = vector.extract_strided_slice %11 {offsets = [0, 32], sizes = [32, 32], strides = [1, 1]} : vector<32x128xf32> to vector<32x32xf32>
    %cst_14 = arith.constant dense<0.000000e+00> : vector<32x32xf32>
    %37 = tpu.matmul %34, %35, %cst_14 {dimension_numbers = #tpu.dot_dimension_numbers<[1], [1], [0], [0], [0, 0, 1, 0], [], []>, precision = #tpu.contract_precision<fp32>} : vector<32x32xf32>, vector<32x32xf32>, vector<32x32xf32> -> vector<32x32xf32>
    %38 = arith.addf %37, %4 : vector<32x32xf32>
    %cst_15 = arith.constant dense<0xFF800000> : vector<32xf32>
    %39 = vector.multi_reduction <maximumf>, %38, %cst_15 [1] : vector<32x32xf32> to vector<32xf32>
    %40 = vector.shape_cast %39 : vector<32xf32> to vector<32x1xf32>
    %41 = vector.broadcast %40 : vector<32x1xf32> to vector<32x32xf32>
    %42 = arith.subf %38, %41 : vector<32x32xf32>
    %43 = math.exp %42 : vector<32x32xf32>
    %cst_16 = arith.constant dense<0.000000e+00> : vector<32xf32>
    %44 = vector.multi_reduction <add>, %43, %cst_16 [1] : vector<32x32xf32> to vector<32xf32>
    %45 = vector.shape_cast %44 : vector<32xf32> to vector<32x1xf32>
    %46 = tpu.reciprocal %45 : vector<32x1xf32> -> vector<32x1xf32>
    %47 = vector.broadcast %46 : vector<32x1xf32> to vector<32x32xf32>
    %48 = arith.mulf %43, %47 : vector<32x32xf32>
    %cst_17 = arith.constant dense<0.000000e+00> : vector<32x32xf32>
    %49 = tpu.matmul %48, %36, %cst_17 {dimension_numbers = #tpu.dot_dimension_numbers<[1], [0], [0], [1], [0, 0, 1, 1], [], []>, precision = #tpu.contract_precision<fp32>} : vector<32x32xf32>, vector<32x32xf32>, vector<32x32xf32> -> vector<32x32xf32>
    %50 = vector.extract_strided_slice %14 {offsets = [0, 64], sizes = [32, 32], strides = [1, 1]} : vector<32x128xf32> to vector<32x32xf32>
    %51 = vector.extract_strided_slice %17 {offsets = [0, 64], sizes = [32, 32], strides = [1, 1]} : vector<32x128xf32> to vector<32x32xf32>
    %52 = vector.extract_strided_slice %11 {offsets = [0, 64], sizes = [32, 32], strides = [1, 1]} : vector<32x128xf32> to vector<32x32xf32>
    %cst_18 = arith.constant dense<0.000000e+00> : vector<32x32xf32>
    %53 = tpu.matmul %50, %51, %cst_18 {dimension_numbers = #tpu.dot_dimension_numbers<[1], [1], [0], [0], [0, 0, 1, 0], [], []>, precision = #tpu.contract_precision<fp32>} : vector<32x32xf32>, vector<32x32xf32>, vector<32x32xf32> -> vector<32x32xf32>
    %54 = arith.addf %53, %4 : vector<32x32xf32>
    %cst_19 = arith.constant dense<0xFF800000> : vector<32xf32>
    %55 = vector.multi_reduction <maximumf>, %54, %cst_19 [1] : vector<32x32xf32> to vector<32xf32>
    %56 = vector.shape_cast %55 : vector<32xf32> to vector<32x1xf32>
    %57 = vector.broadcast %56 : vector<32x1xf32> to vector<32x32xf32>
    %58 = arith.subf %54, %57 : vector<32x32xf32>
    %59 = math.exp %58 : vector<32x32xf32>
    %cst_20 = arith.constant dense<0.000000e+00> : vector<32xf32>
    %60 = vector.multi_reduction <add>, %59, %cst_20 [1] : vector<32x32xf32> to vector<32xf32>
    %61 = vector.shape_cast %60 : vector<32xf32> to vector<32x1xf32>
    %62 = tpu.reciprocal %61 : vector<32x1xf32> -> vector<32x1xf32>
    %63 = vector.broadcast %62 : vector<32x1xf32> to vector<32x32xf32>
    %64 = arith.mulf %59, %63 : vector<32x32xf32>
    %cst_21 = arith.constant dense<0.000000e+00> : vector<32x32xf32>
    %65 = tpu.matmul %64, %52, %cst_21 {dimension_numbers = #tpu.dot_dimension_numbers<[1], [0], [0], [1], [0, 0, 1, 1], [], []>, precision = #tpu.contract_precision<fp32>} : vector<32x32xf32>, vector<32x32xf32>, vector<32x32xf32> -> vector<32x32xf32>
    %66 = vector.extract_strided_slice %14 {offsets = [0, 96], sizes = [32, 32], strides = [1, 1]} : vector<32x128xf32> to vector<32x32xf32>
    %67 = vector.extract_strided_slice %17 {offsets = [0, 96], sizes = [32, 32], strides = [1, 1]} : vector<32x128xf32> to vector<32x32xf32>
    %68 = vector.extract_strided_slice %11 {offsets = [0, 96], sizes = [32, 32], strides = [1, 1]} : vector<32x128xf32> to vector<32x32xf32>
    %cst_22 = arith.constant dense<0.000000e+00> : vector<32x32xf32>
    %69 = tpu.matmul %66, %67, %cst_22 {dimension_numbers = #tpu.dot_dimension_numbers<[1], [1], [0], [0], [0, 0, 1, 0], [], []>, precision = #tpu.contract_precision<fp32>} : vector<32x32xf32>, vector<32x32xf32>, vector<32x32xf32> -> vector<32x32xf32>
    %70 = arith.addf %69, %4 : vector<32x32xf32>
    %cst_23 = arith.constant dense<0xFF800000> : vector<32xf32>
    %71 = vector.multi_reduction <maximumf>, %70, %cst_23 [1] : vector<32x32xf32> to vector<32xf32>
    %72 = vector.shape_cast %71 : vector<32xf32> to vector<32x1xf32>
    %73 = vector.broadcast %72 : vector<32x1xf32> to vector<32x32xf32>
    %74 = arith.subf %70, %73 : vector<32x32xf32>
    %75 = math.exp %74 : vector<32x32xf32>
    %cst_24 = arith.constant dense<0.000000e+00> : vector<32xf32>
    %76 = vector.multi_reduction <add>, %75, %cst_24 [1] : vector<32x32xf32> to vector<32xf32>
    %77 = vector.shape_cast %76 : vector<32xf32> to vector<32x1xf32>
    %78 = tpu.reciprocal %77 : vector<32x1xf32> -> vector<32x1xf32>
    %79 = vector.broadcast %78 : vector<32x1xf32> to vector<32x32xf32>
    %80 = arith.mulf %75, %79 : vector<32x32xf32>
    %cst_25 = arith.constant dense<0.000000e+00> : vector<32x32xf32>
    %81 = tpu.matmul %80, %68, %cst_25 {dimension_numbers = #tpu.dot_dimension_numbers<[1], [0], [0], [1], [0, 0, 1, 1], [], []>, precision = #tpu.contract_precision<fp32>} : vector<32x32xf32>, vector<32x32xf32>, vector<32x32xf32> -> vector<32x32xf32>
    %82 = tpu.concatenate %33, %49, %65, %81 in 1 : vector<32x32xf32>, vector<32x32xf32>, vector<32x32xf32>, vector<32x32xf32> -> vector<32x128xf32>
    %c0_26 = arith.constant 0 : index
    %c0_27 = arith.constant 0 : index
    %83 = vector.load %arg5[%c0_26, %c0_27] : memref<128x32xf32, #tpu.memory_space<vmem>>, vector<128x32xf32>
    %cst_28 = arith.constant dense<0.000000e+00> : vector<32x32xf32>
    %84 = tpu.matmul %82, %83, %cst_28 {dimension_numbers = #tpu.dot_dimension_numbers<[1], [0], [0], [1], [0, 0, 1, 1], [], []>, precision = #tpu.contract_precision<fp32>} : vector<32x128xf32>, vector<128x32xf32>, vector<32x32xf32> -> vector<32x32xf32>
    %c0_29 = arith.constant 0 : index
    %c0_30 = arith.constant 0 : index
    %85 = vector.load %arg6[%c0_29, %c0_30] : memref<1x32xf32, #tpu.memory_space<vmem>>, vector<1x32xf32>
    %86 = vector.broadcast %85 : vector<1x32xf32> to vector<32x32xf32>
    %87 = arith.addf %84, %86 : vector<32x32xf32>
    %c0_31 = arith.constant 0 : index
    %c0_32 = arith.constant 0 : index
    %88 = vector.load %arg8[%c0_31, %c0_32] : memref<32x32xf32, #tpu.memory_space<vmem>>, vector<32x32xf32>
    tpu.vector_store %arg8[%c0_31, %c0_32], %87 {strides = array<i32>} : memref<32x32xf32, #tpu.memory_space<vmem>>, vector<32x32xf32>,
    return
  }
  func.func @transform_0(%arg0: i32) -> (i32, i32) {
    %c0_i32 = arith.constant 0 : i32
    %c0_i32_0 = arith.constant 0 : i32
    return %arg0, %c0_i32 : i32, i32
  }
  func.func @transform_1(%arg0: i32) -> (i32, i32) {
    %c0_i32 = arith.constant 0 : i32
    %c0_i32_0 = arith.constant 0 : i32
    %c0_i32_1 = arith.constant 0 : i32
    return %c0_i32, %c0_i32_0 : i32, i32
  }
  func.func @transform_2(%arg0: i32) -> (i32, i32) {
    %c0_i32 = arith.constant 0 : i32
    %c0_i32_0 = arith.constant 0 : i32
    return %arg0, %c0_i32 : i32, i32
  }
  func.func @transform_3(%arg0: i32) -> (i32, i32) {
    %c0_i32 = arith.constant 0 : i32
    %c0_i32_0 = arith.constant 0 : i32
    return %arg0, %c0_i32 : i32, i32
  }
  func.func @transform_4(%arg0: i32) -> (i32, i32) {
    %c0_i32 = arith.constant 0 : i32
    %c0_i32_0 = arith.constant 0 : i32
    %c0_i32_1 = arith.constant 0 : i32
    return %c0_i32, %c0_i32_0 : i32, i32
  }
  func.func @transform_5(%arg0: i32) -> (i32, i32) {
    %c0_i32 = arith.constant 0 : i32
    %c0_i32_0 = arith.constant 0 : i32
    %c0_i32_1 = arith.constant 0 : i32
    return %c0_i32, %c0_i32_0 : i32, i32
  }
  func.func @transform_6(%arg0: i32) -> (i32, i32, i32) {
    %c0_i32 = arith.constant 0 : i32
    %c0_i32_0 = arith.constant 0 : i32
    %c0_i32_1 = arith.constant 0 : i32
    return %arg0, %c0_i32, %c0_i32_0 : i32, i32, i32
  }
  func.func @transform_7(%arg0: i32) -> (i32, i32) {
    %c0_i32 = arith.constant 0 : i32
    %c0_i32_0 = arith.constant 0 : i32
    return %arg0, %c0_i32 : i32, i32
  }
}

</mosaic_0001>

<bundles_post_ra>
// kernel: tpu_custom_call.1
= control target key start
LH: loop header
LB: loop body
LE: loop exit
PB: predicated region body
PF: predicated region fallthrough
CT: control target
= control target key end

     0   :  { %12 = vsyncpa [#allocation3], 0  ;;  %s12898_s0 = inlined_call_operand.hbm [shape: f32[32,32], index: 0, kind: input, shape index: {}]   ;;  %s12899_s1 = inlined_call_operand.vmem [shape: f32[32,640], index: 1, kind: input, shape index: {}]   ;;  %s12900_s2 = inlined_call_operand.hbm [shape: f32[32,128], index: 2, kind: input, shape index: {}]   ;;  %s12901_s3 = inlined_call_operand.hbm [shape: f32[32,128], index: 3, kind: input, shape index: {}]   ;;  %s12902_s4 = inlined_call_operand.vmem [shape: f32[128,32], index: 4, kind: input, shape index: {}]   ;;  %s12903_s5 = inlined_call_operand.vmem [shape: f32[1,32], index: 5, kind: input, shape index: {}]   ;;  %s12904_s6 = inlined_call_operand.hbm [shape: f32[1,32,32], index: 6, kind: input, shape index: {}]   ;;  %s12905_s7 = inlined_call_operand.hbm [shape: f32[32,32], index: 7, kind: output, shape index: {}]  }
   0x1   :  { %13 = vsyncpa [#allocation6], 0 }
   0x2   :  { %14 = vsyncpa [#allocation9], 0 }
   0x3   :  { %15 = vsyncpa [#allocation4], 0  ;;  %s11077_s24 = smov [#allocation5]   ;;  %s11078_s26 = smov [#allocation2]  }
   0x4   :  { %s35_s25 = sshll.u32 %s11077_s24, 4  ;;  %s21_s27 = sshll.u32 %s11078_s26, 4  ;;  %s36_s25 = int_to_ptr.vmem [resolvable:$true] %s35_s25  ;;  %s11128_s27 = int_to_ptr.vmem [resolvable:$true] %s21_s27 }
   0x5   :  { %s10959_s30 = scalar_lea.hbm %s12900_s2, 512 }
   0x6   :  { %p10960_p0 = scmp.ne.s32.totalorder %s12900_s2, %s10959_s30  ;;  %p10963_p1 = scmp.lt.u32.totalorder %s10959_s30, %s12900_s2 }
   0x8   :  { %p10965_p2 = pnand %p10963_p1, %p10960_p0 }
   0xa   :  { %10968 = shalt.err (!%p10965_p2)
}
   0xb   :  { %s10969_s12 = scalar_lea.vmem %s36_s25, 512  ;;  %p10974_p4 = scmp.lt.s32.totalorder %s36_s25, %s36_s25 }
   0xc   :  { %p10970_p3 = scmp.ne.s32.totalorder %s36_s25, %s10969_s12  ;;  %p10975_p5 = scmp.lt.s32.totalorder %s10969_s12, %s10969_s12 }
   0xe   :  { %p10976_p6 = por %p10975_p5, %p10974_p4 }
  0x10   :  { %p10977_p7 = pnand %p10976_p6, %p10970_p3 }
  0x12   :  { %10980 = shalt.err (!%p10977_p7)
}
  0x13   :  { %s11079_s13 = smov 128   ;;  %s11080_s14 = smov 8  }
  0x14   :  { %41 = dma.hbm_to_vmem [thread:$0]  %s12900_s2, 512, %s36_s25, [#allocation6], %s11079_s13, %s11079_s13, %s11080_s14  }
  0x15   :  { %s10981_s19 = scalar_lea.hbm %s12898_s0, 512 }
  0x16   :  { %p10982_p8 = scmp.ne.s32.totalorder %s12898_s0, %s10981_s19  ;;  %p10985_p9 = scmp.lt.u32.totalorder %s10981_s19, %s12898_s0 }
  0x18   :  { %p10987_p10 = pnand %p10985_p9, %p10982_p8 }
  0x1a   :  { %10990 = shalt.err (!%p10987_p10)
}
  0x1b   :  { %s10991_s24 = scalar_lea.vmem %s11128_s27, 512  ;;  %p10996_p12 = scmp.lt.s32.totalorder %s11128_s27, %s11128_s27 }
  0x1c   :  { %p10992_p11 = scmp.ne.s32.totalorder %s11128_s27, %s10991_s24  ;;  %p10997_p13 = scmp.lt.s32.totalorder %s10991_s24, %s10991_s24 }
  0x1e   :  { %p10998_p0 = por %p10997_p13, %p10996_p12 }
  0x20   :  { %p10999_p1 = pnand %p10998_p0, %p10992_p11 }
  0x22   :  { %11002 = shalt.err (!%p10999_p1)
}
  0x23   :  { %27 = dma.hbm_to_vmem [thread:$0]  %s12898_s0, 512, %s11128_s27, [#allocation3], %s11079_s13, %s11079_s13, %s11080_s14  }
  0x24   :  { %s11081_s26 = smov [#allocation7]   ;;  %s11082_s29 = smov [#allocation8]  }
  0x25   :  { %s47_s28 = sshll.u32 %s11081_s26, 4  ;;  %s63_s30 = sshll.u32 %s11082_s29, 4  ;;  %s48_s28 = int_to_ptr.vmem [resolvable:$true] %s47_s28  ;;  %s11165_s30 = int_to_ptr.vmem [resolvable:$true] %s63_s30 }
  0x26   :  { %s11003_s10 = scalar_lea.hbm %s12901_s3, 512 }
  0x27   :  { %p11004_p2 = scmp.ne.s32.totalorder %s12901_s3, %s11003_s10  ;;  %p11007_p3 = scmp.lt.u32.totalorder %s11003_s10, %s12901_s3 }
  0x29   :  { %p11009_p4 = pnand %p11007_p3, %p11004_p2 }
  0x2b   :  { %11012 = shalt.err (!%p11009_p4)
}
  0x2c   :  { %s11013_s0 = scalar_lea.vmem %s48_s28, 512  ;;  %p11018_p6 = scmp.lt.s32.totalorder %s48_s28, %s48_s28 }
  0x2d   :  { %p11014_p5 = scmp.ne.s32.totalorder %s48_s28, %s11013_s0  ;;  %p11019_p7 = scmp.lt.s32.totalorder %s11013_s0, %s11013_s0 }
  0x2f   :  { %p11020_p8 = por %p11019_p7, %p11018_p6 }
  0x31   :  { %p11021_p9 = pnand %p11020_p8, %p11014_p5 }
  0x33   :  { %11024 = shalt.err (!%p11021_p9)
}
  0x34   :  { %53 = dma.hbm_to_vmem [thread:$0]  %s12901_s3, 512, %s48_s28, [#allocation6], %s11079_s13, %s11079_s13, %s11080_s14  }
  0x35   :  { %s11025_s20 = scalar_lea.hbm %s12904_s6, 512 }
  0x36   :  { %p11026_p10 = scmp.ne.s32.totalorder %s12904_s6, %s11025_s20  ;;  %p11029_p11 = scmp.lt.u32.totalorder %s11025_s20, %s12904_s6 }
  0x38   :  { %p11031_p12 = pnand %p11029_p11, %p11026_p10 }
  0x3a   :  { %11034 = shalt.err (!%p11031_p12)
}
  0x3b   :  { %s11035_s2 = scalar_lea.vmem %s11165_s30, 512  ;;  %p11040_p0 = scmp.lt.s32.totalorder %s11165_s30, %s11165_s30 }
  0x3c   :  { %p11036_p13 = scmp.ne.s32.totalorder %s11165_s30, %s11035_s2  ;;  %p11041_p1 = scmp.lt.s32.totalorder %s11035_s2, %s11035_s2 }
  0x3e   :  { %p11042_p2 = por %p11041_p1, %p11040_p0 }
  0x40   :  { %p11043_p3 = pnand %p11042_p2, %p11036_p13 }
  0x42   :  { %11046 = shalt.err (!%p11043_p3)
}
  0x43   :  { %69 = dma.hbm_to_vmem [thread:$0]  %s12904_s6, 512, %s11165_s30, [#allocation9], %s11079_s13, %s11079_s13, %s11080_s14  }
  0x44   :  { %11069 = dma.done.wait [#allocation3], 512  }
  0x45   :  { %11070 = vsyncadd [#allocation3], 4294966784 }
  0x46   :  { %11071 = dma.done.wait [#allocation6], 1024  }
  0x47   :  { %11072 = vsyncadd [#allocation6], 4294966272 }
  0x48   :  { %11073 = dma.done.wait [#allocation9], 512  }
  0x49   :  { %11074 = vsyncadd [#allocation9], 4294966784  ;;  %v11083_v0 = vmov 0.0   ;;  %v99_v1 = vld [vmem:[%s12899_s1 + $0x8] sm:$0xff]  ;;  %v104_v2 = vld [vmem:[%s12899_s1 + $0x30] sm:$0xff]  ;;  %vm118_vm0 = vcmask 261120  }
  0x4a   :  { %203 = vmatprep.mubr.f32.mxu1 %v11083_v0  ;;  %352 = vmatprep.mubr.f32.mxu0 %v11083_v0  ;;  %v98_v3 = vld [vmem:[%s12899_s1] sm:$0xff]  ;;  %v131_v4 = vand.u32 4294901760, %v99_v1  ;;  %v135_v5 = vand.u32 4294901760, %v104_v2  ;;  %v103_v6 = vld [vmem:[%s12899_s1 + $0x28] sm:$0xff]  ;;  %v109_v8 = vld [vmem:[%s12899_s1 + $0x58] sm:$0xff]  ;;  %s11084_s10 = smov 96  }
  0x4b   :  { %v133_v7 = vand.u32 4294901760, %v98_v3  ;;  %v114_v9 = vld [vmem:[%s12899_s1 + $0x80] sm:$0xff]  ;;  %v137_v10 = vand.u32 4294901760, %v103_v6  ;;  %v139_v11 = vand.u32 4294901760, %v109_v8  ;;  %v108_v13 = vld [vmem:[%s12899_s1 + $0x50] sm:$0xff]  ;;  %v113_v14 = vld [vmem:[%s12899_s1 + $0x78] sm:$0xff] }
  0x4c   :  { %v143_v12 = vand.u32 4294901760, %v114_v9  ;;  %v11228_v15 = vpack.c.bf16 %v135_v5, %v131_v4  ;;  %v141_v17 = vand.u32 4294901760, %v108_v13  ;;  %v145_v18 = vand.u32 4294901760, %v113_v14  ;;  %v82_v19 = vld [vmem:[#allocation2] sm:$0xff]  ;;  %v101_v20 = vld [vmem:[%s12899_s1 + $0x18] sm:$0xff]  ;;  %v100_v30 = vld [vmem:[%s12899_s1 + $0x10] sm:$0xff] }
  0x4d   :  { %v11230_v16 = vsub.f32 %v98_v3, %v133_v7  ;;  %v11235_v21 = vpack.c.bf16 %v137_v10, %v133_v7  ;;  %v11237_v22 = vsub.f32 %v103_v6, %v137_v10  ;;  %v11241_v24 = vsub.f32 %v109_v8, %v139_v11  ;;  %v106_v25 = vld [vmem:[%s12899_s1 + $0x40] sm:$0xff]  ;;  %v105_v39 = vld [vmem:[%s12899_s1 + $0x38] sm:$0xff]  ;;  %v83_v44 = vld [vmem:[#allocation2 + $0x8] sm:$0xff]  ;;  %s11086_s19 = smov 32  }
  0x4e   :  { %v11239_v23 = vpack.c.bf16 %v143_v12, %v139_v11  ;;  %9861 = vmatprep.subr.bf16.mxu1 %v11228_v15  ;;  %v11247_v26 = vsub.f32 %v114_v9, %v143_v12  ;;  %v11249_v27 = vpack.c.bf16 %v145_v18, %v141_v17  ;;  %v11251_v28 = vsub.f32 %v108_v13, %v141_v17  ;;  %v111_v3 = vld [vmem:[%s12899_s1 + $0x68] sm:$0xff]  ;;  %v116_v12 = vld [vmem:[%s12899_s1 + $0x90] sm:$0xff] }
  0x4f   :  { %v11253_v29 = vsub.f32 %v113_v14, %v145_v18  ;;  %9863 = vmatpush1.bf16.msra.mxu1 %v11235_v21  ;;  %v120_v31 = vsel %vm118_vm0, %v82_v19, 0  ;;  %v11260_v32 = vsub.f32 %v99_v1, %v131_v4  ;;  %v11262_v33 = vsub.f32 %v104_v2, %v135_v5  ;;  %v84_v2 = vld [vmem:[#allocation2 + $0x10] sm:$0xff]  ;;  %v110_v19 = vld [vmem:[%s12899_s1 + $0x60] sm:$0xff] }
  0x50   :  { %v821_v34 = vand.u32 4294901760, %v101_v20  ;;  %9865 = vmatprep.subr.bf16.mxu1 %v11239_v23  ;;  %v11265_v35 = vand.u32 4294901760, %v120_v31  ;;  %v825_v36 = vand.u32 4294901760, %v106_v25  ;;  %v256_v37 = vand.u32 4294901760, %v11230_v16 }
  0x51   :  { %v268_v38 = vand.u32 4294901760, %v11237_v22  ;;  %v250_v40 = vand.u32 4294901760, %v11260_v32  ;;  %v262_v41 = vand.u32 4294901760, %v11262_v33  ;;  %v823_v43 = vand.u32 4294901760, %v100_v30 }
  0x52   :  { %v11274_v42 = vsub.f32 %v101_v20, %v821_v34  ;;  %v11277_v45 = vsub.f32 %v120_v31, %v11265_v35  ;;  %v11279_v46 = vpack.c.bf16 %v825_v36, %v821_v34  ;;  %v11281_v47 = vsub.f32 %v106_v25, %v825_v36  ;;  %v115_v34 = vld [vmem:[%s12899_s1 + $0x88] sm:$0xff] }
  0x53   :  { %v257_v48 = vsub.f32 %v11230_v16, %v256_v37  ;;  %9867 = vmatpush1.bf16.msra.mxu1 %v11249_v27  ;;  %v251_v49 = vsub.f32 %v11260_v32, %v250_v40  ;;  %v263_v50 = vsub.f32 %v11262_v33, %v262_v41  ;;  %v269_v51 = vsub.f32 %v11237_v22, %v268_v38 }
  0x54   :  { %v827_v52 = vand.u32 4294901760, %v105_v39  ;;  %v11297_v53 = vand.u32 4294901760, %v11277_v45  ;;  %9909 = vmatprep.subr.bf16.mxu1 %v11279_v46  ;;  %v11300_v55 = vsub.f32 %v100_v30, %v823_v43  ;;  %v123_v56 = vsel %vm118_vm0, %v83_v44, 0 }
  0x55   :  { %v258_v54 = vand.u32 4294901760, %v257_v48  ;;  %v252_v57 = vand.u32 4294901760, %v251_v49  ;;  %v264_v58 = vand.u32 4294901760, %v263_v50  ;;  %v270_v59 = vand.u32 4294901760, %v269_v51 }
  0x56   :  { %v11303_v60 = vpack.c.bf16 %v827_v52, %v823_v43  ;;  %v207_v61 = vsub.f32 %v11277_v45, %v11297_v53  ;;  %v11307_v62 = vsub.f32 %v105_v39, %v827_v52  ;;  %v11309_v63 = vand.u32 4294901760, %v123_v56  ;;  %v85_v52 = vld [vmem:[#allocation2 + $0x18] sm:$0xff] }
  0x57   :  { %v274_v1 = vand.u32 4294901760, %v11241_v24  ;;  %v9868_v4 = vpack.c.bf16 %v264_v58, %v252_v57  ;;  %v9870_v5 = vpack.c.bf16 %v270_v59, %v258_v54  ;;  %v286_v6 = vand.u32 4294901760, %v11247_v26 }
  0x58   :  { %v280_v7 = vand.u32 4294901760, %v11251_v28  ;;  %v11317_v8 = vand.u32 4294901760, %v207_v61  ;;  %v11320_v9 = vsub.f32 %v123_v56, %v11309_v63  ;;  %v12911_v11 = vand.u32 4294901760, %v11253_v29 }
  0x59   :  { %v275_v10 = vsub.f32 %v11241_v24, %v274_v1  ;;  %9869 = vmatprep.subr.bf16.mxu0 %v9868_v4  ;;  %v287_v13 = vsub.f32 %v11247_v26, %v286_v6  ;;  %v126_v17 = vsel %vm118_vm0, %v84_v2, 0  ;;  %v829_v18 = vand.u32 4294901760, %v111_v3 }
  0x5a   :  { %v281_v14 = vsub.f32 %v11251_v28, %v280_v7  ;;  %209 = vmatmul.mubr.f32.vlgmr.msra.gmra.mrb[0].mxu1 %v11317_v8  ;;  %9871 = vmatpush1.bf16.msra.mxu0 %v9870_v5  ;;  %v11341_v20 = vand.u32 4294901760, %v11320_v9  ;;  %v293_v30 = vsub.f32 %v11253_v29, %v12911_v11  ;;  %v11346_v31 = vand.u32 4294901760, %v126_v17 }
  0x5b   :  { %v276_v25 = vand.u32 4294901760, %v275_v10  ;;  %9911 = vmatpush1.bf16.msra.mxu1 %v11303_v60  ;;  %214 = vmatprep.mubr.f32.mxu1 %v11083_v0  ;;  %v288_v36 = vand.u32 4294901760, %v287_v13  ;;  %v833_v43 = vand.u32 4294901760, %v116_v12  ;;  %v11353_v44 = vsub.f32 %v111_v3, %v829_v18 }
  0x5c   :  { %v282_v39 = vand.u32 4294901760, %v281_v14  ;;  %v218_v48 = vsub.f32 %v11320_v9, %v11341_v20  ;;  %v294_v49 = vand.u32 4294901760, %v293_v30  ;;  %v11358_v50 = vsub.f32 %v126_v17, %v11346_v31 }
  0x5d   :  { %v831_v51 = vand.u32 4294901760, %v110_v19  ;;  %v9872_v54 = vpack.c.bf16 %v288_v36, %v276_v25  ;;  %v11360_v56 = vpack.c.bf16 %v833_v43, %v829_v18  ;;  %v11362_v57 = vsub.f32 %v116_v12, %v833_v43 }
  0x5e   :  { %v835_v58 = vand.u32 4294901760, %v115_v34  ;;  %v11364_v59 = vand.u32 4294901760, %v218_v48  ;;  %v9874_v61 = vpack.c.bf16 %v294_v49, %v282_v39  ;;  %v11367_v2 = vand.u32 4294901760, %v11358_v50 }
  0x5f   :  { %v11369_v3 = vsub.f32 %v110_v19, %v831_v51  ;;  %9873 = vmatprep.subr.bf16.mxu0 %v9872_v54  ;;  %9913 = vmatprep.subr.bf16.mxu1 %v11360_v56  ;;  %v129_v10 = vsel %vm118_vm0, %v85_v52, 0  ;;  %v9876_v12 = vpack.c.bf16 %v11262_v33, %v11260_v32  ;;  %v12909_v17 = vand.u32 4294901760, %v11274_v42 }
  0x60   :  { %v11372_v4 = vpack.c.bf16 %v835_v58, %v831_v51  ;;  %v11374_v5 = vsub.f32 %v115_v34, %v835_v58  ;;  %220 = vmatmul.mubr.f32.gmra.mrb[2].mxu1 %v11364_v59  ;;  %9875 = vmatpush1.bf16.msra.mxu0 %v9874_v61  ;;  %v229_v13 = vsub.f32 %v11358_v50, %v11367_v2  ;;  %v11382_v14 = vand.u32 4294901760, %v129_v10 }
  0x61   :  { %v12908_v18 = vand.u32 4294901760, %v11281_v47  ;;  %225 = vmatprep.mubr.f32.mxu1 %v11083_v0  ;;  %v9878_v19 = vpack.c.bf16 %v11237_v22, %v11230_v16  ;;  %v12907_v25 = vand.u32 4294901760, %v11300_v55  ;;  %v12906_v30 = vand.u32 4294901760, %v11307_v62  ;;  %9877 = vmatprep.subr.bf16.mxu0 %v9876_v12 }
  0x62   :  { %9915 = vmatpush1.bf16.msra.mxu1 %v11372_v4  ;;  %v9880_v34 = vpack.c.bf16 %v11247_v26, %v11241_v24  ;;  %v11394_v36 = vand.u32 4294901760, %v229_v13  ;;  %v11397_v39 = vsub.f32 %v129_v10, %v11382_v14  ;;  %v941_v43 = vsub.f32 %v11274_v42, %v12909_v17 }
  0x63   :  { %v953_v48 = vsub.f32 %v11281_v47, %v12908_v18  ;;  %354 = vmatmul.mubr.f32.vlgmr.msra.gmra.mrb[0].mxu0 %v11265_v35  ;;  %v947_v49 = vsub.f32 %v11300_v55, %v12907_v25  ;;  %v959_v51 = vsub.f32 %v11307_v62, %v12906_v30  ;;  %v12910_v52 = vand.u32 4294901760, %v11353_v44 }
  0x64   :  { %231 = vmatmul.mubr.f32.gmra.mrb[4].mxu1 %v11394_v36  ;;  %359 = vmatprep.mubr.f32.mxu0 %v11083_v0  ;;  %v11416_v54 = vand.u32 4294901760, %v11397_v39  ;;  %v942_v58 = vand.u32 4294901760, %v941_v43  ;;  %v976_v10 = vand.u32 4294901760, %v11362_v57  ;;  %v9882_v12 = vpack.c.bf16 %v11253_v29, %v11251_v28 }
  0x65   :  { %v954_v61 = vand.u32 4294901760, %v953_v48  ;;  %236 = vmatprep.mubr.f32.mxu1 %v11083_v0  ;;  %9879 = vmatpush1.bf16.msra.mxu0 %v9878_v19  ;;  %v965_v13 = vsub.f32 %v11353_v44, %v12910_v52  ;;  %v970_v30 = vand.u32 4294901760, %v11369_v3  ;;  %v982_v19 = vand.u32 4294901760, %v11374_v5 }
  0x66   :  { %v240_v25 = vsub.f32 %v11397_v39, %v11416_v54  ;;  %9881 = vmatprep.subr.bf16.mxu0 %v9880_v34  ;;  %v977_v43 = vsub.f32 %v11362_v57, %v976_v10  ;;  %v948_v48 = vand.u32 4294901760, %v947_v49  ;;  %v960_v17 = vand.u32 4294901760, %v959_v51 }
  0x67   :  { %v9916_v18 = vpack.c.bf16 %v954_v61, %v942_v58  ;;  %361 = vmatmul.mubr.f32.gmra.mrb[2].mxu0 %v11309_v63  ;;  %v971_v52 = vsub.f32 %v11369_v3, %v970_v30  ;;  %v966_v34 = vand.u32 4294901760, %v965_v13  ;;  %v983_v61 = vsub.f32 %v11374_v5, %v982_v19 }
  0x68   :  { %v11436_v11 = vand.u32 4294901760, %v240_v25  ;;  %366 = vmatprep.mubr.f32.mxu0 %v11083_v0  ;;  %v978_v58 = vand.u32 4294901760, %v977_v43  ;;  %v9918_v25 = vpack.c.bf16 %v960_v17, %v948_v48  ;;  %v9924_v13 = vpack.c.bf16 %v11281_v47, %v11274_v42  ;;  %v91_v43 = vld [vmem:[#allocation7 + $0x8] sm:$0xff] }
  0x69   :  { %9917 = vmatprep.subr.bf16.mxu1 %v9916_v18  ;;  %9883 = vmatpush1.bf16.msra.mxu0 %v9882_v12  ;;  %v972_v49 = vand.u32 4294901760, %v971_v52  ;;  %v984_v51 = vand.u32 4294901760, %v983_v61  ;;  %v9892_v17 = vpack.c.bf16 %v262_v41, %v250_v40  ;;  %v9926_v52 = vpack.c.bf16 %v11307_v62, %v11300_v55 }
  0x6a   :  { %242 = vmatmul.mubr.f32.gmra.mrb[6].mxu1 %v11436_v11  ;;  %9885 = vmatprep.subr.bf16.mxu0 %v11228_v15  ;;  %v9920_v18 = vpack.c.bf16 %v978_v58, %v966_v34  ;;  %v9928_v32 = vpack.c.bf16 %v11362_v57, %v11353_v44  ;;  %v9930_v33 = vpack.c.bf16 %v11374_v5, %v11369_v3  ;;  %v12912_v16 = vand.u32 4294901760, %v11253_v29 }
  0x6b   :  { %893 = vmatprep.mubr.f32.mxu1 %v11083_v0  ;;  %368 = vmatmul.mubr.f32.gmra.mrb[4].mxu0 %v11346_v31  ;;  %v9922_v12 = vpack.c.bf16 %v984_v51, %v972_v49  ;;  %v9894_v40 = vpack.c.bf16 %v268_v38, %v256_v37  ;;  %v9896_v41 = vpack.c.bf16 %v286_v6, %v274_v1  ;;  %v12913_v24 = vand.u32 4294901760, %v11274_v42  ;;  %v86_v6 = vld [vmem:[#allocation5] sm:$0xff]  ;;  %v88_v49 = vld [vmem:[#allocation5 + $0x10] sm:$0xff] }
  0x6c   :  { %373 = vmatprep.mubr.f32.mxu0 %v11083_v0  ;;  %v9898_v22 = vpack.c.bf16 %v12912_v16, %v280_v7  ;;  %v12915_v28 = vand.u32 4294901760, %v11300_v55  ;;  %v89_v16 = vld [vmem:[#allocation5 + $0x18] sm:$0xff]  ;;  %vm7497_vm1 = vcmask 523264   ;;  %vm7502_vm2 = vcmask 785408  }
  0x6e   :  { %899 = vmatmul.mubr.f32.vlgmr.msra.gmra.mrb[8].mxu1 %v11317_v8 }
  0x6f   :  { %9919 = vmatpush1.bf16.msra.mxu1 %v9918_v25  ;;  %904 = vmatprep.mubr.f32.mxu1 %v11083_v0 }
  0x70   :  { %375 = vmatmul.mubr.f32.gmra.mrb[6].mxu0 %v11382_v14  ;;  %9921 = vmatprep.subr.bf16.mxu1 %v9920_v18 }
  0x71   :  { %461 = vmatprep.mubr.f32.mxu0 %v11083_v0 }
  0x72   :  { %910 = vmatmul.mubr.f32.gmra.mrb[10].mxu1 %v11364_v59 }
  0x73   :  { %915 = vmatprep.mubr.f32.mxu1 %v11083_v0  ;;  %9923 = vmatpush1.bf16.msra.mxu1 %v9922_v12 }
  0x74   :  { %464 = vmatmul.mubr.f32.vlgmr.msra.gmra.mrb[0].mxu0 %v11277_v45  ;;  %9925 = vmatprep.subr.bf16.mxu1 %v9924_v13  ;;  %v92_v13 = vld [vmem:[#allocation7 + $0x10] sm:$0xff] }
  0x75   :  { %469 = vmatprep.mubr.f32.mxu0 %v11083_v0  ;;  %9887 = vmatpush1.bf16.msra.mxu0 %v11235_v21 }
  0x76   :  { %921 = vmatmul.mubr.f32.gmra.mrb[12].mxu1 %v11394_v36  ;;  %9889 = vmatprep.subr.bf16.mxu0 %v11239_v23 }
  0x77   :  { %926 = vmatprep.mubr.f32.mxu1 %v11083_v0 }
  0x78   :  { %472 = vmatmul.mubr.f32.gmra.mrb[2].mxu0 %v11320_v9 }
  0x79   :  { %477 = vmatprep.mubr.f32.mxu0 %v11083_v0  ;;  %9891 = vmatpush1.bf16.msra.mxu0 %v11249_v27 }
  0x7a   :  { %932 = vmatmul.mubr.f32.gmra.mrb[14].mxu1 %v11436_v11  ;;  %9893 = vmatprep.subr.bf16.mxu0 %v9892_v17 }
  0x7b   :  { %1042 = vmatprep.mubr.f32.mxu1 %v11083_v0 }
  0x7c   :  { %480 = vmatmul.mubr.f32.gmra.mrb[4].mxu0 %v11358_v50 }
  0x7d   :  { %485 = vmatprep.mubr.f32.mxu0 %v11083_v0 }
  0x7e   :  { %1044 = vmatmul.mubr.f32.vlgmr.msra.gmra.mrb[8].mxu1 %v11265_v35 }
  0x7f   :  { %9927 = vmatpush1.bf16.msra.mxu1 %v9926_v52  ;;  %1049 = vmatprep.mubr.f32.mxu1 %v11083_v0 }
  0x80   :  { %488 = vmatmul.mubr.f32.gmra.mrb[6].mxu0 %v11397_v39  ;;  %9929 = vmatprep.subr.bf16.mxu1 %v9928_v32 }
  0x81   :  { %566 = vmatprep.mubr.f32.mxu0 %v11083_v0 }
  0x82   :  { %1051 = vmatmul.mubr.f32.gmra.mrb[10].mxu1 %v11309_v63 }
  0x83   :  { %1056 = vmatprep.mubr.f32.mxu1 %v11083_v0  ;;  %9931 = vmatpush1.bf16.msra.mxu1 %v9930_v33 }
  0x84   :  { %570 = vmatmul.mubr.f32.vlgmr.msra.gmra.mrb[0].mxu0 %v11297_v53  ;;  %9933 = vmatprep.subr.bf16.mxu1 %v11279_v46 }
  0x85   :  { %575 = vmatprep.mubr.f32.mxu0 %v11083_v0  ;;  %9895 = vmatpush1.bf16.msra.mxu0 %v9894_v40 }
  0x86   :  { %1058 = vmatmul.mubr.f32.gmra.mrb[12].mxu1 %v11346_v31  ;;  %9897 = vmatprep.subr.bf16.mxu0 %v9896_v41 }
  0x87   :  { %1063 = vmatprep.mubr.f32.mxu1 %v11083_v0 }
  0x88   :  { %579 = vmatmul.mubr.f32.gmra.mrb[2].mxu0 %v11341_v20 }
  0x89   :  { %584 = vmatprep.mubr.f32.mxu0 %v11083_v0  ;;  %9899 = vmatpush1.bf16.msra.mxu0 %v9898_v22 }
  0x8a   :  { %1065 = vmatmul.mubr.f32.gmra.mrb[14].mxu1 %v11382_v14  ;;  %9901 = vmatprep.subr.bf16.mxu0 %v11228_v15  ;;  %v12914_v15 = vand.u32 4294901760, %v11281_v47 }
  0x8b   :  { %1151 = vmatprep.mubr.f32.mxu1 %v11083_v0 }
  0x8c   :  { %588 = vmatmul.mubr.f32.gmra.mrb[4].mxu0 %v11367_v2  ;;  %v9940_v26 = vpack.c.bf16 %v12914_v15, %v12913_v24 }
  0x8d   :  { %593 = vmatprep.mubr.f32.mxu0 %v11083_v0 }
  0x8e   :  { %1154 = vmatmul.mubr.f32.vlgmr.msra.gmra.mrb[8].mxu1 %v11277_v45 }
  0x8f   :  { %9935 = vmatpush1.bf16.msra.mxu1 %v11303_v60  ;;  %1159 = vmatprep.mubr.f32.mxu1 %v11083_v0 }
  0x90   :  { %597 = vmatmul.mubr.f32.gmra.mrb[6].mxu0 %v11416_v54  ;;  %9937 = vmatprep.subr.bf16.mxu1 %v11360_v56 }
  0x91   :  { %691 = vmatprep.mubr.f32.mxu0 %v11083_v0 }
  0x92   :  { %1162 = vmatmul.mubr.f32.gmra.mrb[10].mxu1 %v11320_v9 }
  0x93   :  { %1167 = vmatprep.mubr.f32.mxu1 %v11083_v0  ;;  %9939 = vmatpush1.bf16.msra.mxu1 %v11372_v4 }
  0x94   :  { %693 = vmatmul.mubr.f32.vlgmr.msra.gmra.mrb[0].mxu0 %v11265_v35  ;;  %9941 = vmatprep.subr.bf16.mxu1 %v9940_v26  ;;  %v93_v26 = vld [vmem:[#allocation7 + $0x18] sm:$0xff] }
  0x95   :  { %698 = vmatprep.mubr.f32.mxu0 %v11083_v0  ;;  %9903 = vmatpush1.bf16.msra.mxu0 %v11235_v21  ;;  %v12916_v21 = vand.u32 4294901760, %v11307_v62 }
  0x96   :  { %1170 = vmatmul.mubr.f32.gmra.mrb[12].mxu1 %v11358_v50  ;;  %9905 = vmatprep.subr.bf16.mxu0 %v11239_v23  ;;  %v12917_v23 = vand.u32 4294901760, %v11353_v44  ;;  %v90_v44 = vld [vmem:[#allocation7] sm:$0xff] }
  0x97   :  { %1175 = vmatprep.mubr.f32.mxu1 %v11083_v0  ;;  %v9942_v29 = vpack.c.bf16 %v12916_v21, %v12915_v28 }
  0x98   :  { %700 = vmatmul.mubr.f32.gmra.mrb[2].mxu0 %v11309_v63  ;;  %v9944_v37 = vpack.c.bf16 %v976_v10, %v12917_v23 }
  0x99   :  { %705 = vmatprep.mubr.f32.mxu0 %v11083_v0  ;;  %9907 = vmatpush1.bf16.msra.mxu0 %v11249_v27  ;;  %v9946_v27 = vpack.c.bf16 %v982_v19, %v970_v30 }
  0x9a   :  { %1178 = vmatmul.mubr.f32.gmra.mrb[14].mxu1 %v11397_v39 }
  0x9b   :  { %1256 = vmatprep.mubr.f32.mxu1 %v11083_v0 }
  0x9c   :  { %707 = vmatmul.mubr.f32.gmra.mrb[4].mxu0 %v11346_v31 }
  0x9d   :  { %712 = vmatprep.mubr.f32.mxu0 %v11083_v0 }
  0x9e   :  { %1260 = vmatmul.mubr.f32.vlgmr.msra.gmra.mrb[8].mxu1 %v11297_v53 }
  0x9f   :  { %9943 = vmatpush1.bf16.msra.mxu1 %v9942_v29  ;;  %1265 = vmatprep.mubr.f32.mxu1 %v11083_v0 }
  0xa0   :  { %714 = vmatmul.mubr.f32.gmra.mrb[6].mxu0 %v11382_v14  ;;  %9945 = vmatprep.subr.bf16.mxu1 %v9944_v37 }
  0xa1   :  { %792 = vmatprep.mubr.f32.mxu0 %v11083_v0 }
  0xa2   :  { %1269 = vmatmul.mubr.f32.gmra.mrb[10].mxu1 %v11341_v20 }
  0xa3   :  { %1274 = vmatprep.mubr.f32.mxu1 %v11083_v0  ;;  %9947 = vmatpush1.bf16.msra.mxu1 %v9946_v27 }
  0xa4   :  { %794 = vmatmul.mubr.f32.vlgmr.msra.gmra.mrb[0].mxu0 %v11265_v35  ;;  %9949 = vmatprep.subr.bf16.mxu1 %v11279_v46 }
  0xa5   :  { %799 = vmatprep.mubr.f32.mxu0 %v11083_v0 }
  0xa6   :  { %1278 = vmatmul.mubr.f32.gmra.mrb[12].mxu1 %v11367_v2 }
  0xa7   :  { %1283 = vmatprep.mubr.f32.mxu1 %v11083_v0 }
  0xa8   :  { %801 = vmatmul.mubr.f32.gmra.mrb[2].mxu0 %v11309_v63 }
  0xa9   :  { %806 = vmatprep.mubr.f32.mxu0 %v11083_v0 }
  0xaa   :  { %1287 = vmatmul.mubr.f32.gmra.mrb[14].mxu1 %v11416_v54 }
  0xab   :  { %1381 = vmatprep.mubr.f32.mxu1 %v11083_v0 }
  0xac   :  { %808 = vmatmul.mubr.f32.gmra.mrb[4].mxu0 %v11346_v31 }
  0xad   :  { %813 = vmatprep.mubr.f32.mxu0 %v11083_v0 }
  0xae   :  { %1383 = vmatmul.mubr.f32.vlgmr.msra.gmra.mrb[8].mxu1 %v11265_v35 }
  0xaf   :  { %9951 = vmatpush1.bf16.msra.mxu1 %v11303_v60  ;;  %1388 = vmatprep.mubr.f32.mxu1 %v11083_v0 }
  0xb0   :  { %815 = vmatmul.mubr.f32.gmra.mrb[6].mxu0 %v11382_v14  ;;  %9953 = vmatprep.subr.bf16.mxu1 %v11360_v56 }
  0xb1   :  { %8884 = vmatprep.mubr.f32.mxu0 %v11317_v8 }
  0xb2   :  { %1390 = vmatmul.mubr.f32.gmra.mrb[10].mxu1 %v11309_v63 }
  0xb3   :  { %1395 = vmatprep.mubr.f32.mxu1 %v11083_v0  ;;  %9955 = vmatpush1.bf16.msra.mxu1 %v11372_v4 }
  0xb6   :  { %1397 = vmatmul.mubr.f32.gmra.mrb[12].mxu1 %v11346_v31 }
  0xb7   :  { %1402 = vmatprep.mubr.f32.mxu1 %v11083_v0 }
  0xba   :  { %1404 = vmatmul.mubr.f32.gmra.mrb[14].mxu1 %v11382_v14 }
  0xbb   :  { %1482 = vmatprep.mubr.f32.mxu1 %v11083_v0 }
  0xbe   :  { %1484 = vmatmul.mubr.f32.vlgmr.msra.gmra.mrb[8].mxu1 %v11265_v35 }
  0xbf   :  { %1489 = vmatprep.mubr.f32.mxu1 %v11083_v0 }
  0xc2   :  { %1491 = vmatmul.mubr.f32.gmra.mrb[10].mxu1 %v11309_v63 }
  0xc3   :  { %1496 = vmatprep.mubr.f32.mxu1 %v11083_v0 }
  0xc6   :  { %1498 = vmatmul.mubr.f32.gmra.mrb[12].mxu1 %v11346_v31 }
  0xc7   :  { %1503 = vmatprep.mubr.f32.mxu1 %v11083_v0  ;;  %v87_v0 = vld [vmem:[#allocation5 + $0x8] sm:$0xff] }
  0xca   :  { %1505 = vmatmul.mubr.f32.gmra.mrb[14].mxu1 %v11382_v14 }
 0x12d   :  { %v210_v38 = vpop.f32.mrb[0].mxu1 }
 0x12e   :  { %v212_v42 = vpop.f32.mrb[1].mxu1 }
 0x133   :  { %v221_v46 = vpop.f32.mrb[2].mxu1 }
 0x134   :  { %v223_v47 = vpop.f32.mrb[3].mxu1 }
 0x137   :  { %v232_v55 = vpop.f32.mrb[4].mxu1 }
 0x138   :  { %v234_v60 = vpop.f32.mrb[5].mxu1 }
 0x13d   :  { %v243_v62 = vpop.f32.mrb[6].mxu1 }
 0x13e   :  { %v245_v1 = vpop.f32.mrb[7].mxu1 }
 0x177   :  { %v795_v7 = vpop.f32.mrb[0].mxu0 }
 0x178   :  { %v10580_v8 = vadd.f32 %v795_v7, %v210_v38  ;;  %v797_v56 = vpop.f32.mrb[1].mxu0 }
 0x179   :  { %v10581_v57 = vadd.f32 %v797_v56, %v212_v42 }
 0x17a   :  { %v2125_v3 = vmul.f32 %v10580_v8, %v86_v6 }
 0x17b   :  { %v2129_v4 = vmul.f32 %v10581_v57, %v90_v44  ;;  %v802_v5 = vpop.f32.mrb[2].mxu0 }
 0x17c   :  { %v10582_v30 = vadd.f32 %v802_v5, %v221_v46  ;;  %v804_v10 = vpop.f32.mrb[3].mxu0 }
 0x17d   :  { %v11583_v19 = vadd.f32 %v2129_v4, %v2125_v3  ;;  %v10583_v48 = vadd.f32 %v804_v10, %v223_v47 }
 0x17e   :  { %v2126_v34 = vmul.f32 %v10582_v30, %v87_v0 }
 0x17f   :  { %v809_v58 = vpop.f32.mrb[4].mxu0  ;;  %v2150_v61 = vsel %vm118_vm0, %v11583_v19, 0  ;;  %v2130_v25 = vmul.f32 %v10583_v48, %v91_v43 }
 0x180   :  { %v10584_v51 = vadd.f32 %v809_v58, %v232_v55  ;;  %v811_v18 = vpop.f32.mrb[5].mxu0  ;;  %v11587_v12 = vand.u32 4294901760, %v2150_v61 }
 0x181   :  { %v10585_v17 = vadd.f32 %v811_v18, %v234_v60  ;;  %v11589_v52 = vadd.f32 %v2130_v25, %v2126_v34 }
 0x182   :  { %v11592_v32 = vsub.f32 %v2150_v61, %v11587_v12  ;;  %v2127_v33 = vmul.f32 %v10584_v51, %v88_v49 }
 0x183   :  { %v816_v40 = vpop.f32.mrb[6].mxu0  ;;  %v2131_v41 = vmul.f32 %v10585_v17, %v92_v13 }
 0x184   :  { %v10586_v22 = vadd.f32 %v816_v40, %v243_v62  ;;  %v818_v24 = vpop.f32.mrb[7].mxu0  ;;  %v2244_v15 = vand.u32 4294901760, %v11592_v32 }
 0x185   :  { %v10587_v28 = vadd.f32 %v818_v24, %v245_v1  ;;  %v11595_v21 = vadd.f32 %v2131_v41, %v2127_v33 }
 0x186   :  { %v2245_v29 = vsub.f32 %v11592_v32, %v2244_v15  ;;  %v2128_v23 = vmul.f32 %v10586_v22, %v89_v16 }
 0x187   :  { %v2132_v37 = vmul.f32 %v10587_v28, %v93_v26  ;;  %v2156_v48 = vsel %vm118_vm0, %v11595_v21, 0 }
 0x188   :  { %v2246_v27 = vand.u32 4294901760, %v2245_v29  ;;  %v11637_v41 = vand.u32 4294901760, %v2156_v48 }
 0x189   :  { %v11600_v38 = vadd.f32 %v2132_v37, %v2128_v23 }
 0x18a   :  { %8968 = vmatprep.mubr.f32.mxu1 %v2246_v27 }
 0x18b   :  { %v2159_v25 = vsel %vm118_vm0, %v11600_v38, 0 }
 0x191   :  { %v1485_v42 = vpop.f32.mrb[8].mxu1 }
 0x192   :  { %v2137_v46 = vmul.f32 %v1485_v42, %v86_v6  ;;  %v1487_v47 = vpop.f32.mrb[9].mxu1  ;;  %v2153_v6 = vsel %vm118_vm0, %v11589_v52, 0  ;;  %v2263_v42 = vsub.f32 %v2156_v48, %v11637_v41 }
 0x193   :  { %v2141_v55 = vmul.f32 %v1487_v47, %v90_v44  ;;  %v11620_v34 = vand.u32 4294901760, %v2153_v6 }
 0x195   :  { %v11602_v60 = vadd.f32 %v2141_v55, %v2137_v46  ;;  %v1492_v62 = vpop.f32.mrb[10].mxu1  ;;  %v11642_v24 = vsub.f32 %v2153_v6, %v11620_v34 }
 0x196   :  { %v2138_v1 = vmul.f32 %v1492_v62, %v87_v0  ;;  %v1494_v7 = vpop.f32.mrb[11].mxu1 }
 0x197   :  { %v2162_v8 = vsel %vm118_vm0, %v11602_v60, 0  ;;  %v2142_v56 = vmul.f32 %v1494_v7, %v91_v43  ;;  %3465 = vrot.lane.b32.xlu0 %v11602_v60, %s11084_s10  ;;  %v2254_v55 = vand.u32 4294901760, %v11642_v24 }
 0x198   :  { %v2174_v57 = vand.u32 4294901760, %v2162_v8 }
 0x199   :  { %v11608_v3 = vadd.f32 %v2142_v56, %v2138_v1  ;;  %v1499_v4 = vpop.f32.mrb[12].mxu1 }
 0x19a   :  { %v2139_v44 = vmul.f32 %v1499_v4, %v88_v49  ;;  %v1501_v5 = vpop.f32.mrb[13].mxu1  ;;  %v11612_v30 = vsub.f32 %v2162_v8, %v2174_v57 }
 0x19b   :  { %v2165_v0 = vsel %vm118_vm0, %v11608_v3, 0  ;;  %v2143_v10 = vmul.f32 %v1501_v5, %v92_v13  ;;  %3467 = vrot.lane.b32.xlu0 %v11608_v3, %s11084_s10 }
 0x19c   :  { %v2177_v43 = vand.u32 4294901760, %v2165_v0  ;;  %v2285_v13 = vand.u32 4294901760, %v11612_v30 }
 0x19d   :  { %v11622_v58 = vadd.f32 %v2143_v10, %v2139_v44  ;;  %v1506_v61 = vpop.f32.mrb[14].mxu1  ;;  %v2255_v44 = vsub.f32 %v11642_v24, %v2254_v55 }
 0x19e   :  { %v11626_v49 = vpack.c.bf16 %v2177_v43, %v2174_v57  ;;  %v2140_v51 = vmul.f32 %v1506_v61, %v89_v16  ;;  %v1508_v18 = vpop.f32.mrb[15].mxu1  ;;  %v11629_v17 = vsub.f32 %v2165_v0, %v2177_v43  ;;  %v2286_v29 = vsub.f32 %v11612_v30, %v2285_v13 }
 0x19f   :  { %v2168_v33 = vsel %vm118_vm0, %v11622_v58, 0  ;;  %v2144_v40 = vmul.f32 %v1508_v18, %v93_v26  ;;  %3457 = vrot.lane.b32.xlu0 %v11583_v19, %s11084_s10  ;;  %3469 = vrot.lane.b32.xlu1 %v11622_v58, %s11084_s10  ;;  %v11647_v26 = vand.u32 4294901760, %v2159_v25  ;;  %v2264_v57 = vand.u32 4294901760, %v2263_v42 }
 0x1a0   :  { %v2180_v22 = vand.u32 4294901760, %v2168_v33  ;;  %10005 = vmatprep.subr.bf16.mxu1 %v11626_v49  ;;  %v2292_v16 = vand.u32 4294901760, %v11629_v17  ;;  %v2287_v7 = vand.u32 4294901760, %v2286_v29  ;;  %v2256_v61 = vand.u32 4294901760, %v2255_v44 }
 0x1a1   :  { %v11644_v28 = vadd.f32 %v2144_v40, %v2140_v51  ;;  %10007 = vmatpush3.bf16.xpose.msra.mxu1 %v11626_v49  ;;  %v2273_v62 = vsub.f32 %v2159_v25, %v11647_v26  ;;  %v2265_v43 = vsub.f32 %v2263_v42, %v2264_v57 }
 0x1a2   :  { %v2293_v23 = vsub.f32 %v11629_v17, %v2292_v16  ;;  %v2298_v37 = vsub.f32 %v2168_v33, %v2180_v22 }
 0x1a3   :  { %v2171_v27 = vsel %vm118_vm0, %v11644_v28, 0  ;;  %3461 = vrot.lane.b32.xlu0 %v11595_v21, %s11084_s10  ;;  %3471 = vrot.lane.b32.xlu1 %v11644_v28, %s11084_s10  ;;  %v2274_v10 = vand.u32 4294901760, %v2273_v62  ;;  %v2266_v18 = vand.u32 4294901760, %v2265_v43 }
 0x1a4   :  { %v2183_v46 = vand.u32 4294901760, %v2171_v27  ;;  %v2294_v47 = vand.u32 4294901760, %v2293_v23  ;;  %v2299_v8 = vand.u32 4294901760, %v2298_v37  ;;  %v10036_v23 = vpack.c.bf16 %v2292_v16, %v2285_v13 }
 0x1a5   :  { %v2275_v51 = vsub.f32 %v2273_v62, %v2274_v10 }
 0x1a6   :  { %v11664_v1 = vpack.c.bf16 %v2183_v46, %v2180_v22  ;;  %v2305_v56 = vsub.f32 %v2171_v27, %v2183_v46  ;;  %v10012_v4 = vpack.c.bf16 %v2294_v47, %v2287_v7  ;;  %v2300_v5 = vsub.f32 %v2298_v37, %v2299_v8 }
 0x1a7   :  { %3459 = vrot.lane.b32.xlu1 %v11589_v52, %s11084_s10  ;;  %v2276_v40 = vand.u32 4294901760, %v2275_v51  ;;  %v10020_v22 = vpack.c.bf16 %v11629_v17, %v11612_v30  ;;  %v112_v30 = vld [vmem:[%s12899_s1 + $0x70] sm:$0xff] }
 0x1a8   :  { %10009 = vmatprep.subr.bf16.mxu1 %v11664_v1  ;;  %v2306_v6 = vand.u32 4294901760, %v2305_v56  ;;  %v2301_v25 = vand.u32 4294901760, %v2300_v5  ;;  %v10024_v29 = vpack.c.bf16 %v2305_v56, %v2298_v37  ;;  %v1518_v17 = vand.u32 4294901760, %v112_v30 }
 0x1a9   :  { %10011 = vmatpush3.bf16.xpose.msra.mxu1 %v11664_v1 }
 0x1aa   :  { %10013 = vmatprep.subr.bf16.mxu1 %v10012_v4  ;;  %v2307_v0 = vsub.f32 %v2305_v56, %v2306_v6  ;;  %v10040_v37 = vpack.c.bf16 %v2306_v6, %v2299_v8  ;;  %v11718_v46 = vsub.f32 %v112_v30, %v1518_v17 }
 0x1ab   :  { %3463 = vrot.lane.b32.xlu1 %v11600_v38, %s11084_s10 }
 0x1ac   :  { %v2308_v48 = vand.u32 4294901760, %v2307_v0  ;;  %v1637_v7 = vand.u32 4294901760, %v11718_v46 }
 0x1ae   :  { %v10016_v33 = vpack.c.bf16 %v2308_v48, %v2301_v25 }
 0x1b0   :  { %8969 = vmatmul.mubr.f32.vlgmr.msra.gmra.mrb[16].mxu1 %v2256_v61 }
 0x1b1   :  { %8971 = vmatprep.mubr.f32.mxu1 %v2266_v18  ;;  %10015 = vmatpush3.bf16.xpose.msra.mxu1 %v10012_v4  ;;  %v1638_v4 = vsub.f32 %v11718_v46, %v1637_v7 }
 0x1b2   :  { %10017 = vmatprep.subr.bf16.mxu1 %v10016_v33 }
 0x1b3   :  { %v1639_v5 = vand.u32 4294901760, %v1638_v4 }
 0x1b4   :  { %8972 = vmatmul.mubr.f32.gmra.mrb[18].mxu1 %v2276_v40 }
 0x1b5   :  { %8982 = vmatprep.mubr.f32.mxu1 %v11587_v12 }
 0x1b9   :  { %10019 = vmatpush3.bf16.xpose.msra.mxu1 %v10016_v33 }
 0x1ba   :  { %10021 = vmatprep.subr.bf16.mxu1 %v10020_v22 }
 0x1c0   :  { %8983 = vmatmul.mubr.f32.vlgmr.msra.gmra.mrb[16].mxu1 %v11620_v34 }
 0x1c1   :  { %8985 = vmatprep.mubr.f32.mxu1 %v11637_v41  ;;  %10023 = vmatpush3.bf16.xpose.msra.mxu1 %v10020_v22 }
 0x1c2   :  { %10025 = vmatprep.subr.bf16.mxu1 %v10024_v29 }
 0x1c4   :  { %8986 = vmatmul.mubr.f32.gmra.mrb[18].mxu1 %v11647_v26 }
 0x1c5   :  { %8996 = vmatprep.mubr.f32.mxu1 %v11592_v32  ;;  %v102_v32 = vld [vmem:[%s12899_s1 + $0x20] sm:$0xff] }
 0x1c9   :  { %10027 = vmatpush3.bf16.xpose.msra.mxu1 %v10024_v29 }
 0x1ca   :  { %10029 = vmatprep.subr.bf16.mxu1 %v11626_v49 }
 0x1d0   :  { %8997 = vmatmul.mubr.f32.vlgmr.msra.gmra.mrb[16].mxu1 %v11642_v24 }
 0x1d1   :  { %8999 = vmatprep.mubr.f32.mxu1 %v2263_v42  ;;  %10031 = vmatpush3.bf16.xpose.msra.mxu1 %v11626_v49 }
 0x1d2   :  { %10033 = vmatprep.subr.bf16.mxu1 %v11664_v1 }
 0x1d4   :  { %9000 = vmatmul.mubr.f32.gmra.mrb[18].mxu1 %v2273_v62 }
 0x1d5   :  { %9010 = vmatprep.mubr.f32.mxu1 %v2244_v15  ;;  %v107_v15 = vld [vmem:[%s12899_s1 + $0x48] sm:$0xff] }
 0x1d6   :  { %v1515_v13 = vand.u32 4294901760, %v107_v15 }
 0x1d8   :  { %v11716_v42 = vsub.f32 %v107_v15, %v1515_v13 }
 0x1d9   :  { %10035 = vmatpush3.bf16.xpose.msra.mxu1 %v11664_v1 }
 0x1da   :  { %10037 = vmatprep.subr.bf16.mxu1 %v10036_v23 }
 0x1e0   :  { %9011 = vmatmul.mubr.f32.vlgmr.msra.gmra.mrb[16].mxu1 %v2254_v55 }
 0x1e1   :  { %9013 = vmatprep.mubr.f32.mxu1 %v2264_v57  ;;  %10039 = vmatpush3.bf16.xpose.msra.mxu1 %v10036_v23 }
 0x1e2   :  { %10041 = vmatprep.subr.bf16.mxu1 %v10040_v37 }
 0x1e4   :  { %9014 = vmatmul.mubr.f32.gmra.mrb[18].mxu1 %v2274_v10 }
 0x1e5   :  { %9024 = vmatprep.mubr.f32.mxu1 %v11587_v12 }
 0x1e9   :  { %10043 = vmatpush3.bf16.xpose.msra.mxu1 %v10040_v37 }
 0x1ea   :  { %10045 = vmatprep.subr.bf16.mxu1 %v11626_v49 }
 0x1f0   :  { %9025 = vmatmul.mubr.f32.vlgmr.msra.gmra.mrb[16].mxu1 %v11620_v34 }
 0x1f1   :  { %9027 = vmatprep.mubr.f32.mxu1 %v11637_v41  ;;  %10047 = vmatpush3.bf16.xpose.msra.mxu1 %v11626_v49  ;;  %v1512_v49 = vand.u32 4294901760, %v102_v32 }
 0x1f2   :  { %10049 = vmatprep.subr.bf16.mxu1 %v11664_v1 }
 0x1f3   :  { %v11712_v24 = vpack.c.bf16 %v1515_v13, %v1512_v49  ;;  %v11714_v27 = vsub.f32 %v102_v32, %v1512_v49 }
 0x1f4   :  { %9028 = vmatmul.mubr.f32.gmra.mrb[18].mxu1 %v11647_v26 }
 0x1f5   :  { %9038 = vmatprep.mubr.f32.mxu1 %v11587_v12  ;;  %v117_v12 = vld [vmem:[%s12899_s1 + $0x98] sm:$0xff]  ;;  %9957 = vmatprep.subr.bf16.mxu0 %v11712_v24  ;;  %v1623_v62 = vand.u32 4294901760, %v11714_v27  ;;  %s11085_s1 = smov 64  }
 0x1f6   :  { %v1521_v16 = vand.u32 4294901760, %v117_v12  ;;  %9959 = vmatpush3.bf16.msra.mxu0 %v11712_v24 }
 0x1f7   :  { %v1624_v56 = vsub.f32 %v11714_v27, %v1623_v62 }
 0x1f8   :  { %v11720_v47 = vpack.c.bf16 %v1521_v16, %v1518_v17  ;;  %v11722_v55 = vsub.f32 %v117_v12, %v1521_v16 }
 0x1f9   :  { %10051 = vmatpush3.bf16.xpose.msra.mxu1 %v11664_v1  ;;  %v1630_v1 = vand.u32 4294901760, %v11716_v42  ;;  %v1625_v6 = vand.u32 4294901760, %v1624_v56 }
 0x1fa   :  { %v1644_v8 = vand.u32 4294901760, %v11722_v55  ;;  %9961 = vmatprep.subr.bf16.mxu0 %v11720_v47 }
 0x1fb   :  { %v1631_v57 = vsub.f32 %v11716_v42, %v1630_v1  ;;  %9963 = vmatpush3.bf16.msra.mxu0 %v11720_v47 }
 0x1fd   :  { %v1632_v44 = vand.u32 4294901760, %v1631_v57 }
 0x1fe   :  { %8885 = vmatmul.mubr.f32.vlgmr.msra.gmra.mrb[8].mxu0 %v11364_v59  ;;  %v9976_v59 = vpack.c.bf16 %v11722_v55, %v11718_v46 }
 0x1ff   :  { %v9964_v10 = vpack.c.bf16 %v1632_v44, %v1625_v6  ;;  %8887 = vmatprep.mubr.f32.mxu0 %v11394_v36 }
 0x200   :  { %9039 = vmatmul.mubr.f32.vlgmr.msra.gmra.mrb[16].mxu1 %v11620_v34  ;;  %v1645_v34 = vsub.f32 %v11722_v55, %v1644_v8 }
 0x201   :  { %9041 = vmatprep.mubr.f32.mxu1 %v11637_v41  ;;  %9965 = vmatprep.subr.bf16.mxu0 %v9964_v10  ;;  %v9972_v41 = vpack.c.bf16 %v11716_v42, %v11714_v27 }
 0x202   :  { %v1646_v0 = vand.u32 4294901760, %v1645_v34  ;;  %9967 = vmatpush3.bf16.msra.mxu0 %v9964_v10 }
 0x203   :  { %8888 = vmatmul.mubr.f32.gmra.mrb[10].mxu0 %v11436_v11 }
 0x204   :  { %9042 = vmatmul.mubr.f32.gmra.mrb[18].mxu1 %v11647_v26  ;;  %v9968_v43 = vpack.c.bf16 %v1646_v0, %v1639_v5  ;;  %8898 = vmatprep.mubr.f32.mxu0 %v11265_v35 }
 0x206   :  { %9969 = vmatprep.subr.bf16.mxu0 %v9968_v43 }
 0x207   :  { %9971 = vmatpush3.bf16.msra.mxu0 %v9968_v43 }
 0x208   :  { %9973 = vmatprep.subr.bf16.mxu0 %v9972_v41 }
 0x209   :  { %v3466_v48 = vpop.permute.xlu0 %3465 }
 0x20a   :  { %v3481_v61 = vsel %vm118_vm0, %v3466_v48, 0  ;;  %8899 = vmatmul.mubr.f32.vlgmr.msra.gmra.mrb[8].mxu0 %v11309_v63 }
 0x20b   :  { %v3490_v25 = vand.u32 4294901760, %v3481_v61  ;;  %9975 = vmatpush3.bf16.msra.mxu0 %v9972_v41  ;;  %8901 = vmatprep.mubr.f32.mxu0 %v11346_v31 }
 0x20c   :  { %9977 = vmatprep.subr.bf16.mxu0 %v9976_v59 }
 0x20d   :  { %v11756_v26 = vsub.f32 %v3481_v61, %v3490_v25  ;;  %v3468_v36 = vpop.permute.xlu0 %3467 }
 0x20e   :  { %v3483_v51 = vsel %vm118_vm0, %v3468_v36, 0  ;;  %8902 = vmatmul.mubr.f32.gmra.mrb[10].mxu0 %v11382_v14 }
 0x20f   :  { %v3493_v18 = vand.u32 4294901760, %v3483_v51  ;;  %v3601_v11 = vand.u32 4294901760, %v11756_v26  ;;  %9979 = vmatpush3.bf16.msra.mxu0 %v9976_v59  ;;  %8912 = vmatprep.mubr.f32.mxu0 %v11277_v45 }
 0x210   :  { %9981 = vmatprep.subr.bf16.mxu0 %v11712_v24 }
 0x211   :  { %v11762_v33 = vpack.c.bf16 %v3493_v18, %v3490_v25  ;;  %v11764_v40 = vsub.f32 %v3483_v51, %v3493_v18  ;;  %v3458_v22 = vpop.permute.xlu0 %3457  ;;  %v3470_v29 = vpop.permute.xlu1 %3469  ;;  %v3602_v49 = vsub.f32 %v11756_v26, %v3601_v11 }
 0x212   :  { %v3473_v23 = vsel %vm118_vm0, %v3458_v22, 0  ;;  %v3485_v37 = vsel %vm118_vm0, %v3470_v29, 0  ;;  %8913 = vmatmul.mubr.f32.vlgmr.msra.gmra.mrb[8].mxu0 %v11320_v9 }
 0x213   :  { %v3608_v32 = vand.u32 4294901760, %v11764_v40  ;;  %v11770_v15 = vand.u32 4294901760, %v3473_v23  ;;  %v3496_v30 = vand.u32 4294901760, %v3485_v37  ;;  %10101 = vmatprep.subr.bf16.mxu1 %v11762_v33  ;;  %9983 = vmatpush3.bf16.msra.mxu0 %v11712_v24  ;;  %v3603_v43 = vand.u32 4294901760, %v3602_v49 }
 0x214   :  { %10103 = vmatpush3.bf16.xpose.msra.mxu1 %v11762_v33  ;;  %8915 = vmatprep.mubr.f32.mxu0 %v11358_v50  ;;  %v9988_v50 = vpack.c.bf16 %v1630_v1, %v1623_v62  ;;  %v9992_v1 = vpack.c.bf16 %v1644_v8, %v1637_v7 }
 0x215   :  { %v3609_v13 = vsub.f32 %v11764_v40, %v3608_v32  ;;  %v11782_v12 = vsub.f32 %v3473_v23, %v11770_v15  ;;  %v3462_v17 = vpop.permute.xlu0 %3461  ;;  %v3472_v16 = vpop.permute.xlu1 %3471  ;;  %v11789_v4 = vsub.f32 %v3485_v37, %v3496_v30  ;;  %9985 = vmatprep.subr.bf16.mxu0 %v11720_v47 }
 0x216   :  { %v3477_v56 = vsel %vm118_vm0, %v3462_v17, 0  ;;  %v3487_v57 = vsel %vm118_vm0, %v3472_v16, 0  ;;  %8916 = vmatmul.mubr.f32.gmra.mrb[10].mxu0 %v11397_v39  ;;  %v11913_v17 = vld [vmem:[#allocation8 + $0x18] sm:$0xff] }
 0x217   :  { %v3560_v45 = vand.u32 4294901760, %v11782_v12  ;;  %v11791_v34 = vand.u32 4294901760, %v3477_v56  ;;  %v3499_v6 = vand.u32 4294901760, %v3487_v57  ;;  %v3610_v44 = vand.u32 4294901760, %v3609_v13  ;;  %9987 = vmatpush3.bf16.msra.mxu0 %v11720_v47  ;;  %8926 = vmatprep.mubr.f32.mxu0 %v11297_v53 }
 0x218   :  { %v3615_v61 = vand.u32 4294901760, %v11789_v4  ;;  %9989 = vmatprep.subr.bf16.mxu0 %v9988_v50 }
 0x219   :  { %v11797_v5 = vsub.f32 %v3477_v56, %v11791_v34  ;;  %v11799_v0 = vpack.c.bf16 %v3499_v6, %v3496_v30  ;;  %v11801_v9 = vsub.f32 %v3487_v57, %v3499_v6  ;;  %v3460_v10 = vpop.permute.xlu1 %3459  ;;  %v3561_v48 = vsub.f32 %v11782_v12, %v3560_v45 }
 0x21a   :  { %v3475_v41 = vsel %vm118_vm0, %v3460_v10, 0  ;;  %v10108_v36 = vpack.c.bf16 %v3610_v44, %v3603_v43  ;;  %8927 = vmatmul.mubr.f32.vlgmr.msra.gmra.mrb[8].mxu0 %v11341_v20  ;;  %v3616_v53 = vsub.f32 %v11789_v4, %v3615_v61 }
 0x21b   :  { %v3622_v25 = vand.u32 4294901760, %v11801_v9  ;;  %v11814_v59 = vand.u32 4294901760, %v3475_v41  ;;  %10105 = vmatprep.subr.bf16.mxu1 %v11799_v0  ;;  %v3580_v51 = vand.u32 4294901760, %v11797_v5  ;;  %v3562_v39 = vand.u32 4294901760, %v3561_v48  ;;  %8929 = vmatprep.mubr.f32.mxu0 %v11367_v2 }
 0x21c   :  { %10107 = vmatpush3.bf16.xpose.msra.mxu1 %v11799_v0  ;;  %9991 = vmatpush3.bf16.msra.mxu0 %v9988_v50  ;;  %v3617_v37 = vand.u32 4294901760, %v3616_v53 }
 0x21d   :  { %v3623_v27 = vsub.f32 %v11801_v9, %v3622_v25  ;;  %v11825_v42 = vsub.f32 %v3475_v41, %v11814_v59  ;;  %v3464_v62 = vpop.permute.xlu1 %3463  ;;  %10109 = vmatprep.subr.bf16.mxu1 %v10108_v36  ;;  %9136 = vmatprep.mubr.f32.mxu1 %v3562_v39  ;;  %v3581_v46 = vsub.f32 %v11797_v5, %v3580_v51 }
 0x21e   :  { %v3479_v18 = vsel %vm118_vm0, %v3464_v62, 0  ;;  %9993 = vmatprep.subr.bf16.mxu0 %v9992_v1  ;;  %8930 = vmatmul.mubr.f32.gmra.mrb[10].mxu0 %v11416_v54  ;;  %v10116_v54 = vpack.c.bf16 %v11764_v40, %v11756_v26 }
 0x21f   :  { %v3570_v22 = vand.u32 4294901760, %v11825_v42  ;;  %v11837_v29 = vand.u32 4294901760, %v3479_v18  ;;  %v3624_v7 = vand.u32 4294901760, %v3623_v27  ;;  %8940 = vmatprep.mubr.f32.mxu0 %v11265_v35  ;;  %v3582_v30 = vand.u32 4294901760, %v3581_v46 }
 0x220   :  { %9995 = vmatpush3.bf16.msra.mxu0 %v9992_v1 }
 0x221   :  { %v3571_v55 = vsub.f32 %v11825_v42, %v3570_v22  ;;  %v3589_v20 = vsub.f32 %v3479_v18, %v11837_v29  ;;  %v10112_v2 = vpack.c.bf16 %v3624_v7, %v3617_v37  ;;  %9997 = vmatprep.subr.bf16.mxu0 %v11712_v24 }
 0x223   :  { %v3572_v8 = vand.u32 4294901760, %v3571_v55  ;;  %v3590_v23 = vand.u32 4294901760, %v3589_v20  ;;  %8941 = vmatmul.mubr.f32.vlgmr.msra.gmra.mrb[8].mxu0 %v11309_v63 }
 0x224   :  { %9999 = vmatpush3.bf16.msra.mxu0 %v11712_v24  ;;  %8943 = vmatprep.mubr.f32.mxu0 %v11346_v31  ;;  %v10120_v24 = vpack.c.bf16 %v11801_v9, %v11789_v4 }
 0x225   :  { %9137 = vmatmul.mubr.f32.vlgmr.msra.gmra.mrb[20].mxu1 %v3572_v8  ;;  %v3591_v49 = vsub.f32 %v3589_v20, %v3590_v23  ;;  %10001 = vmatprep.subr.bf16.mxu0 %v11720_v47 }
 0x226   :  { %10111 = vmatpush3.bf16.xpose.msra.mxu1 %v10108_v36  ;;  %9139 = vmatprep.mubr.f32.mxu1 %v3582_v30 }
 0x227   :  { %10113 = vmatprep.subr.bf16.mxu1 %v10112_v2  ;;  %v3592_v13 = vand.u32 4294901760, %v3591_v49  ;;  %8944 = vmatmul.mubr.f32.gmra.mrb[10].mxu0 %v11382_v14 }
 0x228   :  { %10003 = vmatpush3.bf16.msra.mxu0 %v11720_v47  ;;  %8954 = vmatprep.mubr.f32.mxu0 %v11265_v35  ;;  %v10132_v35 = vpack.c.bf16 %v3608_v32, %v3601_v11  ;;  %v11909_v32 = vld [vmem:[#allocation8 + $0x10] sm:$0xff] }
 0x229   :  { %9140 = vmatmul.mubr.f32.gmra.mrb[22].mxu1 %v3592_v13 }
 0x22a   :  { %9150 = vmatprep.mubr.f32.mxu1 %v11770_v15 }
 0x22b   :  { %8955 = vmatmul.mubr.f32.vlgmr.msra.gmra.mrb[8].mxu0 %v11309_v63  ;;  %v10136_v63 = vpack.c.bf16 %v3622_v25, %v3615_v61 }
 0x22c   :  { %8957 = vmatprep.mubr.f32.mxu0 %v11346_v31  ;;  %v11897_v31 = vld [vmem:[#allocation8 + $0x8] sm:$0xff] }
 0x22e   :  { %10115 = vmatpush3.bf16.xpose.msra.mxu1 %v10112_v2 }
 0x22f   :  { %10117 = vmatprep.subr.bf16.mxu1 %v10116_v54  ;;  %8958 = vmatmul.mubr.f32.gmra.mrb[10].mxu0 %v11382_v14  ;;  %v11899_v14 = vld [vmem:[#allocation8] sm:$0xff] }
 0x235   :  { %9151 = vmatmul.mubr.f32.vlgmr.msra.gmra.mrb[20].mxu1 %v11814_v59 }
 0x236   :  { %9153 = vmatprep.mubr.f32.mxu1 %v11791_v34  ;;  %10119 = vmatpush3.bf16.xpose.msra.mxu1 %v10116_v54 }
 0x237   :  { %10121 = vmatprep.subr.bf16.mxu1 %v10120_v24 }
 0x239   :  { %9154 = vmatmul.mubr.f32.gmra.mrb[22].mxu1 %v11837_v29 }
 0x23a   :  { %9164 = vmatprep.mubr.f32.mxu1 %v11782_v12 }
 0x23e   :  { %10123 = vmatpush3.bf16.xpose.msra.mxu1 %v10120_v24 }
 0x23f   :  { %10125 = vmatprep.subr.bf16.mxu1 %v11762_v33 }
 0x245   :  { %9165 = vmatmul.mubr.f32.vlgmr.msra.gmra.mrb[20].mxu1 %v11825_v42 }
 0x246   :  { %9167 = vmatprep.mubr.f32.mxu1 %v11797_v5  ;;  %10127 = vmatpush3.bf16.xpose.msra.mxu1 %v11762_v33 }
 0x247   :  { %10129 = vmatprep.subr.bf16.mxu1 %v11799_v0 }
 0x249   :  { %9168 = vmatmul.mubr.f32.gmra.mrb[22].mxu1 %v3589_v20 }
 0x24a   :  { %9178 = vmatprep.mubr.f32.mxu1 %v3560_v45 }
 0x24e   :  { %10131 = vmatpush3.bf16.xpose.msra.mxu1 %v11799_v0 }
 0x24f   :  { %10133 = vmatprep.subr.bf16.mxu1 %v10132_v35 }
 0x255   :  { %9179 = vmatmul.mubr.f32.vlgmr.msra.gmra.mrb[20].mxu1 %v3570_v22 }
 0x256   :  { %9181 = vmatprep.mubr.f32.mxu1 %v3580_v51  ;;  %10135 = vmatpush3.bf16.xpose.msra.mxu1 %v10132_v35 }
 0x257   :  { %10137 = vmatprep.subr.bf16.mxu1 %v10136_v63 }
 0x259   :  { %9182 = vmatmul.mubr.f32.gmra.mrb[22].mxu1 %v3590_v23 }
 0x25a   :  { %9192 = vmatprep.mubr.f32.mxu1 %v11770_v15 }
 0x25e   :  { %10139 = vmatpush3.bf16.xpose.msra.mxu1 %v10136_v63 }
 0x25f   :  { %10141 = vmatprep.subr.bf16.mxu1 %v11762_v33 }
 0x265   :  { %9193 = vmatmul.mubr.f32.vlgmr.msra.gmra.mrb[20].mxu1 %v11814_v59 }
 0x266   :  { %9195 = vmatprep.mubr.f32.mxu1 %v11791_v34  ;;  %10143 = vmatpush3.bf16.xpose.msra.mxu1 %v11762_v33 }
 0x267   :  { %10145 = vmatprep.subr.bf16.mxu1 %v11799_v0 }
 0x269   :  { %9196 = vmatmul.mubr.f32.gmra.mrb[22].mxu1 %v11837_v29 }
 0x26a   :  { %9206 = vmatprep.mubr.f32.mxu1 %v11770_v15 }
 0x26e   :  { %10147 = vmatpush3.bf16.xpose.msra.mxu1 %v11799_v0 }
 0x275   :  { %9207 = vmatmul.mubr.f32.vlgmr.msra.gmra.mrb[20].mxu1 %v11814_v59 }
 0x276   :  { %9209 = vmatprep.mubr.f32.mxu1 %v11791_v34 }
 0x279   :  { %9210 = vmatmul.mubr.f32.gmra.mrb[22].mxu1 %v11837_v29 }
 0x2d3   :  { %v9040_v47 = vpop.f32.mrb[16].mxu1 }
 0x2d4   :  { %v11902_v26 = vadd.f32 %v9040_v47, %v11897_v31  ;;  %v2765_v11 = vpop.f32.mrb[17].mxu1 }
 0x2d5   :  { %v11905_v33 = vadd.f32 %v2765_v11, %v11899_v14 }
 0x2d6   :  { %v2790_v40 = vsel %vm118_vm0, %v11902_v26, -inf }
 0x2d7   :  { %2791 = vmax.xlane.f32.xlu1 %v2790_v40  ;;  %v9043_v15 = vpop.f32.mrb[18].mxu1  ;;  %v2787_v12 = vsel %vm118_vm0, %v11905_v33, -inf }
 0x2d8   :  { %v2777_v16 = vpop.f32.mrb[19].mxu1  ;;  %2788 = vmax.xlane.f32.xlu0 %v2787_v12  ;;  %v11919_v57 = vadd.f32 %v9043_v15, %v11913_v17 }
 0x2d9   :  { %v11916_v56 = vadd.f32 %v2777_v16, %v11909_v32 }
 0x2da   :  { %v2796_v4 = vsel %vm118_vm0, %v11919_v57, -inf }
 0x2db   :  { %v2793_v45 = vsel %vm118_vm0, %v11916_v56, -inf }
 0x2dc   :  { %2794 = vmax.xlane.f32.xlu0 %v2793_v45 }
 0x2e0   :  { %2797 = vmax.xlane.f32.xlu0 %v2796_v4 }
 0x2fe   :  { %v11925_v34 = vpop.f32.mrb[8].mxu0 }
 0x2ff   :  { %v2847_v6 = vand.u32 4294901760, %v11925_v34  ;;  %v11928_v44 = vpop.f32.mrb[9].mxu0 }
 0x300   :  { %v2844_v5 = vand.u32 4294901760, %v11928_v44 }
 0x301   :  { %v2961_v0 = vsub.f32 %v11925_v34, %v2847_v6 }
 0x302   :  { %v11932_v9 = vpack.c.bf16 %v2847_v6, %v2844_v5  ;;  %v2954_v10 = vsub.f32 %v11928_v44, %v2844_v5  ;;  %v11935_v43 = vpop.f32.mrb[10].mxu0 }
 0x303   :  { %v2962_v41 = vand.u32 4294901760, %v2961_v0  ;;  %v2853_v48 = vand.u32 4294901760, %v11935_v43  ;;  %v11938_v50 = vpop.f32.mrb[11].mxu0 }
 0x304   :  { %10053 = vmatprep.subr.bf16.mxu0 %v11932_v9  ;;  %v2955_v61 = vand.u32 4294901760, %v2954_v10  ;;  %v2850_v25 = vand.u32 4294901760, %v11938_v50  ;;  %v11952_v18 = vpack.c.bf16 %v2961_v0, %v2954_v10 }
 0x305   :  { %10055 = vmatpush3.bf16.msra.mxu0 %v11932_v9  ;;  %v2963_v59 = vsub.f32 %v2961_v0, %v2962_v41  ;;  %v2975_v36 = vsub.f32 %v11935_v43, %v2853_v48 }
 0x306   :  { %v2956_v51 = vsub.f32 %v2954_v10, %v2955_v61  ;;  %v11944_v39 = vpack.c.bf16 %v2853_v48, %v2850_v25  ;;  %v2968_v27 = vsub.f32 %v11938_v50, %v2850_v25  ;;  %v11954_v29 = vpack.c.bf16 %v2962_v41, %v2955_v61 }
 0x307   :  { %v2964_v42 = vand.u32 4294901760, %v2963_v59  ;;  %v2976_v22 = vand.u32 4294901760, %v2975_v36 }
 0x308   :  { %v2957_v62 = vand.u32 4294901760, %v2956_v51  ;;  %10057 = vmatprep.subr.bf16.mxu0 %v11944_v39  ;;  %v2969_v53 = vand.u32 4294901760, %v2968_v27  ;;  %v11956_v20 = vpack.c.bf16 %v2975_v36, %v2968_v27 }
 0x309   :  { %10059 = vmatpush3.bf16.msra.mxu0 %v11944_v39  ;;  %v2977_v55 = vsub.f32 %v2975_v36, %v2976_v22 }
 0x30a   :  { %v11949_v1 = vpack.c.bf16 %v2964_v42, %v2957_v62  ;;  %v2970_v46 = vsub.f32 %v2968_v27, %v2969_v53  ;;  %v11958_v23 = vpack.c.bf16 %v2976_v22, %v2969_v53 }
 0x30b   :  { %v2978_v8 = vand.u32 4294901760, %v2977_v55 }
 0x30c   :  { %10061 = vmatprep.subr.bf16.mxu0 %v11949_v1  ;;  %v2971_v7 = vand.u32 4294901760, %v2970_v46 }
 0x30e   :  { %v11960_v37 = vpack.c.bf16 %v2978_v8, %v2971_v7 }
 0x348   :  { %v9208_v30 = vpop.f32.mrb[20].mxu1 }
 0x349   :  { %v10592_v2 = vadd.f32 %v9208_v30, %v11897_v31  ;;  %v4081_v49 = vpop.f32.mrb[21].mxu1 }
 0x34a   :  { %v10593_v13 = vadd.f32 %v4081_v49, %v11899_v14 }
 0x34b   :  { %v4106_v54 = vsel %vm118_vm0, %v10592_v2, -inf }
 0x34c   :  { %v9211_v24 = vpop.f32.mrb[22].mxu1  ;;  %4107 = vmax.xlane.f32.xlu0 %v4106_v54  ;;  %v4103_v35 = vsel %vm118_vm0, %v10593_v13, -inf }
 0x34d   :  { %v10594_v63 = vadd.f32 %v9211_v24, %v11913_v17  ;;  %v4093_v47 = vpop.f32.mrb[23].mxu1  ;;  %4104 = vmax.xlane.f32.xlu1 %v4103_v35 }
 0x34e   :  { %v11968_v11 = vadd.f32 %v4093_v47, %v11909_v32 }
 0x34f   :  { %v4112_v40 = vsel %vm118_vm0, %v10594_v63, -inf }
 0x350   :  { %4113 = vmax.xlane.f32.xlu0 %v4112_v40  ;;  %v4109_v15 = vsel %vm118_vm0, %v11968_v11, -inf }
 0x351   :  { %4110 = vmax.xlane.f32.xlu1 %v4109_v15 }
 0x364   :  { %v2792_v12 = vpop.xlane.xlu1 %2791 }
 0x365   :  { %v2800_v16 = vsub.f32 %v11902_v26, %v2792_v12  ;;  %v2789_v45 = vpop.xlane.xlu0 %2788 }
 0x366   :  { %v2799_v4 = vsub.f32 %v11905_v33, %v2789_v45 }
 0x367   :  { %v2805_v6 = vmul.f32 1.442695, %v2800_v16 }
 0x368   :  { %v2803_v5 = vmul.f32 1.442695, %v2799_v4 }
 0x369   :  { %10891 = vpow2.f32 %v2805_v6  ;;  %v2795_v0 = vpop.xlane.xlu0 %2794 }
 0x36a   :  { %10893 = vpow2.f32 %v2803_v5 }
 0x36d   :  { %v2798_v10 = vpop.xlane.xlu0 %2797 }
 0x36e   :  { %v2802_v41 = vsub.f32 %v11919_v57, %v2798_v10  ;;  %v2801_v57 = vsub.f32 %v11916_v56, %v2795_v0 }
 0x370   :  { %v2809_v48 = vmul.f32 1.442695, %v2802_v41  ;;  %v2807_v51 = vmul.f32 1.442695, %v2801_v57 }
 0x372   :  { %10895 = vpow2.f32 %v2809_v48 }
 0x373   :  { %v10892_v61 = vpop.eup %10891  ;;  %10897 = vpow2.f32 %v2807_v51 }
 0x374   :  { %v10894_v25 = vpop.eup %10893  ;;  %v2814_v59 = vsel %vm118_vm0, %v10892_v61, 0.0 }
 0x375   :  { %2815 = vadd.xlane.f32.xlu0 %v2814_v59  ;;  %v2811_v26 = vsel %vm118_vm0, %v10894_v25, 0.0 }
 0x376   :  { %2812 = vadd.xlane.f32.xlu1 %v2811_v26 }
 0x37c   :  { %v11978_v36 = vpop.eup %10895 }
 0x37d   :  { %v2820_v33 = vsel %vm118_vm0, %v11978_v36, 0.0  ;;  %v11985_v27 = vpop.eup %10897 }
 0x37e   :  { %2821 = vadd.xlane.f32.xlu0 %v2820_v33  ;;  %v2817_v42 = vsel %vm118_vm0, %v11985_v27, 0.0 }
 0x387   :  { %4151 = vrot.lane.b32.xlu1 %v11928_v44, %s11084_s10 }
 0x3ab   :  { %2818 = vadd.xlane.f32.xlu1 %v2817_v42 }
 0x3d9   :  { %v4108_v62 = vpop.xlane.xlu0 %4107 }
 0x3da   :  { %v4116_v53 = vsub.f32 %v10592_v2, %v4108_v62  ;;  %v4105_v22 = vpop.xlane.xlu1 %4104 }
 0x3db   :  { %v4115_v46 = vsub.f32 %v10593_v13, %v4105_v22 }
 0x3dc   :  { %v4121_v55 = vmul.f32 1.442695, %v4116_v53 }
 0x3dd   :  { %v4119_v7 = vmul.f32 1.442695, %v4115_v46  ;;  %v4114_v8 = vpop.xlane.xlu0 %4113 }
 0x3de   :  { %10899 = vpow2.f32 %v4121_v55  ;;  %v4118_v30 = vsub.f32 %v10594_v63, %v4114_v8  ;;  %v4111_v63 = vpop.xlane.xlu1 %4110 }
 0x3df   :  { %10901 = vpow2.f32 %v4119_v7  ;;  %v4117_v15 = vsub.f32 %v11968_v11, %v4111_v63 }
 0x3e0   :  { %v4125_v49 = vmul.f32 1.442695, %v4118_v30 }
 0x3e1   :  { %v4123_v45 = vmul.f32 1.442695, %v4117_v15 }
 0x3e2   :  { %10903 = vpow2.f32 %v4125_v49 }
 0x3e8   :  { %v11989_v56 = vpop.eup %10899 }
 0x3e9   :  { %v11991_v54 = vpop.eup %10901  ;;  %v4130_v24 = vsel %vm118_vm0, %v11989_v56, 0.0 }
 0x3ea   :  { %4131 = vadd.xlane.f32.xlu0 %v4130_v24  ;;  %v4127_v2 = vsel %vm118_vm0, %v11991_v54, 0.0 }
 0x3eb   :  { %4128 = vadd.xlane.f32.xlu1 %v4127_v2 }
 0x3ec   :  { %v11997_v13 = vpop.eup %10903 }
 0x3ed   :  { %v4136_v35 = vsel %vm118_vm0, %v11997_v13, 0.0 }
 0x3ee   :  { %4137 = vadd.xlane.f32.xlu0 %v4136_v35 }
 0x3fc   :  { %4155 = vrot.lane.b32.xlu1 %v11938_v50, %s11084_s10 }
 0x402   :  { %v2816_v47 = vpop.xlane.xlu0 %2815 }
 0x403   :  { %10905 = vrcp.f32 %v2816_v47  ;;  %v2813_v40 = vpop.xlane.xlu1 %2812 }
 0x404   :  { %10907 = vrcp.f32 %v2813_v40  ;;  %4153 = vrot.lane.b32.xlu0 %v11925_v34, %s11084_s10 }
 0x405   :  { %10909 = vpow2.f32 %v4123_v45 }
 0x407   :  { %v12036_v53 = vpop.permute.xlu1 %4151 }
 0x408   :  { %4797 = vrot.lane.b32.xlu0 %v11602_v60, %s11085_s1 }
 0x40b   :  { %v2822_v62 = vpop.xlane.xlu0 %2821 }
 0x40c   :  { %4801 = vrot.lane.b32.xlu0 %v11622_v58, %s11085_s1  ;;  %10911 = vrcp.f32 %v2822_v62 }
 0x40d   :  { %v10906_v12 = vpop.eup %10905 }
 0x40e   :  { %v10908_v16 = vpop.eup %10907  ;;  %v2828_v4 = vmul.f32 %v10906_v12, %v10892_v61 }
 0x40f   :  { %v2827_v6 = vmul.f32 %v10908_v16, %v10894_v25  ;;  %v12026_v51 = vpop.eup %10909 }
 0x410   :  { %v2835_v5 = vsel %vm118_vm0, %v2828_v4, 0  ;;  %4789 = vrot.lane.b32.xlu0 %v11583_v19, %s11085_s1  ;;  %v4133_v42 = vsel %vm118_vm0, %v12026_v51, 0.0 }
 0x411   :  { %v12013_v0 = vand.u32 4294901760, %v2835_v5  ;;  %v2832_v10 = vsel %vm118_vm0, %v2827_v6, 0 }
 0x412   :  { %v12016_v41 = vand.u32 4294901760, %v2832_v10 }
 0x413   :  { %v12019_v11 = vsub.f32 %v2835_v5, %v12013_v0 }
 0x414   :  { %4793 = vrot.lane.b32.xlu0 %v11595_v21, %s11085_s1  ;;  %v2913_v48 = vsub.f32 %v2832_v10, %v12016_v41 }
 0x415   :  { %v2924_v61 = vand.u32 4294901760, %v12019_v11 }
 0x416   :  { %v2914_v25 = vand.u32 4294901760, %v2913_v48 }
 0x417   :  { %v2925_v59 = vsub.f32 %v12019_v11, %v2924_v61 }
 0x418   :  { %v2915_v26 = vsub.f32 %v2913_v48, %v2914_v25 }
 0x419   :  { %v2926_v57 = vand.u32 4294901760, %v2925_v59 }
 0x41a   :  { %v2916_v33 = vand.u32 4294901760, %v2915_v26 }
 0x41c   :  { %9052 = vmatprep.mubr.f32.mxu0 %v2916_v33 }
 0x41d   :  { %9053 = vmatmul.mubr.f32.vlgmr.msra.gmra.mrb[12].mxu0 %v2926_v57 }
 0x41e   :  { %10063 = vmatpush3.bf16.msra.mxu0 %v11949_v1  ;;  %v10912_v1 = vpop.eup %10911 }
 0x41f   :  { %10065 = vmatprep.subr.bf16.mxu0 %v11960_v37  ;;  %v2830_v46 = vmul.f32 %v10912_v1, %v11978_v36 }
 0x420   :  { %4134 = vadd.xlane.f32.xlu1 %v4133_v42 }
 0x422   :  { %10067 = vmatpush3.bf16.msra.mxu0 %v11960_v37  ;;  %v2841_v37 = vsel %vm118_vm0, %v2830_v46, 0 }
 0x423   :  { %10069 = vmatprep.subr.bf16.mxu0 %v11952_v18  ;;  %v2942_v55 = vand.u32 4294901760, %v2841_v37 }
 0x425   :  { %v2943_v30 = vsub.f32 %v2841_v37, %v2942_v55 }
 0x427   :  { %v2944_v24 = vand.u32 4294901760, %v2943_v30 }
 0x429   :  { %v2945_v63 = vsub.f32 %v2943_v30, %v2944_v24 }
 0x42b   :  { %v2946_v15 = vand.u32 4294901760, %v2945_v63 }
 0x431   :  { %4157 = vrot.lane.b32.xlu1 %v11935_v43, %s11084_s10 }
 0x435   :  { %4799 = vrot.lane.b32.xlu1 %v11608_v3, %s11085_s1 }
 0x438   :  { %v2819_v22 = vpop.xlane.xlu1 %2818 }
 0x439   :  { %4803 = vrot.lane.b32.xlu1 %v11644_v28, %s11085_s1  ;;  %10913 = vrcp.f32 %v2819_v22 }
 0x43d   :  { %4791 = vrot.lane.b32.xlu1 %v11589_v52, %s11085_s1 }
 0x441   :  { %4795 = vrot.lane.b32.xlu1 %v11600_v38, %s11085_s1 }
 0x443   :  { %v10914_v7 = vpop.eup %10913 }
 0x444   :  { %v2829_v8 = vmul.f32 %v10914_v7, %v11985_v27  ;;  %v4176_v27 = vand.u32 4294901760, %v12036_v53 }
 0x446   :  { %v2838_v49 = vsel %vm118_vm0, %v2829_v8, 0 }
 0x447   :  { %v2932_v36 = vand.u32 4294901760, %v2838_v49 }
 0x449   :  { %v2933_v2 = vsub.f32 %v2838_v49, %v2932_v36 }
 0x44b   :  { %v2934_v35 = vand.u32 4294901760, %v2933_v2 }
 0x44d   :  { %v2935_v47 = vsub.f32 %v2933_v2, %v2934_v35 }
 0x44f   :  { %v2936_v40 = vand.u32 4294901760, %v2935_v47 }
 0x451   :  { %9055 = vmatprep.mubr.f32.mxu0 %v2936_v40 }
 0x452   :  { %9056 = vmatmul.mubr.f32.gmra.mrb[14].mxu0 %v2946_v15 }
 0x453   :  { %9066 = vmatprep.mubr.f32.mxu0 %v12016_v41 }
 0x456   :  { %9067 = vmatmul.mubr.f32.vlgmr.msra.gmra.mrb[12].mxu0 %v12013_v0 }
 0x457   :  { %10071 = vmatpush3.bf16.msra.mxu0 %v11952_v18  ;;  %9069 = vmatprep.mubr.f32.mxu0 %v2932_v36 }
 0x458   :  { %10073 = vmatprep.subr.bf16.mxu0 %v11956_v20 }
 0x45a   :  { %9070 = vmatmul.mubr.f32.gmra.mrb[14].mxu0 %v2942_v55 }
 0x45b   :  { %10075 = vmatpush3.bf16.msra.mxu0 %v11956_v20  ;;  %9080 = vmatprep.mubr.f32.mxu0 %v2913_v48 }
 0x45c   :  { %10077 = vmatprep.subr.bf16.mxu0 %v11932_v9 }
 0x45e   :  { %9081 = vmatmul.mubr.f32.vlgmr.msra.gmra.mrb[12].mxu0 %v12019_v11 }
 0x45f   :  { %10079 = vmatpush3.bf16.msra.mxu0 %v11932_v9  ;;  %9083 = vmatprep.mubr.f32.mxu0 %v2933_v2 }
 0x460   :  { %10081 = vmatprep.subr.bf16.mxu0 %v11944_v39 }
 0x462   :  { %9084 = vmatmul.mubr.f32.gmra.mrb[14].mxu0 %v2943_v30 }
 0x463   :  { %10083 = vmatpush3.bf16.msra.mxu0 %v11944_v39  ;;  %9094 = vmatprep.mubr.f32.mxu0 %v2914_v25  ;;  %v12093_v25 = vsub.f32 %v12036_v53, %v4176_v27 }
 0x464   :  { %10085 = vmatprep.subr.bf16.mxu0 %v11954_v29 }
 0x465   :  { %v4287_v42 = vand.u32 4294901760, %v12093_v25 }
 0x466   :  { %9095 = vmatmul.mubr.f32.vlgmr.msra.gmra.mrb[12].mxu0 %v2924_v61 }
 0x467   :  { %10087 = vmatpush3.bf16.msra.mxu0 %v11954_v29  ;;  %9097 = vmatprep.mubr.f32.mxu0 %v2934_v35  ;;  %v4288_v46 = vsub.f32 %v12093_v25, %v4287_v42 }
 0x468   :  { %10089 = vmatprep.subr.bf16.mxu0 %v11958_v23 }
 0x46a   :  { %9098 = vmatmul.mubr.f32.gmra.mrb[14].mxu0 %v2944_v24  ;;  %v4289_v24 = vand.u32 4294901760, %v4288_v46 }
 0x46b   :  { %10091 = vmatpush3.bf16.msra.mxu0 %v11958_v23  ;;  %9108 = vmatprep.mubr.f32.mxu0 %v12016_v41 }
 0x46c   :  { %10093 = vmatprep.subr.bf16.mxu0 %v11932_v9 }
 0x46e   :  { %9109 = vmatmul.mubr.f32.vlgmr.msra.gmra.mrb[12].mxu0 %v12013_v0 }
 0x46f   :  { %10095 = vmatpush3.bf16.msra.mxu0 %v11932_v9  ;;  %9111 = vmatprep.mubr.f32.mxu0 %v2932_v36 }
 0x470   :  { %10097 = vmatprep.subr.bf16.mxu0 %v11944_v39 }
 0x472   :  { %9112 = vmatmul.mubr.f32.gmra.mrb[14].mxu0 %v2942_v55 }
 0x473   :  { %10099 = vmatpush3.bf16.msra.mxu0 %v11944_v39  ;;  %9122 = vmatprep.mubr.f32.mxu0 %v12016_v41 }
 0x476   :  { %9123 = vmatmul.mubr.f32.vlgmr.msra.gmra.mrb[12].mxu0 %v12013_v0 }
 0x477   :  { %v4132_v18 = vpop.xlane.xlu0 %4131  ;;  %9125 = vmatprep.mubr.f32.mxu0 %v2932_v36 }
 0x478   :  { %v4129_v29 = vpop.xlane.xlu1 %4128 }
 0x479   :  { %10915 = vrcp.f32 %v4129_v29 }
 0x47a   :  { %9126 = vmatmul.mubr.f32.gmra.mrb[14].mxu0 %v2942_v55  ;;  %10917 = vrcp.f32 %v4132_v18 }
 0x47b   :  { %v4138_v20 = vpop.xlane.xlu0 %4137 }
 0x47c   :  { %10919 = vrcp.f32 %v4138_v20  ;;  %v4156_v61 = vpop.permute.xlu1 %4155 }
 0x47d   :  { %v4182_v26 = vand.u32 4294901760, %v4156_v61 }
 0x47f   :  { %v4154_v23 = vpop.permute.xlu0 %4153  ;;  %v12103_v22 = vsub.f32 %v4156_v61, %v4182_v26 }
 0x480   :  { %v4179_v9 = vand.u32 4294901760, %v4154_v23 }
 0x481   :  { %v4301_v7 = vand.u32 4294901760, %v12103_v22 }
 0x482   :  { %v12073_v12 = vpack.c.bf16 %v4179_v9, %v4176_v27  ;;  %v12090_v48 = vsub.f32 %v4154_v23, %v4179_v9 }
 0x483   :  { %v10916_v16 = vpop.eup %10915  ;;  %v4302_v63 = vsub.f32 %v12103_v22, %v4301_v7 }
 0x484   :  { %v4143_v45 = vmul.f32 %v10916_v16, %v11991_v54  ;;  %10149 = vmatprep.subr.bf16.mxu0 %v12073_v12  ;;  %v10918_v54 = vpop.eup %10917  ;;  %v4294_v33 = vand.u32 4294901760, %v12090_v48 }
 0x485   :  { %10151 = vmatpush3.bf16.msra.mxu0 %v12073_v12  ;;  %v4144_v41 = vmul.f32 %v10918_v54, %v11989_v56  ;;  %v4303_v27 = vand.u32 4294901760, %v4302_v63 }
 0x486   :  { %v4164_v39 = vsel %vm118_vm0, %v4143_v45, 0  ;;  %v10920_v57 = vpop.eup %10919  ;;  %v4295_v53 = vsub.f32 %v12090_v48, %v4294_v33 }
 0x487   :  { %v12079_v4 = vand.u32 4294901760, %v4164_v39  ;;  %v4167_v11 = vsel %vm118_vm0, %v4144_v41, 0  ;;  %v4146_v1 = vmul.f32 %v10920_v57, %v11997_v13 }
 0x488   :  { %v12095_v59 = vand.u32 4294901760, %v4167_v11  ;;  %v4296_v30 = vand.u32 4294901760, %v4295_v53  ;;  %v10180_v53 = vpack.c.bf16 %v4294_v33, %v4287_v42 }
 0x489   :  { %v12082_v6 = vsub.f32 %v4164_v39, %v12079_v4  ;;  %v4173_v13 = vsel %vm118_vm0, %v4146_v1, 0 }
 0x48a   :  { %v12100_v62 = vsub.f32 %v4167_v11, %v12095_v59  ;;  %v12119_v35 = vand.u32 4294901760, %v4173_v13  ;;  %v10156_v40 = vpack.c.bf16 %v4296_v30, %v4289_v24 }
 0x48b   :  { %v4246_v5 = vand.u32 4294901760, %v12082_v6 }
 0x48c   :  { %v4256_v37 = vand.u32 4294901760, %v12100_v62  ;;  %v4275_v23 = vsub.f32 %v4173_v13, %v12119_v35 }
 0x48d   :  { %v4247_v0 = vsub.f32 %v12082_v6, %v4246_v5 }
 0x48e   :  { %v4257_v2 = vsub.f32 %v12100_v62, %v4256_v37 }
 0x48f   :  { %v4248_v10 = vand.u32 4294901760, %v4247_v0  ;;  %v4276_v0 = vand.u32 4294901760, %v4275_v23 }
 0x490   :  { %v4258_v29 = vand.u32 4294901760, %v4257_v2 }
 0x491   :  { %9220 = vmatprep.mubr.f32.mxu0 %v4248_v10  ;;  %v10164_v10 = vpack.c.bf16 %v12090_v48, %v12093_v25  ;;  %v4277_v41 = vsub.f32 %v4275_v23, %v4276_v0 }
 0x4ad   :  { %v4135_v56 = vpop.xlane.xlu1 %4134 }
 0x4ae   :  { %10921 = vrcp.f32 %v4135_v56  ;;  %v4798_v56 = vpop.permute.xlu0 %4797 }
 0x4b1   :  { %v4158_v55 = vpop.permute.xlu1 %4157 }
 0x4b2   :  { %v4185_v8 = vand.u32 4294901760, %v4158_v55  ;;  %v4802_v1 = vpop.permute.xlu0 %4801 }
 0x4b3   :  { %v4817_v63 = vsel %vm118_vm0, %v4802_v1, 0 }
 0x4b4   :  { %v12114_v49 = vpack.c.bf16 %v4185_v8, %v4182_v26  ;;  %v4307_v36 = vsub.f32 %v4158_v55, %v4185_v8  ;;  %v4278_v26 = vand.u32 4294901760, %v4277_v41 }
 0x4b5   :  { %v4800_v55 = vpop.permute.xlu1 %4799 }
 0x4b6   :  { %v4308_v47 = vand.u32 4294901760, %v4307_v36  ;;  %10153 = vmatprep.subr.bf16.mxu0 %v12114_v49  ;;  %v10168_v57 = vpack.c.bf16 %v4307_v36, %v12103_v22  ;;  %v4790_v46 = vpop.permute.xlu0 %4789  ;;  %v4815_v25 = vsel %vm118_vm0, %v4800_v55, 0 }
 0x4b7   :  { %10155 = vmatpush3.bf16.msra.mxu0 %v12114_v49  ;;  %v4805_v8 = vsel %vm118_vm0, %v4790_v46, 0  ;;  %v4825_v42 = vand.u32 4294901760, %v4815_v25 }
 0x4b8   :  { %v10922_v15 = vpop.eup %10921  ;;  %v4309_v18 = vsub.f32 %v4307_v36, %v4308_v47  ;;  %10157 = vmatprep.subr.bf16.mxu0 %v10156_v40  ;;  %v10184_v30 = vpack.c.bf16 %v4308_v47, %v4301_v7  ;;  %v12156_v48 = vand.u32 4294901760, %v4805_v8 }
 0x4b9   :  { %v4145_v20 = vmul.f32 %v10922_v15, %v12026_v51  ;;  %v12173_v13 = vsub.f32 %v4815_v25, %v4825_v42 }
 0x4ba   :  { %9221 = vmatmul.mubr.f32.vlgmr.msra.gmra.mrb[16].mxu0 %v4258_v29  ;;  %v4310_v9 = vand.u32 4294901760, %v4309_v18  ;;  %v12163_v33 = vsub.f32 %v4805_v8, %v12156_v48  ;;  %v4794_v36 = vpop.permute.xlu0 %4793  ;;  %v4828_v29 = vand.u32 4294901760, %v4817_v63 }
 0x4bb   :  { %10159 = vmatpush3.bf16.msra.mxu0 %v10156_v40  ;;  %v4170_v16 = vsel %vm118_vm0, %v4145_v20, 0 }
 0x4bc   :  { %v10160_v45 = vpack.c.bf16 %v4310_v9, %v4303_v27  ;;  %v12129_v39 = vand.u32 4294901760, %v4170_v16  ;;  %v4892_v22 = vand.u32 4294901760, %v12163_v33 }
 0x4be   :  { %10161 = vmatprep.subr.bf16.mxu0 %v10160_v45  ;;  %v4265_v54 = vsub.f32 %v4170_v16, %v12129_v39  ;;  %v4893_v2 = vsub.f32 %v12163_v33, %v4892_v22 }
 0x4bf   :  { %10163 = vmatpush3.bf16.msra.mxu0 %v10160_v45 }
 0x4c0   :  { %10165 = vmatprep.subr.bf16.mxu0 %v10164_v10  ;;  %v4266_v51 = vand.u32 4294901760, %v4265_v54 }
 0x4c2   :  { %v4267_v11 = vsub.f32 %v4265_v54, %v4266_v51 }
 0x4c4   :  { %v4268_v61 = vand.u32 4294901760, %v4267_v11 }
 0x4c6   :  { %9223 = vmatprep.mubr.f32.mxu0 %v4268_v61 }
 0x4c7   :  { %9224 = vmatmul.mubr.f32.gmra.mrb[18].mxu0 %v4278_v26 }
 0x4c8   :  { %9234 = vmatprep.mubr.f32.mxu0 %v12079_v4 }
 0x4cb   :  { %9235 = vmatmul.mubr.f32.vlgmr.msra.gmra.mrb[16].mxu0 %v12095_v59 }
 0x4cc   :  { %10167 = vmatpush3.bf16.msra.mxu0 %v10164_v10  ;;  %9237 = vmatprep.mubr.f32.mxu0 %v12129_v39 }
 0x4cd   :  { %10169 = vmatprep.subr.bf16.mxu0 %v10168_v57 }
 0x4cf   :  { %9238 = vmatmul.mubr.f32.gmra.mrb[18].mxu0 %v12119_v35 }
 0x4d0   :  { %10171 = vmatpush3.bf16.msra.mxu0 %v10168_v57  ;;  %9248 = vmatprep.mubr.f32.mxu0 %v12082_v6  ;;  %v4804_v6 = vpop.permute.xlu1 %4803 }
 0x4d1   :  { %10173 = vmatprep.subr.bf16.mxu0 %v12073_v12 }
 0x4d3   :  { %9249 = vmatmul.mubr.f32.vlgmr.msra.gmra.mrb[16].mxu0 %v12100_v62 }
 0x4d4   :  { %10175 = vmatpush3.bf16.msra.mxu0 %v12073_v12  ;;  %9251 = vmatprep.mubr.f32.mxu0 %v4265_v54 }
 0x4d5   :  { %10177 = vmatprep.subr.bf16.mxu0 %v12114_v49 }
 0x4d7   :  { %9252 = vmatmul.mubr.f32.gmra.mrb[18].mxu0 %v4275_v23  ;;  %v4894_v23 = vand.u32 4294901760, %v4893_v2 }
 0x4d8   :  { %10179 = vmatpush3.bf16.msra.mxu0 %v12114_v49  ;;  %9262 = vmatprep.mubr.f32.mxu0 %v4246_v5  ;;  %v4813_v5 = vsel %vm118_vm0, %v4798_v56, 0 }
 0x4d9   :  { %10181 = vmatprep.subr.bf16.mxu0 %v10180_v53  ;;  %v4822_v62 = vand.u32 4294901760, %v4813_v5 }
 0x4db   :  { %9263 = vmatmul.mubr.f32.vlgmr.msra.gmra.mrb[16].mxu0 %v4256_v37  ;;  %v4792_v37 = vpop.permute.xlu1 %4791  ;;  %v12170_v7 = vpack.c.bf16 %v4825_v42, %v4822_v62  ;;  %v12179_v24 = vsub.f32 %v4813_v5, %v4822_v62 }
 0x4dc   :  { %10183 = vmatpush3.bf16.msra.mxu0 %v10180_v53  ;;  %9265 = vmatprep.mubr.f32.mxu0 %v4266_v51  ;;  %v4807_v47 = vsel %vm118_vm0, %v4792_v37, 0 }
 0x4dd   :  { %10185 = vmatprep.subr.bf16.mxu0 %v10184_v30  ;;  %v4933_v18 = vand.u32 4294901760, %v12179_v24  ;;  %v12191_v20 = vand.u32 4294901760, %v4807_v47 }
 0x4df   :  { %9266 = vmatmul.mubr.f32.gmra.mrb[18].mxu0 %v4276_v0  ;;  %v4796_v15 = vpop.permute.xlu1 %4795  ;;  %v4946_v0 = vsub.f32 %v4817_v63, %v4828_v29  ;;  %v4901_v10 = vsub.f32 %v4807_v47, %v12191_v20 }
 0x4e0   :  { %10187 = vmatpush3.bf16.msra.mxu0 %v10184_v30  ;;  %9276 = vmatprep.mubr.f32.mxu0 %v12079_v4  ;;  %v4811_v9 = vsel %vm118_vm0, %v4796_v15, 0 }
 0x4e1   :  { %10189 = vmatprep.subr.bf16.mxu0 %v12073_v12  ;;  %v12207_v54 = vand.u32 4294901760, %v4811_v9  ;;  %v4947_v11 = vand.u32 4294901760, %v4946_v0  ;;  %v4902_v61 = vand.u32 4294901760, %v4901_v10 }
 0x4e3   :  { %9277 = vmatmul.mubr.f32.vlgmr.msra.gmra.mrb[16].mxu0 %v12095_v59  ;;  %v4921_v26 = vsub.f32 %v4811_v9, %v12207_v54  ;;  %v4948_v46 = vsub.f32 %v4946_v0, %v4947_v11  ;;  %v4903_v55 = vsub.f32 %v4901_v10, %v4902_v61 }
 0x4e4   :  { %10191 = vmatpush3.bf16.msra.mxu0 %v12073_v12  ;;  %9279 = vmatprep.mubr.f32.mxu0 %v12129_v39  ;;  %v4819_v12 = vsel %vm118_vm0, %v4804_v6, 0 }
 0x4e5   :  { %10193 = vmatprep.subr.bf16.mxu0 %v12114_v49  ;;  %v4831_v40 = vand.u32 4294901760, %v4819_v12  ;;  %v4922_v8 = vand.u32 4294901760, %v4921_v26  ;;  %v4904_v6 = vand.u32 4294901760, %v4903_v55  ;;  %v4949_v5 = vand.u32 4294901760, %v4948_v46 }
 0x4e7   :  { %9280 = vmatmul.mubr.f32.gmra.mrb[18].mxu0 %v12119_v35  ;;  %v12200_v16 = vpack.c.bf16 %v4831_v40, %v4828_v29  ;;  %v4953_v45 = vsub.f32 %v4819_v12, %v4831_v40  ;;  %v4923_v42 = vsub.f32 %v4921_v26, %v4922_v8  ;;  %v10212_v12 = vpack.c.bf16 %v12173_v13, %v12179_v24 }
 0x4e8   :  { %10195 = vmatpush3.bf16.msra.mxu0 %v12114_v49  ;;  %9290 = vmatprep.mubr.f32.mxu0 %v12079_v4  ;;  %v4809_v49 = vsel %vm118_vm0, %v4794_v36, 0  ;;  %v4940_v4 = vand.u32 4294901760, %v12173_v13 }
 0x4e9   :  { %10197 = vmatprep.subr.bf16.mxu0 %v12170_v7  ;;  %v12193_v27 = vand.u32 4294901760, %v4809_v49  ;;  %v4954_v51 = vand.u32 4294901760, %v4953_v45  ;;  %v4924_v36 = vand.u32 4294901760, %v4923_v42  ;;  %v10216_v2 = vpack.c.bf16 %v4953_v45, %v4946_v0 }
 0x4ea   :  { %v10228_v63 = vpack.c.bf16 %v4940_v4, %v4933_v18 }
 0x4eb   :  { %9291 = vmatmul.mubr.f32.vlgmr.msra.gmra.mrb[16].mxu0 %v12095_v59  ;;  %v4941_v59 = vsub.f32 %v12173_v13, %v4940_v4  ;;  %v4955_v1 = vsub.f32 %v4953_v45, %v4954_v51  ;;  %v10232_v47 = vpack.c.bf16 %v4954_v51, %v4947_v11 }
 0x4ec   :  { %9293 = vmatprep.mubr.f32.mxu0 %v12129_v39  ;;  %v4934_v39 = vsub.f32 %v12179_v24, %v4933_v18 }
 0x4ed   :  { %v4942_v41 = vand.u32 4294901760, %v4941_v59  ;;  %v4956_v25 = vand.u32 4294901760, %v4955_v1 }
 0x4ee   :  { %v4935_v57 = vand.u32 4294901760, %v4934_v39 }
 0x4ef   :  { %9294 = vmatmul.mubr.f32.gmra.mrb[18].mxu0 %v12119_v35  ;;  %v4911_v35 = vsub.f32 %v4809_v49, %v12193_v27  ;;  %v10208_v37 = vpack.c.bf16 %v4956_v25, %v4949_v5 }
 0x4f0   :  { %9304 = vmatprep.mubr.f32.mxu0 %v4894_v23  ;;  %v10204_v53 = vpack.c.bf16 %v4942_v41, %v4935_v57 }
 0x4f1   :  { %10199 = vmatpush3.bf16.xpose.msra.mxu0 %v12170_v7  ;;  %v4912_v56 = vand.u32 4294901760, %v4911_v35 }
 0x4f2   :  { %10201 = vmatprep.subr.bf16.mxu0 %v12200_v16 }
 0x4f3   :  { %v4913_v30 = vsub.f32 %v4911_v35, %v4912_v56 }
 0x4f5   :  { %v4914_v62 = vand.u32 4294901760, %v4913_v30 }
 0x4f9   :  { %10203 = vmatpush3.bf16.xpose.msra.mxu0 %v12200_v16 }
 0x4fa   :  { %10205 = vmatprep.subr.bf16.mxu0 %v10204_v53 }
 0x500   :  { %9305 = vmatmul.mubr.f32.vlgmr.msra.gmra.mrb[20].mxu0 %v4904_v6 }
 0x501   :  { %9307 = vmatprep.mubr.f32.mxu0 %v4914_v62  ;;  %10207 = vmatpush3.bf16.xpose.msra.mxu0 %v10204_v53 }
 0x502   :  { %10209 = vmatprep.subr.bf16.mxu0 %v10208_v37 }
 0x504   :  { %9308 = vmatmul.mubr.f32.gmra.mrb[22].mxu0 %v4924_v36 }
 0x505   :  { %9318 = vmatprep.mubr.f32.mxu0 %v12156_v48 }
 0x509   :  { %10211 = vmatpush3.bf16.xpose.msra.mxu0 %v10208_v37 }
 0x50a   :  { %10213 = vmatprep.subr.bf16.mxu0 %v10212_v12 }
 0x510   :  { %9319 = vmatmul.mubr.f32.vlgmr.msra.gmra.mrb[20].mxu0 %v12191_v20 }
 0x511   :  { %9321 = vmatprep.mubr.f32.mxu0 %v12193_v27  ;;  %10215 = vmatpush3.bf16.xpose.msra.mxu0 %v10212_v12 }
 0x512   :  { %10217 = vmatprep.subr.bf16.mxu0 %v10216_v2 }
 0x514   :  { %9322 = vmatmul.mubr.f32.gmra.mrb[22].mxu0 %v12207_v54 }
 0x515   :  { %9332 = vmatprep.mubr.f32.mxu0 %v12163_v33 }
 0x519   :  { %10219 = vmatpush3.bf16.xpose.msra.mxu0 %v10216_v2 }
 0x51a   :  { %10221 = vmatprep.subr.bf16.mxu0 %v12170_v7 }
 0x520   :  { %9333 = vmatmul.mubr.f32.vlgmr.msra.gmra.mrb[20].mxu0 %v4901_v10 }
 0x521   :  { %9335 = vmatprep.mubr.f32.mxu0 %v4911_v35  ;;  %10223 = vmatpush3.bf16.xpose.msra.mxu0 %v12170_v7 }
 0x522   :  { %10225 = vmatprep.subr.bf16.mxu0 %v12200_v16 }
 0x524   :  { %9336 = vmatmul.mubr.f32.gmra.mrb[22].mxu0 %v4921_v26 }
 0x525   :  { %9346 = vmatprep.mubr.f32.mxu0 %v4892_v22 }
 0x529   :  { %10227 = vmatpush3.bf16.xpose.msra.mxu0 %v12200_v16 }
 0x52a   :  { %10229 = vmatprep.subr.bf16.mxu0 %v10228_v63 }
 0x530   :  { %9347 = vmatmul.mubr.f32.vlgmr.msra.gmra.mrb[20].mxu0 %v4902_v61 }
 0x531   :  { %9349 = vmatprep.mubr.f32.mxu0 %v4912_v56  ;;  %10231 = vmatpush3.bf16.xpose.msra.mxu0 %v10228_v63 }
 0x532   :  { %10233 = vmatprep.subr.bf16.mxu0 %v10232_v47 }
 0x534   :  { %9350 = vmatmul.mubr.f32.gmra.mrb[22].mxu0 %v4922_v8 }
 0x535   :  { %9360 = vmatprep.mubr.f32.mxu0 %v12156_v48 }
 0x539   :  { %10235 = vmatpush3.bf16.xpose.msra.mxu0 %v10232_v47 }
 0x53a   :  { %10237 = vmatprep.subr.bf16.mxu0 %v12170_v7 }
 0x540   :  { %9361 = vmatmul.mubr.f32.vlgmr.msra.gmra.mrb[20].mxu0 %v12191_v20 }
 0x541   :  { %9363 = vmatprep.mubr.f32.mxu0 %v12193_v27  ;;  %10239 = vmatpush3.bf16.xpose.msra.mxu0 %v12170_v7 }
 0x542   :  { %10241 = vmatprep.subr.bf16.mxu0 %v12200_v16 }
 0x544   :  { %9364 = vmatmul.mubr.f32.gmra.mrb[22].mxu0 %v12207_v54 }
 0x545   :  { %9374 = vmatprep.mubr.f32.mxu0 %v12156_v48 }
 0x549   :  { %10243 = vmatpush3.bf16.xpose.msra.mxu0 %v12200_v16  ;;  %v12239_v33 = vpop.f32.mrb[12].mxu0 }
 0x54a   :  { %v12241_v22 = vpop.f32.mrb[13].mxu0 }
 0x54d   :  { %v12243_v13 = vpop.f32.mrb[14].mxu0 }
 0x54e   :  { %v12245_v24 = vpop.f32.mrb[15].mxu0 }
 0x550   :  { %9375 = vmatmul.mubr.f32.vlgmr.msra.gmra.mrb[20].mxu0 %v12191_v20 }
 0x551   :  { %9377 = vmatprep.mubr.f32.mxu0 %v12193_v27 }
 0x554   :  { %9378 = vmatmul.mubr.f32.gmra.mrb[22].mxu0 %v12207_v54 }
 0x5be   :  { %v12250_v7 = vpop.f32.mrb[16].mxu0 }
 0x5bf   :  { %v12252_v49 = vpop.f32.mrb[17].mxu0 }
 0x5c2   :  { %v12254_v48 = vpop.f32.mrb[18].mxu0 }
 0x5c3   :  { %v12256_v4 = vpop.f32.mrb[19].mxu0 }
 0x623   :  { %v9376_v40 = vpop.f32.mrb[20].mxu0 }
 0x624   :  { %v10596_v15 = vadd.f32 %v9376_v40, %v11897_v31  ;;  %v5413_v18 = vpop.f32.mrb[21].mxu0 }
 0x625   :  { %v10597_v29 = vadd.f32 %v5413_v18, %v11899_v14 }
 0x626   :  { %v5438_v20 = vsel %vm118_vm0, %v10596_v15, -inf }
 0x627   :  { %5439 = vmax.xlane.f32.xlu1 %v5438_v20  ;;  %v9379_v23 = vpop.f32.mrb[22].mxu0  ;;  %v5435_v27 = vsel %vm118_vm0, %v10597_v29, -inf }
 0x628   :  { %v5425_v9 = vpop.f32.mrb[23].mxu0  ;;  %5436 = vmax.xlane.f32.xlu0 %v5435_v27  ;;  %v10598_v16 = vadd.f32 %v9379_v23, %v11913_v17 }
 0x629   :  { %v10599_v59 = vadd.f32 %v5425_v9, %v11909_v32 }
 0x62a   :  { %v5444_v31 = vsel %vm118_vm0, %v10598_v16, -inf }
 0x62b   :  { %v5441_v45 = vsel %vm118_vm0, %v10599_v59, -inf }
 0x62c   :  { %5442 = vmax.xlane.f32.xlu0 %v5441_v45 }
 0x630   :  { %5445 = vmax.xlane.f32.xlu0 %v5444_v31 }
 0x638   :  { %5479 = vrot.lane.b32.xlu1 %v11928_v44, %s11085_s1 }
 0x6b4   :  { %v5440_v14 = vpop.xlane.xlu1 %5439 }
 0x6b5   :  { %v5448_v39 = vsub.f32 %v10596_v15, %v5440_v14  ;;  %v5437_v0 = vpop.xlane.xlu0 %5436 }
 0x6b6   :  { %v5447_v10 = vsub.f32 %v10597_v29, %v5437_v0 }
 0x6b7   :  { %v5453_v54 = vmul.f32 1.442695, %v5448_v39 }
 0x6b8   :  { %v5451_v35 = vmul.f32 1.442695, %v5447_v10 }
 0x6b9   :  { %10923 = vpow2.f32 %v5453_v54  ;;  %v5443_v51 = vpop.xlane.xlu0 %5442 }
 0x6ba   :  { %10925 = vpow2.f32 %v5451_v35  ;;  %v5449_v53 = vsub.f32 %v10599_v59, %v5443_v51 }
 0x6bc   :  { %v5455_v46 = vmul.f32 1.442695, %v5449_v53 }
 0x6bd   :  { %v5446_v32 = vpop.xlane.xlu0 %5445 }
 0x6be   :  { %v5450_v17 = vsub.f32 %v10598_v16, %v5446_v32 }
 0x6c0   :  { %v5457_v41 = vmul.f32 1.442695, %v5450_v17 }
 0x6c2   :  { %10927 = vpow2.f32 %v5457_v41 }
 0x6c3   :  { %v10924_v11 = vpop.eup %10923  ;;  %10929 = vpow2.f32 %v5455_v46 }
 0x6c4   :  { %v10926_v61 = vpop.eup %10925  ;;  %v5462_v26 = vsel %vm118_vm0, %v10924_v11, 0.0 }
 0x6c5   :  { %5463 = vadd.xlane.f32.xlu0 %v5462_v26  ;;  %v5459_v57 = vsel %vm118_vm0, %v10926_v61, 0.0 }
 0x6c6   :  { %5460 = vadd.xlane.f32.xlu1 %v5459_v57 }
 0x6cc   :  { %v10928_v56 = vpop.eup %10927 }
 0x6cd   :  { %v5468_v1 = vsel %vm118_vm0, %v10928_v56, 0.0  ;;  %v12283_v55 = vpop.eup %10929 }
 0x6ce   :  { %5469 = vadd.xlane.f32.xlu0 %v5468_v1  ;;  %v5465_v8 = vsel %vm118_vm0, %v12283_v55, 0.0 }
 0x6d7   :  { %5483 = vrot.lane.b32.xlu1 %v11938_v50, %s11085_s1 }
 0x6e4   :  { %5481 = vrot.lane.b32.xlu0 %v11925_v34, %s11085_s1 }
 0x6e8   :  { %6125 = vrot.lane.b32.xlu0 %v11602_v60, %s11086_s19 }
 0x6ec   :  { %6129 = vrot.lane.b32.xlu0 %v11622_v58, %s11086_s19 }
 0x6f0   :  { %6117 = vrot.lane.b32.xlu0 %v11583_v19, %s11086_s19  ;;  %v5480_v19 = vpop.permute.xlu1 %5479 }
 0x6f1   :  { %v5504_v5 = vand.u32 4294901760, %v5480_v19 }
 0x6f3   :  { %v12314_v15 = vsub.f32 %v5480_v19, %v5504_v5 }
 0x6f4   :  { %6121 = vrot.lane.b32.xlu0 %v11595_v21, %s11086_s19 }
 0x6f5   :  { %v5615_v27 = vand.u32 4294901760, %v12314_v15 }
 0x6f7   :  { %v5616_v14 = vsub.f32 %v12314_v15, %v5615_v27 }
 0x6f9   :  { %v5617_v41 = vand.u32 4294901760, %v5616_v14 }
 0x6fb   :  { %5466 = vadd.xlane.f32.xlu1 %v5465_v8 }
 0x70c   :  { %5485 = vrot.lane.b32.xlu1 %v11935_v43, %s11085_s1 }
 0x710   :  { %6127 = vrot.lane.b32.xlu1 %v11608_v3, %s11086_s19 }
 0x714   :  { %6131 = vrot.lane.b32.xlu1 %v11644_v28, %s11086_s19 }
 0x718   :  { %6119 = vrot.lane.b32.xlu1 %v11589_v52, %s11086_s19 }
 0x71c   :  { %6123 = vrot.lane.b32.xlu1 %v11600_v38, %s11086_s19 }
 0x752   :  { %v5464_v60 = vpop.xlane.xlu0 %5463 }
 0x753   :  { %v5461_v21 = vpop.xlane.xlu1 %5460 }
 0x754   :  { %10931 = vrcp.f32 %v5461_v21 }
 0x755   :  { %10933 = vrcp.f32 %v5464_v60 }
 0x757   :  { %v5484_v40 = vpop.permute.xlu1 %5483 }
 0x758   :  { %v5510_v29 = vand.u32 4294901760, %v5484_v40 }
 0x75a   :  { %v12323_v16 = vsub.f32 %v5484_v40, %v5510_v29 }
 0x75b   :  { %v5470_v58 = vpop.xlane.xlu0 %5469 }
 0x75c   :  { %10935 = vrcp.f32 %v5470_v58  ;;  %v5629_v10 = vand.u32 4294901760, %v12323_v16 }
 0x75e   :  { %v10932_v30 = vpop.eup %10931  ;;  %v5630_v26 = vsub.f32 %v12323_v16, %v5629_v10 }
 0x75f   :  { %v5475_v25 = vmul.f32 %v10932_v30, %v10926_v61  ;;  %v5482_v6 = vpop.permute.xlu0 %5481  ;;  %v10934_v12 = vpop.eup %10933 }
 0x760   :  { %v5507_v42 = vand.u32 4294901760, %v5482_v6  ;;  %v5476_v2 = vmul.f32 %v10934_v12, %v10924_v11  ;;  %v5631_v21 = vand.u32 4294901760, %v5630_v26 }
 0x761   :  { %v5492_v3 = vsel %vm118_vm0, %v5475_v25, 0 }
 0x762   :  { %v12298_v62 = vpack.c.bf16 %v5507_v42, %v5504_v5  ;;  %v12300_v28 = vand.u32 4294901760, %v5492_v3  ;;  %v5495_v63 = vsel %vm118_vm0, %v5476_v2, 0  ;;  %v12312_v47 = vsub.f32 %v5482_v6, %v5507_v42 }
 0x763   :  { %v12316_v18 = vand.u32 4294901760, %v5495_v63 }
 0x764   :  { %10245 = vmatprep.subr.bf16.mxu1 %v12298_v62  ;;  %v12304_v52 = vsub.f32 %v5492_v3, %v12300_v28  ;;  %v5622_v20 = vand.u32 4294901760, %v12312_v47  ;;  %v10260_v5 = vpack.c.bf16 %v12312_v47, %v12314_v15 }
 0x765   :  { %10247 = vmatpush3.bf16.msra.mxu1 %v12298_v62  ;;  %v12321_v9 = vsub.f32 %v5495_v63, %v12316_v18  ;;  %v6126_v63 = vpop.permute.xlu0 %6125 }
 0x766   :  { %v5574_v38 = vand.u32 4294901760, %v12304_v52  ;;  %v10936_v23 = vpop.eup %10935  ;;  %v5623_v31 = vsub.f32 %v12312_v47, %v5622_v20 }
 0x767   :  { %v5478_v45 = vmul.f32 %v10936_v23, %v10928_v56  ;;  %v5584_v39 = vand.u32 4294901760, %v12321_v9 }
 0x768   :  { %v5575_v37 = vsub.f32 %v12304_v52, %v5574_v38  ;;  %v5624_v35 = vand.u32 4294901760, %v5623_v31 }
 0x769   :  { %v5501_v51 = vsel %vm118_vm0, %v5478_v45, 0  ;;  %v5585_v11 = vsub.f32 %v12321_v9, %v5584_v39  ;;  %v6130_v40 = vpop.permute.xlu0 %6129 }
 0x76a   :  { %v5576_v36 = vand.u32 4294901760, %v5575_v37  ;;  %v12339_v61 = vand.u32 4294901760, %v5501_v51  ;;  %v10252_v56 = vpack.c.bf16 %v5624_v35, %v5617_v41 }
 0x76b   :  { %v5586_v46 = vand.u32 4294901760, %v5585_v11 }
 0x76c   :  { %9388 = vmatprep.mubr.f32.mxu1 %v5576_v36  ;;  %v5603_v19 = vsub.f32 %v5501_v51, %v12339_v61  ;;  %v6145_v51 = vsel %vm118_vm0, %v6130_v40, 0 }
 0x76d   :  { %v6118_v23 = vpop.permute.xlu0 %6117 }
 0x76e   :  { %v5604_v6 = vand.u32 4294901760, %v5603_v19  ;;  %v6133_v45 = vsel %vm118_vm0, %v6118_v23, 0 }
 0x76f   :  { %v12376_v47 = vand.u32 4294901760, %v6133_v45 }
 0x770   :  { %v5605_v3 = vsub.f32 %v5603_v19, %v5604_v6 }
 0x772   :  { %v5606_v12 = vand.u32 4294901760, %v5605_v3 }
 0x788   :  { %v5467_v59 = vpop.xlane.xlu1 %5466 }
 0x789   :  { %10937 = vrcp.f32 %v5467_v59 }
 0x78c   :  { %v5486_v0 = vpop.permute.xlu1 %5485 }
 0x78d   :  { %v5513_v54 = vand.u32 4294901760, %v5486_v0 }
 0x78f   :  { %v12334_v32 = vpack.c.bf16 %v5513_v54, %v5510_v29  ;;  %v5635_v17 = vsub.f32 %v5486_v0, %v5513_v54  ;;  %v10276_v29 = vpack.c.bf16 %v5622_v20, %v5615_v27  ;;  %v12383_v20 = vsub.f32 %v6133_v45, %v12376_v47 }
 0x790   :  { %v6128_v59 = vpop.permute.xlu1 %6127 }
 0x791   :  { %v5636_v57 = vand.u32 4294901760, %v5635_v17  ;;  %10249 = vmatprep.subr.bf16.mxu1 %v12334_v32  ;;  %v10264_v2 = vpack.c.bf16 %v5635_v17, %v12323_v16  ;;  %v6143_v15 = vsel %vm118_vm0, %v6128_v59, 0  ;;  %v6220_v16 = vand.u32 4294901760, %v12383_v20 }
 0x792   :  { %10251 = vmatpush3.bf16.msra.mxu1 %v12334_v32  ;;  %v6153_v27 = vand.u32 4294901760, %v6143_v15 }
 0x793   :  { %v10938_v1 = vpop.eup %10937  ;;  %v5637_v53 = vsub.f32 %v5635_v17, %v5636_v57  ;;  %10253 = vmatprep.subr.bf16.mxu1 %v10252_v56  ;;  %v10280_v31 = vpack.c.bf16 %v5636_v57, %v5629_v10  ;;  %v6122_v10 = vpop.permute.xlu0 %6121  ;;  %v6221_v35 = vsub.f32 %v12383_v20, %v6220_v16  ;;  %v6156_v57 = vand.u32 4294901760, %v6145_v51 }
 0x794   :  { %v5477_v8 = vmul.f32 %v10938_v1, %v12283_v55  ;;  %v12393_v0 = vsub.f32 %v6143_v15, %v6153_v27 }
 0x795   :  { %9389 = vmatmul.mubr.f32.vlgmr.msra.gmra.mrb[24].mxu1 %v5586_v46  ;;  %v5638_v60 = vand.u32 4294901760, %v5637_v53  ;;  %v6222_v1 = vand.u32 4294901760, %v6221_v35 }
 0x796   :  { %10255 = vmatpush3.bf16.msra.mxu1 %v10252_v56  ;;  %v5498_v58 = vsel %vm118_vm0, %v5477_v8, 0 }
 0x797   :  { %v10256_v30 = vpack.c.bf16 %v5638_v60, %v5631_v21  ;;  %v12349_v25 = vand.u32 4294901760, %v5498_v58  ;;  %v6274_v60 = vsub.f32 %v6145_v51, %v6156_v57 }
 0x799   :  { %10257 = vmatprep.subr.bf16.mxu1 %v10256_v30  ;;  %v5593_v42 = vsub.f32 %v5498_v58, %v12349_v25 }
 0x79a   :  { %10259 = vmatpush3.bf16.msra.mxu1 %v10256_v30 }
 0x79b   :  { %10261 = vmatprep.subr.bf16.mxu1 %v10260_v5  ;;  %v5594_v55 = vand.u32 4294901760, %v5593_v42 }
 0x79d   :  { %v5595_v37 = vsub.f32 %v5593_v42, %v5594_v55 }
 0x79f   :  { %v5596_v36 = vand.u32 4294901760, %v5595_v37 }
 0x7a1   :  { %9391 = vmatprep.mubr.f32.mxu1 %v5596_v36 }
 0x7a2   :  { %9392 = vmatmul.mubr.f32.gmra.mrb[26].mxu1 %v5606_v12 }
 0x7a3   :  { %9402 = vmatprep.mubr.f32.mxu1 %v12300_v28 }
 0x7a6   :  { %9403 = vmatmul.mubr.f32.vlgmr.msra.gmra.mrb[24].mxu1 %v12316_v18 }
 0x7a7   :  { %10263 = vmatpush3.bf16.msra.mxu1 %v10260_v5  ;;  %9405 = vmatprep.mubr.f32.mxu1 %v12349_v25  ;;  %v6275_v5 = vand.u32 4294901760, %v6274_v60 }
 0x7a8   :  { %10265 = vmatprep.subr.bf16.mxu1 %v10264_v2 }
 0x7aa   :  { %9406 = vmatmul.mubr.f32.gmra.mrb[26].mxu1 %v12339_v61 }
 0x7ab   :  { %10267 = vmatpush3.bf16.msra.mxu1 %v10264_v2  ;;  %9416 = vmatprep.mubr.f32.mxu1 %v12304_v52  ;;  %v6132_v52 = vpop.permute.xlu1 %6131  ;;  %v6276_v2 = vsub.f32 %v6274_v60, %v6275_v5 }
 0x7ac   :  { %10269 = vmatprep.subr.bf16.mxu1 %v12298_v62 }
 0x7ad   :  { %v6277_v45 = vand.u32 4294901760, %v6276_v2 }
 0x7ae   :  { %9417 = vmatmul.mubr.f32.vlgmr.msra.gmra.mrb[24].mxu1 %v12321_v9 }
 0x7af   :  { %10271 = vmatpush3.bf16.msra.mxu1 %v12298_v62  ;;  %9419 = vmatprep.mubr.f32.mxu1 %v5593_v42  ;;  %v6120_v14 = vpop.permute.xlu1 %6119 }
 0x7b0   :  { %10273 = vmatprep.subr.bf16.mxu1 %v12334_v32  ;;  %v6135_v17 = vsel %vm118_vm0, %v6120_v14, 0 }
 0x7b1   :  { %v12411_v56 = vand.u32 4294901760, %v6135_v17 }
 0x7b2   :  { %9420 = vmatmul.mubr.f32.gmra.mrb[26].mxu1 %v5603_v19 }
 0x7b3   :  { %10275 = vmatpush3.bf16.msra.mxu1 %v12334_v32  ;;  %9430 = vmatprep.mubr.f32.mxu1 %v5574_v38  ;;  %v6141_v38 = vsel %vm118_vm0, %v6126_v63, 0  ;;  %v6124_v11 = vpop.permute.xlu1 %6123  ;;  %v6229_v58 = vsub.f32 %v6135_v17, %v12411_v56  ;;  %v10956_v17 = vld [vmem:[#allocation8] sm:$0xff] }
 0x7b4   :  { %10277 = vmatprep.subr.bf16.mxu1 %v10276_v29  ;;  %v6150_v9 = vand.u32 4294901760, %v6141_v38  ;;  %v6139_v46 = vsel %vm118_vm0, %v6124_v11, 0 }
 0x7b5   :  { %v12427_v30 = vand.u32 4294901760, %v6139_v46  ;;  %v6230_v42 = vand.u32 4294901760, %v6229_v58 }
 0x7b6   :  { %9431 = vmatmul.mubr.f32.vlgmr.msra.gmra.mrb[24].mxu1 %v5584_v39  ;;  %v12390_v39 = vpack.c.bf16 %v6153_v27, %v6150_v9  ;;  %v12399_v54 = vsub.f32 %v6141_v38, %v6150_v9 }
 0x7b7   :  { %10279 = vmatpush3.bf16.msra.mxu1 %v10276_v29  ;;  %9433 = vmatprep.mubr.f32.mxu1 %v5594_v55  ;;  %v6249_v55 = vsub.f32 %v6139_v46, %v12427_v30  ;;  %v6231_v63 = vsub.f32 %v6229_v58, %v6230_v42 }
 0x7b8   :  { %10281 = vmatprep.subr.bf16.mxu1 %v10280_v31  ;;  %v6261_v26 = vand.u32 4294901760, %v12399_v54  ;;  %v10308_v27 = vpack.c.bf16 %v12393_v0, %v12399_v54 }
 0x7b9   :  { %v6250_v40 = vand.u32 4294901760, %v6249_v55  ;;  %v6232_v59 = vand.u32 4294901760, %v6231_v63 }
 0x7ba   :  { %9434 = vmatmul.mubr.f32.gmra.mrb[26].mxu1 %v5604_v6  ;;  %v6262_v21 = vsub.f32 %v12399_v54, %v6261_v26  ;;  %v10955_v54 = vld [vmem:[#allocation8 + $0x8] sm:$0xff] }
 0x7bb   :  { %10283 = vmatpush3.bf16.msra.mxu1 %v10280_v31  ;;  %9444 = vmatprep.mubr.f32.mxu1 %v12300_v28  ;;  %v6251_v31 = vsub.f32 %v6249_v55, %v6250_v40 }
 0x7bc   :  { %10285 = vmatprep.subr.bf16.mxu1 %v12298_v62  ;;  %v6263_v3 = vand.u32 4294901760, %v6262_v21 }
 0x7bd   :  { %v6252_v38 = vand.u32 4294901760, %v6251_v31 }
 0x7be   :  { %9445 = vmatmul.mubr.f32.vlgmr.msra.gmra.mrb[24].mxu1 %v12316_v18 }
 0x7bf   :  { %10287 = vmatpush3.bf16.msra.mxu1 %v12298_v62  ;;  %9447 = vmatprep.mubr.f32.mxu1 %v12349_v25  ;;  %v6147_v62 = vsel %vm118_vm0, %v6132_v52, 0 }
 0x7c0   :  { %10289 = vmatprep.subr.bf16.mxu1 %v12334_v32  ;;  %v6159_v41 = vand.u32 4294901760, %v6147_v62 }
 0x7c2   :  { %9448 = vmatmul.mubr.f32.gmra.mrb[26].mxu1 %v12339_v61  ;;  %v12420_v8 = vpack.c.bf16 %v6159_v41, %v6156_v57  ;;  %v6281_v19 = vsub.f32 %v6147_v62, %v6159_v41 }
 0x7c3   :  { %10291 = vmatpush3.bf16.msra.mxu1 %v12334_v32  ;;  %9458 = vmatprep.mubr.f32.mxu1 %v12300_v28  ;;  %v6137_v32 = vsel %vm118_vm0, %v6122_v10, 0  ;;  %v6268_v28 = vand.u32 4294901760, %v12393_v0 }
 0x7c4   :  { %10293 = vmatprep.subr.bf16.mxu1 %v12390_v39  ;;  %v12413_v53 = vand.u32 4294901760, %v6137_v32  ;;  %v10312_v9 = vpack.c.bf16 %v6281_v19, %v6274_v60 }
 0x7c5   :  { %v10324_v14 = vpack.c.bf16 %v6268_v28, %v6261_v26  ;;  %v10957_v26 = vld [vmem:[#allocation8 + $0x10] sm:$0xff] }
 0x7c6   :  { %9459 = vmatmul.mubr.f32.vlgmr.msra.gmra.mrb[24].mxu1 %v12316_v18  ;;  %v6269_v18 = vsub.f32 %v12393_v0, %v6268_v28 }
 0x7c7   :  { %9461 = vmatprep.mubr.f32.mxu1 %v12349_v25  ;;  %v6282_v25 = vand.u32 4294901760, %v6281_v19 }
 0x7c8   :  { %v6270_v6 = vand.u32 4294901760, %v6269_v18 }
 0x7c9   :  { %v6283_v36 = vsub.f32 %v6281_v19, %v6282_v25  ;;  %v10328_v10 = vpack.c.bf16 %v6282_v25, %v6275_v5 }
 0x7ca   :  { %9462 = vmatmul.mubr.f32.gmra.mrb[26].mxu1 %v12339_v61  ;;  %v6239_v61 = vsub.f32 %v6137_v32, %v12413_v53  ;;  %v10300_v12 = vpack.c.bf16 %v6270_v6, %v6263_v3 }
 0x7cb   :  { %9472 = vmatprep.mubr.f32.mxu1 %v6222_v1  ;;  %v6284_v23 = vand.u32 4294901760, %v6283_v36 }
 0x7cc   :  { %10295 = vmatpush3.bf16.xpose.msra.mxu1 %v12390_v39  ;;  %v6240_v37 = vand.u32 4294901760, %v6239_v61 }
 0x7cd   :  { %10297 = vmatprep.subr.bf16.mxu1 %v12420_v8  ;;  %v10304_v52 = vpack.c.bf16 %v6284_v23, %v6277_v45 }
 0x7ce   :  { %v6241_v29 = vsub.f32 %v6239_v61, %v6240_v37 }
 0x7d0   :  { %v6242_v15 = vand.u32 4294901760, %v6241_v29 }
 0x7d4   :  { %10299 = vmatpush3.bf16.xpose.msra.mxu1 %v12420_v8 }
 0x7d5   :  { %10301 = vmatprep.subr.bf16.mxu1 %v10300_v12 }
 0x7db   :  { %9473 = vmatmul.mubr.f32.vlgmr.msra.gmra.mrb[28].mxu1 %v6232_v59 }
 0x7dc   :  { %9475 = vmatprep.mubr.f32.mxu1 %v6242_v15  ;;  %10303 = vmatpush3.bf16.xpose.msra.mxu1 %v10300_v12 }
 0x7dd   :  { %10305 = vmatprep.subr.bf16.mxu1 %v10304_v52 }
 0x7df   :  { %9476 = vmatmul.mubr.f32.gmra.mrb[30].mxu1 %v6252_v38 }
 0x7e0   :  { %9486 = vmatprep.mubr.f32.mxu1 %v12376_v47 }
 0x7e4   :  { %10307 = vmatpush3.bf16.xpose.msra.mxu1 %v10304_v52 }
 0x7e5   :  { %10309 = vmatprep.subr.bf16.mxu1 %v10308_v27 }
 0x7eb   :  { %9487 = vmatmul.mubr.f32.vlgmr.msra.gmra.mrb[28].mxu1 %v12411_v56 }
 0x7ec   :  { %9489 = vmatprep.mubr.f32.mxu1 %v12413_v53  ;;  %10311 = vmatpush3.bf16.xpose.msra.mxu1 %v10308_v27 }
 0x7ed   :  { %10313 = vmatprep.subr.bf16.mxu1 %v10312_v9 }
 0x7ef   :  { %9490 = vmatmul.mubr.f32.gmra.mrb[30].mxu1 %v12427_v30 }
 0x7f0   :  { %9500 = vmatprep.mubr.f32.mxu1 %v12383_v20 }
 0x7f4   :  { %10315 = vmatpush3.bf16.xpose.msra.mxu1 %v10312_v9 }
 0x7f5   :  { %10317 = vmatprep.subr.bf16.mxu1 %v12390_v39 }
 0x7fb   :  { %9501 = vmatmul.mubr.f32.vlgmr.msra.gmra.mrb[28].mxu1 %v6229_v58 }
 0x7fc   :  { %9503 = vmatprep.mubr.f32.mxu1 %v6239_v61  ;;  %10319 = vmatpush3.bf16.xpose.msra.mxu1 %v12390_v39 }
 0x7fd   :  { %10321 = vmatprep.subr.bf16.mxu1 %v12420_v8 }
 0x7ff   :  { %9504 = vmatmul.mubr.f32.gmra.mrb[30].mxu1 %v6249_v55 }
 0x800   :  { %9514 = vmatprep.mubr.f32.mxu1 %v6220_v16 }
 0x804   :  { %10323 = vmatpush3.bf16.xpose.msra.mxu1 %v12420_v8 }
 0x805   :  { %10325 = vmatprep.subr.bf16.mxu1 %v10324_v14 }
 0x80b   :  { %9515 = vmatmul.mubr.f32.vlgmr.msra.gmra.mrb[28].mxu1 %v6230_v42 }
 0x80c   :  { %9517 = vmatprep.mubr.f32.mxu1 %v6240_v37  ;;  %10327 = vmatpush3.bf16.xpose.msra.mxu1 %v10324_v14 }
 0x80d   :  { %10329 = vmatprep.subr.bf16.mxu1 %v10328_v10 }
 0x80f   :  { %9518 = vmatmul.mubr.f32.gmra.mrb[30].mxu1 %v6250_v40 }
 0x810   :  { %9528 = vmatprep.mubr.f32.mxu1 %v12376_v47 }
 0x814   :  { %10331 = vmatpush3.bf16.xpose.msra.mxu1 %v10328_v10 }
 0x815   :  { %10333 = vmatprep.subr.bf16.mxu1 %v12390_v39 }
 0x81b   :  { %9529 = vmatmul.mubr.f32.vlgmr.msra.gmra.mrb[28].mxu1 %v12411_v56 }
 0x81c   :  { %9531 = vmatprep.mubr.f32.mxu1 %v12413_v53  ;;  %10335 = vmatpush3.bf16.xpose.msra.mxu1 %v12390_v39 }
 0x81d   :  { %10337 = vmatprep.subr.bf16.mxu1 %v12420_v8 }
 0x81f   :  { %9532 = vmatmul.mubr.f32.gmra.mrb[30].mxu1 %v12427_v30 }
 0x820   :  { %9542 = vmatprep.mubr.f32.mxu1 %v12376_v47 }
 0x824   :  { %10339 = vmatpush3.bf16.xpose.msra.mxu1 %v12420_v8 }
 0x82b   :  { %9543 = vmatmul.mubr.f32.vlgmr.msra.gmra.mrb[28].mxu1 %v12411_v56  ;;  %v10958_v56 = vld [vmem:[#allocation8 + $0x18] sm:$0xff] }
 0x82c   :  { %9545 = vmatprep.mubr.f32.mxu1 %v12413_v53 }
 0x82f   :  { %9546 = vmatmul.mubr.f32.gmra.mrb[30].mxu1 %v12427_v30 }
 0x899   :  { %v9460_v20 = vpop.f32.mrb[24].mxu1 }
 0x89a   :  { %v6095_v16 = vpop.f32.mrb[25].mxu1 }
 0x89d   :  { %v12462_v0 = vpop.f32.mrb[26].mxu1 }
 0x89e   :  { %v12464_v62 = vpop.f32.mrb[27].mxu1 }
 0x8fe   :  { %v9544_v39 = vpop.f32.mrb[28].mxu1 }
 0x8ff   :  { %v10600_v35 = vadd.f32 %v10955_v54, %v9544_v39  ;;  %v6741_v51 = vpop.f32.mrb[29].mxu1 }
 0x900   :  { %v10601_v47 = vadd.f32 %v10956_v17, %v6741_v51 }
 0x901   :  { %v6766_v32 = vsel %vm118_vm0, %v10600_v35, -inf }
 0x902   :  { %6767 = vmax.xlane.f32.xlu1 %v6766_v32  ;;  %v9547_v28 = vpop.f32.mrb[30].mxu1  ;;  %v6763_v41 = vsel %vm118_vm0, %v10601_v47, -inf }
 0x903   :  { %v6753_v11 = vpop.f32.mrb[31].mxu1  ;;  %6764 = vmax.xlane.f32.xlu0 %v6763_v41  ;;  %v10602_v1 = vadd.f32 %v10958_v56, %v9547_v28 }
 0x904   :  { %v10603_v57 = vadd.f32 %v10957_v26, %v6753_v11 }
 0x905   :  { %v6772_v46 = vsel %vm118_vm0, %v10602_v1, -inf }
 0x906   :  { %v6769_v53 = vsel %vm118_vm0, %v10603_v57, -inf }
 0x907   :  { %6770 = vmax.xlane.f32.xlu0 %v6769_v53 }
 0x90b   :  { %6773 = vmax.xlane.f32.xlu0 %v6772_v46 }
 0x913   :  { %6807 = vrot.lane.b32.xlu1 %v11928_v44, %s11086_s19 }
 0x98f   :  { %v6768_v18 = vpop.xlane.xlu1 %6767 }
 0x990   :  { %v6776_v8 = vsub.f32 %v10600_v35, %v6768_v18  ;;  %v6765_v19 = vpop.xlane.xlu0 %6764 }
 0x991   :  { %v6775_v21 = vsub.f32 %v10601_v47, %v6765_v19 }
 0x992   :  { %v6781_v60 = vmul.f32 1.442695, %v6776_v8 }
 0x993   :  { %v6779_v58 = vmul.f32 1.442695, %v6775_v21 }
 0x994   :  { %10939 = vpow2.f32 %v6781_v60  ;;  %v6771_v30 = vpop.xlane.xlu0 %6770 }
 0x995   :  { %10941 = vpow2.f32 %v6779_v58  ;;  %v6777_v36 = vsub.f32 %v10603_v57, %v6771_v30 }
 0x997   :  { %v6783_v12 = vmul.f32 1.442695, %v6777_v36 }
 0x998   :  { %v6774_v61 = vpop.xlane.xlu0 %6773 }
 0x999   :  { %v6778_v25 = vsub.f32 %v10602_v1, %v6774_v61 }
 0x99b   :  { %v6785_v6 = vmul.f32 1.442695, %v6778_v25 }
 0x99d   :  { %10943 = vpow2.f32 %v6785_v6 }
 0x99e   :  { %v10940_v5 = vpop.eup %10939  ;;  %10945 = vpow2.f32 %v6783_v12 }
 0x99f   :  { %v10942_v42 = vpop.eup %10941  ;;  %v6790_v55 = vsel %vm118_vm0, %v10940_v5, 0.0 }
 0x9a0   :  { %6791 = vadd.xlane.f32.xlu0 %v6790_v55  ;;  %v6787_v44 = vsel %vm118_vm0, %v10942_v42, 0.0 }
 0x9a1   :  { %6788 = vadd.xlane.f32.xlu1 %v6787_v44 }
 0x9a7   :  { %v10944_v3 = vpop.eup %10943 }
 0x9a8   :  { %v6796_v37 = vsel %vm118_vm0, %v10944_v3, 0.0  ;;  %v12482_v2 = vpop.eup %10945 }
 0x9a9   :  { %6797 = vadd.xlane.f32.xlu0 %v6796_v37  ;;  %v6793_v63 = vsel %vm118_vm0, %v12482_v2, 0.0 }
 0x9b2   :  { %6811 = vrot.lane.b32.xlu1 %v11938_v50, %s11086_s19 }
 0x9bf   :  { %6809 = vrot.lane.b32.xlu0 %v11925_v34, %s11086_s19  ;;  %v6808_v34 = vpop.permute.xlu1 %6807 }
 0x9c0   :  { %v6832_v45 = vand.u32 4294901760, %v6808_v34 }
 0x9c2   :  { %v12508_v54 = vsub.f32 %v6808_v34, %v6832_v45 }
 0x9c3   :  { %7449 = vrot.lane.b32.xlu0 %v12252_v49, %s11086_s19 }
 0x9c4   :  { %v6943_v32 = vand.u32 4294901760, %v12508_v54 }
 0x9c6   :  { %v6944_v56 = vsub.f32 %v12508_v54, %v6943_v32 }
 0x9c7   :  { %7465 = vrot.lane.b32.xlu0 %v6095_v16, %s11085_s1 }
 0x9c8   :  { %v6945_v58 = vand.u32 4294901760, %v6944_v56 }
 0x9d6   :  { %6794 = vadd.xlane.f32.xlu1 %v6793_v63 }
 0x9e7   :  { %6813 = vrot.lane.b32.xlu1 %v11935_v43, %s11086_s19 }
 0x9eb   :  { %7451 = vrot.lane.b32.xlu1 %v12250_v7, %s11086_s19 }
 0x9ef   :  { %7467 = vrot.lane.b32.xlu1 %v9460_v20, %s11085_s1 }
 0xa2d   :  { %v6792_v49 = vpop.xlane.xlu0 %6791 }
 0xa2e   :  { %v6789_v50 = vpop.xlane.xlu1 %6788 }
 0xa2f   :  { %10947 = vrcp.f32 %v6789_v50 }
 0xa30   :  { %10949 = vrcp.f32 %v6792_v49 }
 0xa32   :  { %v6812_v39 = vpop.permute.xlu1 %6811 }
 0xa33   :  { %v6838_v51 = vand.u32 4294901760, %v6812_v39 }
 0xa35   :  { %v12517_v11 = vsub.f32 %v6812_v39, %v6838_v51  ;;  %v7512_v39 = vld [vmem:[%s12902_s4 + $0x28] sm:$0xff] }
 0xa36   :  { %v6798_v40 = vpop.xlane.xlu0 %6797 }
 0xa37   :  { %10951 = vrcp.f32 %v6798_v40  ;;  %v6957_v46 = vand.u32 4294901760, %v12517_v11 }
 0xa39   :  { %v10948_v29 = vpop.eup %10947  ;;  %v6958_v25 = vsub.f32 %v12517_v11, %v6957_v46 }
 0xa3a   :  { %v6803_v23 = vmul.f32 %v10948_v29, %v10942_v42  ;;  %v6810_v59 = vpop.permute.xlu0 %6809  ;;  %v10950_v14 = vpop.eup %10949 }
 0xa3b   :  { %v6835_v31 = vand.u32 4294901760, %v6810_v59  ;;  %v6804_v10 = vmul.f32 %v10950_v14, %v10940_v5  ;;  %v6959_v36 = vand.u32 4294901760, %v6958_v25 }
 0xa3c   :  { %v6820_v15 = vsel %vm118_vm0, %v6803_v23, 0 }
 0xa3d   :  { %v12492_v52 = vpack.c.bf16 %v6835_v31, %v6832_v45  ;;  %v12494_v43 = vand.u32 4294901760, %v6820_v15  ;;  %v6823_v20 = vsel %vm118_vm0, %v6804_v10, 0  ;;  %v12506_v16 = vsub.f32 %v6810_v59, %v6835_v31 }
 0xa3e   :  { %v12510_v35 = vand.u32 4294901760, %v6823_v20 }
 0xa3f   :  { %10341 = vmatprep.subr.bf16.mxu0 %v12492_v52  ;;  %v12498_v7 = vsub.f32 %v6820_v15, %v12494_v43  ;;  %v6950_v17 = vand.u32 4294901760, %v12506_v16  ;;  %v10356_v40 = vpack.c.bf16 %v12506_v16, %v12508_v54 }
 0xa40   :  { %10343 = vmatpush3.bf16.msra.mxu0 %v12492_v52  ;;  %v12515_v28 = vsub.f32 %v6823_v20, %v12510_v35 }
 0xa41   :  { %v6902_v38 = vand.u32 4294901760, %v12498_v7  ;;  %v10952_v47 = vpop.eup %10951  ;;  %v6951_v57 = vsub.f32 %v12506_v16, %v6950_v17  ;;  %v7511_v16 = vld [vmem:[%s12902_s4 + $0x20] sm:$0xff] }
 0xa42   :  { %v6806_v26 = vmul.f32 %v10952_v47, %v10944_v3  ;;  %v6912_v1 = vand.u32 4294901760, %v12515_v28  ;;  %v7514_v47 = vld [vmem:[%s12902_s4 + $0x38] sm:$0xff] }
 0xa43   :  { %v6903_v27 = vsub.f32 %v12498_v7, %v6902_v38  ;;  %v6952_v8 = vand.u32 4294901760, %v6951_v57 }
 0xa44   :  { %v6829_v19 = vsel %vm118_vm0, %v6806_v26, 0  ;;  %v6913_v30 = vsub.f32 %v12515_v28, %v6912_v1 }
 0xa45   :  { %v6904_v9 = vand.u32 4294901760, %v6903_v27  ;;  %v12531_v61 = vand.u32 4294901760, %v6829_v19  ;;  %v10348_v5 = vpack.c.bf16 %v6952_v8, %v6945_v58  ;;  %v10372_v27 = vpack.c.bf16 %v6950_v17, %v6943_v32  ;;  %v7513_v17 = vld [vmem:[%s12902_s4 + $0x30] sm:$0xff]  ;;  %v7515_v8 = vld [vmem:[%s12902_s4 + $0x40] sm:$0xff] }
 0xa46   :  { %v6914_v44 = vand.u32 4294901760, %v6913_v30  ;;  %v7555_v58 = vand.u32 4294901760, %v7515_v8 }
 0xa47   :  { %9556 = vmatprep.mubr.f32.mxu0 %v6904_v9  ;;  %v6931_v37 = vsub.f32 %v6829_v19, %v12531_v61 }
 0xa49   :  { %v6932_v49 = vand.u32 4294901760, %v6931_v37 }
 0xa63   :  { %v6795_v41 = vpop.xlane.xlu1 %6794 }
 0xa64   :  { %10953 = vrcp.f32 %v6795_v41 }
 0xa67   :  { %v6814_v53 = vpop.permute.xlu1 %6813 }
 0xa68   :  { %v6841_v18 = vand.u32 4294901760, %v6814_v53 }
 0xa6a   :  { %v12528_v21 = vpack.c.bf16 %v6841_v18, %v6838_v51  ;;  %v6963_v60 = vsub.f32 %v6814_v53, %v6841_v18  ;;  %v7546_v51 = vand.u32 4294901760, %v7512_v39  ;;  %v7552_v18 = vand.u32 4294901760, %v7514_v47 }
 0xa6c   :  { %v6964_v6 = vand.u32 4294901760, %v6963_v60  ;;  %10345 = vmatprep.subr.bf16.mxu0 %v12528_v21  ;;  %v10360_v15 = vpack.c.bf16 %v6963_v60, %v12517_v11  ;;  %v12608_v53 = vsub.f32 %v7512_v39, %v7546_v51  ;;  %v12626_v25 = vsub.f32 %v7514_v47, %v7552_v18 }
 0xa6d   :  { %10347 = vmatpush3.bf16.msra.mxu0 %v12528_v21 }
 0xa6e   :  { %v10954_v42 = vpop.eup %10953  ;;  %v6965_v55 = vsub.f32 %v6963_v60, %v6964_v6  ;;  %10349 = vmatprep.subr.bf16.mxu0 %v10348_v5  ;;  %v10376_v9 = vpack.c.bf16 %v6964_v6, %v6957_v46  ;;  %v7549_v46 = vand.u32 4294901760, %v7513_v17 }
 0xa6f   :  { %v6805_v3 = vmul.f32 %v10954_v42, %v12482_v2  ;;  %v6933_v2 = vsub.f32 %v6931_v37, %v6932_v49  ;;  %v7518_v42 = vld [vmem:[%s12902_s4 + $0x58] sm:$0xff] }
 0xa70   :  { %9557 = vmatmul.mubr.f32.vlgmr.msra.gmra.mrb[24].mxu0 %v6914_v44  ;;  %v6966_v12 = vand.u32 4294901760, %v6965_v55  ;;  %v12635_v55 = vpack.c.bf16 %v7552_v18, %v7549_v46 }
 0xa71   :  { %10351 = vmatpush3.bf16.msra.mxu0 %v10348_v5  ;;  %v6826_v63 = vsel %vm118_vm0, %v6805_v3, 0  ;;  %v6934_v31 = vand.u32 4294901760, %v6933_v2  ;;  %v7517_v5 = vld [vmem:[%s12902_s4 + $0x50] sm:$0xff] }
 0xa72   :  { %v10352_v34 = vpack.c.bf16 %v6966_v12, %v6959_v36  ;;  %v6920_v50 = vand.u32 4294901760, %v6826_v63  ;;  %v7561_v44 = vand.u32 4294901760, %v7517_v5  ;;  %v7564_v12 = vand.u32 4294901760, %v7518_v42 }
 0xa74   :  { %10353 = vmatprep.subr.bf16.mxu0 %v10352_v34  ;;  %v6921_v29 = vsub.f32 %v6826_v63, %v6920_v50  ;;  %v7519_v63 = vld [vmem:[%s12902_s4 + $0x60] sm:$0xff] }
 0xa75   :  { %10355 = vmatpush3.bf16.msra.mxu0 %v10352_v34  ;;  %v7520_v34 = vld [vmem:[%s12902_s4 + $0x68] sm:$0xff] }
 0xa76   :  { %10357 = vmatprep.subr.bf16.mxu0 %v10356_v40  ;;  %v6922_v23 = vand.u32 4294901760, %v6921_v29  ;;  %v7570_v2 = vand.u32 4294901760, %v7520_v34 }
 0xa78   :  { %v6923_v59 = vsub.f32 %v6921_v29, %v6922_v23 }
 0xa7a   :  { %v6924_v45 = vand.u32 4294901760, %v6923_v59  ;;  %v12661_v59 = vpack.c.bf16 %v7564_v12, %v7561_v44 }
 0xa7c   :  { %9559 = vmatprep.mubr.f32.mxu0 %v6924_v45 }
 0xa7d   :  { %9560 = vmatmul.mubr.f32.gmra.mrb[26].mxu0 %v6934_v31 }
 0xa7e   :  { %9570 = vmatprep.mubr.f32.mxu0 %v12494_v43 }
 0xa81   :  { %9571 = vmatmul.mubr.f32.vlgmr.msra.gmra.mrb[24].mxu0 %v12510_v35 }
 0xa82   :  { %10359 = vmatpush3.bf16.msra.mxu0 %v10356_v40  ;;  %9573 = vmatprep.mubr.f32.mxu0 %v6920_v50 }
 0xa83   :  { %10361 = vmatprep.subr.bf16.mxu0 %v10360_v15 }
 0xa85   :  { %9574 = vmatmul.mubr.f32.gmra.mrb[26].mxu0 %v12531_v61 }
 0xa86   :  { %10363 = vmatpush3.bf16.msra.mxu0 %v10360_v15  ;;  %9584 = vmatprep.mubr.f32.mxu0 %v12498_v7  ;;  %v7507_v7 = vld [vmem:[%s12902_s4] sm:$0xff]  ;;  %v12668_v15 = vsub.f32 %v7520_v34, %v7570_v2 }
 0xa87   :  { %10365 = vmatprep.subr.bf16.mxu0 %v12492_v52  ;;  %v7531_v14 = vand.u32 4294901760, %v7507_v7 }
 0xa89   :  { %9585 = vmatmul.mubr.f32.vlgmr.msra.gmra.mrb[24].mxu0 %v12515_v28  ;;  %v12593_v28 = vsub.f32 %v7507_v7, %v7531_v14  ;;  %v7521_v7 = vld [vmem:[%s12902_s4 + $0x70] sm:$0xff] }
 0xa8a   :  { %10367 = vmatpush3.bf16.msra.mxu0 %v12492_v52  ;;  %9587 = vmatprep.mubr.f32.mxu0 %v6921_v29  ;;  %v12658_v29 = vsub.f32 %v7518_v42, %v7564_v12  ;;  %v7450_v42 = vpop.permute.xlu0 %7449 }
 0xa8b   :  { %10369 = vmatprep.subr.bf16.mxu0 %v12528_v21  ;;  %v7493_v34 = vsel %vm118_vm0, %v12241_v22, %v7450_v42 }
 0xa8d   :  { %9588 = vmatmul.mubr.f32.gmra.mrb[26].mxu0 %v6931_v37  ;;  %v12640_v37 = vsub.f32 %v7515_v8, %v7555_v58 }
 0xa8e   :  { %10371 = vmatpush3.bf16.msra.mxu0 %v12528_v21  ;;  %9598 = vmatprep.mubr.f32.mxu0 %v6902_v38  ;;  %v7509_v38 = vld [vmem:[%s12902_s4 + $0x10] sm:$0xff] }
 0xa8f   :  { %10373 = vmatprep.subr.bf16.mxu0 %v10372_v27  ;;  %v7537_v20 = vand.u32 4294901760, %v7509_v38 }
 0xa91   :  { %9599 = vmatmul.mubr.f32.vlgmr.msra.gmra.mrb[24].mxu0 %v6912_v1  ;;  %v12597_v11 = vsub.f32 %v7509_v38, %v7537_v20  ;;  %v7573_v38 = vand.u32 4294901760, %v7521_v7 }
 0xa92   :  { %10375 = vmatpush3.bf16.msra.mxu0 %v10372_v27  ;;  %9601 = vmatprep.mubr.f32.mxu0 %v6922_v23  ;;  %v7567_v23 = vand.u32 4294901760, %v7519_v63 }
 0xa93   :  { %10377 = vmatprep.subr.bf16.mxu0 %v10376_v9 }
 0xa94   :  { %v12666_v31 = vsub.f32 %v7519_v63, %v7567_v23  ;;  %v12671_v27 = vpack.c.bf16 %v7570_v2, %v7567_v23 }
 0xa95   :  { %9602 = vmatmul.mubr.f32.gmra.mrb[26].mxu0 %v6932_v49  ;;  %v12654_v49 = vsub.f32 %v7517_v5, %v7561_v44 }
 0xa96   :  { %10379 = vmatpush3.bf16.msra.mxu0 %v10376_v9  ;;  %9612 = vmatprep.mubr.f32.mxu0 %v12494_v43  ;;  %v10476_v9 = vpack.c.bf16 %v12668_v15, %v12666_v31 }
 0xa97   :  { %10381 = vmatprep.subr.bf16.mxu0 %v12492_v52  ;;  %v10472_v45 = vpack.c.bf16 %v12658_v29, %v12654_v49 }
 0xa99   :  { %9613 = vmatmul.mubr.f32.vlgmr.msra.gmra.mrb[24].mxu0 %v12510_v35 }
 0xa9a   :  { %10383 = vmatpush3.bf16.msra.mxu0 %v12492_v52  ;;  %9615 = vmatprep.mubr.f32.mxu0 %v6920_v50  ;;  %v7508_v52 = vld [vmem:[%s12902_s4 + $0x8] sm:$0xff] }
 0xa9b   :  { %10385 = vmatprep.subr.bf16.mxu0 %v12528_v21  ;;  %v7534_v10 = vand.u32 4294901760, %v7508_v52 }
 0xa9d   :  { %9616 = vmatmul.mubr.f32.gmra.mrb[26].mxu0 %v12531_v61  ;;  %v12591_v32 = vpack.c.bf16 %v7534_v10, %v7531_v14  ;;  %v12595_v41 = vsub.f32 %v7508_v52, %v7534_v10  ;;  %v7522_v52 = vld [vmem:[%s12902_s4 + $0x78] sm:$0xff]  ;;  %v7751_v10 = vsub.f32 %v7521_v7, %v7573_v38 }
 0xa9e   :  { %10387 = vmatpush3.bf16.msra.mxu0 %v12528_v21  ;;  %9626 = vmatprep.mubr.f32.mxu0 %v12494_v43  ;;  %v7510_v43 = vld [vmem:[%s12902_s4 + $0x18] sm:$0xff]  ;;  %v7516_v21 = vld [vmem:[%s12902_s4 + $0x48] sm:$0xff]  ;;  %v7576_v14 = vand.u32 4294901760, %v7522_v52 }
 0xa9f   :  { %v7540_v54 = vand.u32 4294901760, %v7510_v43  ;;  %v10452_v1 = vpack.c.bf16 %v12595_v41, %v12593_v28  ;;  %10389 = vmatprep.subr.bf16.mxu1 %v12591_v32  ;;  %v7558_v6 = vand.u32 4294901760, %v7516_v21  ;;  %v7661_v39 = vand.u32 4294901760, %v12595_v41 }
 0xaa0   :  { %10391 = vmatpush3.bf16.msra.mxu1 %v12591_v32 }
 0xaa1   :  { %9627 = vmatmul.mubr.f32.vlgmr.msra.gmra.mrb[24].mxu0 %v12510_v35  ;;  %v7543_v35 = vand.u32 4294901760, %v7511_v16  ;;  %v12599_v26 = vpack.c.bf16 %v7540_v54, %v7537_v20  ;;  %v12601_v57 = vsub.f32 %v7510_v43, %v7540_v54  ;;  %10453 = vmatprep.subr.bf16.mxu0 %v10452_v1  ;;  %v12642_v36 = vsub.f32 %v7516_v21, %v7558_v6 }
 0xaa2   :  { %9629 = vmatprep.mubr.f32.mxu0 %v6920_v50  ;;  %10455 = vmatpush3.bf16.msra.mxu0 %v10452_v1  ;;  %v12651_v50 = vpack.c.bf16 %v7558_v6, %v7555_v58  ;;  %v7758_v43 = vsub.f32 %v7522_v52, %v7576_v14  ;;  %v12688_v54 = vpack.c.bf16 %v7576_v14, %v7573_v38 }
 0xaa3   :  { %v12603_v56 = vsub.f32 %v7511_v16, %v7543_v35  ;;  %v10456_v19 = vpack.c.bf16 %v12601_v57, %v12597_v11  ;;  %v12619_v60 = vpack.c.bf16 %v7546_v51, %v7543_v35  ;;  %10393 = vmatprep.subr.bf16.mxu1 %v12599_v26  ;;  %v10468_v40 = vpack.c.bf16 %v12642_v36, %v12640_v37 }
 0xaa4   :  { %10395 = vmatpush3.bf16.msra.mxu1 %v12599_v26  ;;  %v10480_v20 = vpack.c.bf16 %v7758_v43, %v7751_v10  ;;  %v7654_v16 = vand.u32 4294901760, %v12593_v28  ;;  %v7662_v51 = vsub.f32 %v12595_v41, %v7661_v39  ;;  %v7752_v41 = vand.u32 4294901760, %v7751_v10 }
 0xaa5   :  { %9630 = vmatmul.mubr.f32.gmra.mrb[26].mxu0 %v12531_v61  ;;  %10457 = vmatprep.subr.bf16.mxu0 %v10456_v19  ;;  %v10460_v30 = vpack.c.bf16 %v12608_v53, %v12603_v56  ;;  %v12624_v61 = vsub.f32 %v7513_v17, %v7549_v46  ;;  %v7675_v12 = vand.u32 4294901760, %v12601_v57  ;;  %v7682_v38 = vand.u32 4294901760, %v12603_v56 }
 0xaa6   :  { %10397 = vmatprep.subr.bf16.mxu1 %v12619_v60  ;;  %10459 = vmatpush3.bf16.msra.mxu0 %v10456_v19  ;;  %v7655_v35 = vsub.f32 %v12593_v28, %v7654_v16  ;;  %v7663_v47 = vand.u32 4294901760, %v7662_v51  ;;  %v7759_v19 = vand.u32 4294901760, %v7758_v43  ;;  %v7753_v21 = vsub.f32 %v7751_v10, %v7752_v41 }
 0xaa7   :  { %10461 = vmatprep.subr.bf16.mxu0 %v10460_v30  ;;  %v10464_v3 = vpack.c.bf16 %v12626_v25, %v12624_v61  ;;  %v7676_v52 = vsub.f32 %v12601_v57, %v7675_v12 }
 0xaa8   :  { %10399 = vmatpush3.bf16.msra.mxu1 %v12619_v60  ;;  %v7656_v17 = vand.u32 4294901760, %v7655_v35  ;;  %v7760_v58 = vsub.f32 %v7758_v43, %v7759_v19 }
 0xaa9   :  { %10401 = vmatprep.subr.bf16.mxu1 %v12635_v55  ;;  %v7677_v51 = vand.u32 4294901760, %v7676_v52 }
 0xaaa   :  { %10463 = vmatpush3.bf16.msra.mxu0 %v10460_v30  ;;  %v12694_v1 = vpack.c.bf16 %v7663_v47, %v7656_v17  ;;  %v12709_v30 = vpack.c.bf16 %v7661_v39, %v7654_v16  ;;  %v7761_v6 = vand.u32 4294901760, %v7760_v58  ;;  %v7683_v47 = vsub.f32 %v12603_v56, %v7682_v38 }
 0xaab   :  { %10465 = vmatprep.subr.bf16.mxu0 %v10464_v3 }
 0xaac   :  { %10403 = vmatpush3.bf16.msra.mxu1 %v12635_v55 }
 0xaad   :  { %10405 = vmatprep.subr.bf16.mxu1 %v12651_v50 }
 0xaae   :  { %10467 = vmatpush3.bf16.msra.mxu0 %v10464_v3  ;;  %v7668_v3 = vand.u32 4294901760, %v12597_v11 }
 0xaaf   :  { %10469 = vmatprep.subr.bf16.mxu0 %v10468_v40 }
 0xab0   :  { %10407 = vmatpush3.bf16.msra.mxu1 %v12651_v50  ;;  %v7669_v7 = vsub.f32 %v12597_v11, %v7668_v3 }
 0xab1   :  { %10409 = vmatprep.subr.bf16.mxu1 %v12661_v59 }
 0xab2   :  { %10471 = vmatpush3.bf16.msra.mxu0 %v10468_v40  ;;  %v7670_v35 = vand.u32 4294901760, %v7669_v7 }
 0xab3   :  { %10473 = vmatprep.subr.bf16.mxu0 %v10472_v45 }
 0xab4   :  { %10411 = vmatpush3.bf16.msra.mxu1 %v12661_v59 }
 0xab5   :  { %10413 = vmatprep.subr.bf16.mxu1 %v12671_v27 }
 0xab6   :  { %10475 = vmatpush3.bf16.msra.mxu0 %v10472_v45 }
 0xab7   :  { %10477 = vmatprep.subr.bf16.mxu0 %v10476_v9 }
 0xab8   :  { %10415 = vmatpush3.bf16.msra.mxu1 %v12671_v27 }
 0xab9   :  { %10417 = vmatprep.subr.bf16.mxu1 %v12688_v54 }
 0xaba   :  { %10479 = vmatpush3.bf16.msra.mxu0 %v10476_v9 }
 0xabb   :  { %10481 = vmatprep.subr.bf16.mxu0 %v10480_v20 }
 0xabc   :  { %10419 = vmatpush3.bf16.msra.mxu1 %v12688_v54 }
 0xabd   :  { %10421 = vmatprep.subr.bf16.mxu1 %v12694_v1 }
 0xabe   :  { %10483 = vmatpush3.bf16.msra.mxu0 %v10480_v20  ;;  %v7689_v20 = vand.u32 4294901760, %v12608_v53 }
 0xabf   :  { %10485 = vmatprep.subr.bf16.mxu0 %v12591_v32 }
 0xb74   :  { %v9628_v46 = vpop.f32.mrb[24].mxu0 }
 0xb75   :  { %7483 = vrot.lane.b32.xlu1 %v9628_v46, %s11084_s10  ;;  %v7423_v18 = vpop.f32.mrb[25].mxu0  ;;  %v7696_v46 = vand.u32 4294901760, %v12624_v61 }
 0xb76   :  { %7481 = vrot.lane.b32.xlu0 %v7423_v18, %s11084_s10  ;;  %v7703_v18 = vand.u32 4294901760, %v12626_v25 }
 0xb78   :  { %v9631_v8 = vpop.f32.mrb[26].mxu0  ;;  %v7704_v42 = vsub.f32 %v12626_v25, %v7703_v18  ;;  %v10528_v11 = vpack.c.bf16 %v7703_v18, %v7696_v46  ;;  %v8323_v25 = vld [vmem:[%s12903_s5] ss:$0 sm:$0xff] }
 0xb79   :  { %7455 = vrot.lane.b32.xlu1 %v12254_v48, %s11086_s19  ;;  %v7435_v28 = vpop.f32.mrb[27].mxu0  ;;  %v7754_v48 = vand.u32 4294901760, %v7753_v21 }
 0xb7a   :  { %7453 = vrot.lane.b32.xlu0 %v12256_v4, %s11086_s19  ;;  %v12713_v4 = vpack.c.bf16 %v7759_v19, %v7752_v41  ;;  %v7690_v19 = vsub.f32 %v12608_v53, %v7689_v20 }
 0xb7b   :  { %v12711_v5 = vpack.c.bf16 %v7761_v6, %v7754_v48  ;;  %v10424_v48 = vpack.c.bf16 %v7677_v51, %v7670_v35  ;;  %v7684_v6 = vand.u32 4294901760, %v7683_v47  ;;  %v7724_v47 = vand.u32 4294901760, %v12654_v49 }
 0xb7d   :  { %7471 = vrot.lane.b32.xlu1 %v12462_v0, %s11085_s1  ;;  %v7452_v0 = vpop.permute.xlu1 %7451 }
 0xb7e   :  { %7469 = vrot.lane.b32.xlu0 %v12464_v62, %s11085_s1  ;;  %v7466_v62 = vpop.permute.xlu0 %7465  ;;  %v7494_v63 = vsel %vm118_vm0, %v12239_v33, %v7452_v0  ;;  %v7697_v0 = vsub.f32 %v12624_v61, %v7696_v46  ;;  %s11087_s1 = smov [#allocation10]  }
 0xb7f   :  { %v7498_v2 = vsel %vm7497_vm1, %v7493_v34, %v7466_v62  ;;  %v7717_v34 = vand.u32 4294901760, %v12642_v36  ;;  %s8309_s19 = sshll.u32 %s11087_s1, 4  ;;  %s8310_s19 = int_to_ptr.vmem [resolvable:$true] %s8309_s19 }
 0xb80   :  { %s11047_s5 = scalar_lea.vmem %s8310_s19, 512  ;;  %p11052_p5 = scmp.lt.s32.totalorder %s8310_s19, %s8310_s19 }
 0xb81   :  { %7487 = vrot.lane.b32.xlu1 %v9631_v8, %s11084_s10  ;;  %v7468_v44 = vpop.permute.xlu1 %7467  ;;  %v7718_v51 = vsub.f32 %v12642_v36, %v7717_v34  ;;  %p11048_p4 = scmp.ne.s32.totalorder %s8310_s19, %s11047_s5  ;;  %p11053_p6 = scmp.lt.s32.totalorder %s11047_s5, %s11047_s5 }
 0xb82   :  { %7485 = vrot.lane.b32.xlu0 %v7435_v28, %s11084_s10  ;;  %v7499_v40 = vsel %vm7497_vm1, %v7494_v63, %v7468_v44  ;;  %v7710_v63 = vand.u32 4294901760, %v12640_v37 }
 0xb83   :  { %p11054_p7 = por %p11053_p6, %p11052_p5 }
 0xb84   :  { %v7711_v35 = vsub.f32 %v12640_v37, %v7710_v63  ;;  %v10532_v57 = vpack.c.bf16 %v7717_v34, %v7710_v63 }
 0xb85   :  { %p11055_p8 = pnand %p11054_p7, %p11048_p4 }
 0xbe7   :  { %v7484_v23 = vpop.permute.xlu1 %7483 }
 0xbe8   :  { %v7504_v45 = vsel %vm7502_vm2, %v7499_v40, %v7484_v23  ;;  %v7482_v9 = vpop.permute.xlu0 %7481 }
 0xbe9   :  { %v12730_v33 = vand.u32 4294901760, %v7504_v45  ;;  %v7503_v22 = vsel %vm7502_vm2, %v7498_v2, %v7482_v9  ;;  %v7691_v9 = vand.u32 4294901760, %v7690_v19  ;;  %v7731_v19 = vand.u32 4294901760, %v12658_v29 }
 0xbea   :  { %v12734_v14 = vand.u32 4294901760, %v7503_v22 }
 0xbeb   :  { %v12737_v10 = vsub.f32 %v7504_v45, %v12730_v33  ;;  %v7456_v43 = vpop.permute.xlu1 %7455  ;;  %v10536_v56 = vpack.c.bf16 %v7731_v19, %v7724_v47 }
 0xbec   :  { %v12741_v16 = vsub.f32 %v7503_v22, %v12734_v14  ;;  %v7454_v39 = vpop.permute.xlu0 %7453  ;;  %v7496_v44 = vsel %vm118_vm0, %v12243_v13, %v7456_v43 }
 0xbed   :  { %v7623_v17 = vand.u32 4294901760, %v12737_v10  ;;  %v7495_v23 = vsel %vm118_vm0, %v12245_v24, %v7454_v39  ;;  %v7698_v24 = vand.u32 4294901760, %v7697_v0 }
 0xbee   :  { %9740 = vmatprep.mubr.f32.mxu0 %v12741_v16  ;;  %v7613_v8 = vand.u32 4294901760, %v12741_v16 }
 0xbef   :  { %v7624_v28 = vsub.f32 %v12737_v10, %v7623_v17  ;;  %v7472_v41 = vpop.permute.xlu1 %7471  ;;  %9741 = vmatmul.mubr.f32.vlgmr.msra.gmra.mrb[28].mxu0 %v12737_v10 }
 0xbf0   :  { %10487 = vmatpush3.bf16.msra.mxu0 %v12591_v32  ;;  %v7470_v21 = vpop.permute.xlu0 %7469  ;;  %v7614_v58 = vsub.f32 %v12741_v16, %v7613_v8  ;;  %v7501_v2 = vsel %vm7497_vm1, %v7496_v44, %v7472_v41  ;;  %v7705_v16 = vand.u32 4294901760, %v7704_v42  ;;  %v10428_v41 = vpack.c.bf16 %v7691_v9, %v7684_v6 }
 0xbf1   :  { %10489 = vmatprep.subr.bf16.mxu0 %v12599_v26  ;;  %v7625_v40 = vand.u32 4294901760, %v7624_v28  ;;  %v7500_v7 = vsel %vm7497_vm1, %v7495_v23, %v7470_v21  ;;  %v7712_v42 = vand.u32 4294901760, %v7711_v35  ;;  %v7719_v44 = vand.u32 4294901760, %v7718_v51 }
 0xbf2   :  { %v7615_v62 = vand.u32 4294901760, %v7614_v58  ;;  %v7725_v6 = vsub.f32 %v12654_v49, %v7724_v47  ;;  %v7738_v23 = vand.u32 4294901760, %v12666_v31  ;;  %v10524_v51 = vpack.c.bf16 %v7689_v20, %v7682_v38 }
 0xbf3   :  { %v7488_v45 = vpop.permute.xlu1 %7487  ;;  %v10436_v9 = vpack.c.bf16 %v7719_v44, %v7712_v42 }
 0xbf4   :  { %v7506_v52 = vsel %vm7502_vm2, %v7501_v2, %v7488_v45  ;;  %10491 = vmatpush3.bf16.msra.mxu0 %v12599_v26  ;;  %9664 = vmatprep.mubr.f32.mxu1 %v7615_v62  ;;  %v7486_v13 = vpop.permute.xlu0 %7485 }
 0xbf5   :  { %v12777_v22 = vand.u32 4294901760, %v7506_v52  ;;  %v7505_v43 = vsel %vm7502_vm2, %v7500_v7, %v7486_v13  ;;  %9665 = vmatmul.mubr.f32.vlgmr.msra.gmra.mrb[32].mxu1 %v7625_v40  ;;  %10493 = vmatprep.subr.bf16.mxu0 %v12619_v60  ;;  %v7732_v40 = vsub.f32 %v12658_v29, %v7731_v19  ;;  %v7726_v7 = vand.u32 4294901760, %v7725_v6 }
 0xbf6   :  { %v12781_v39 = vand.u32 4294901760, %v7505_v43  ;;  %10423 = vmatpush3.bf16.msra.mxu1 %v12694_v1  ;;  %v10432_v1 = vpack.c.bf16 %v7705_v16, %v7698_v24 }
 0xbf7   :  { %v12792_v28 = vsub.f32 %v7506_v52, %v12777_v22  ;;  %10425 = vmatprep.subr.bf16.mxu1 %v10424_v48  ;;  %v7733_v13 = vand.u32 4294901760, %v7732_v40 }
 0xbf8   :  { %v7632_v21 = vsub.f32 %v7505_v43, %v12781_v39  ;;  %10495 = vmatpush3.bf16.msra.mxu0 %v12619_v60  ;;  %v7739_v43 = vsub.f32 %v12666_v31, %v7738_v23 }
 0xbf9   :  { %10497 = vmatprep.subr.bf16.mxu0 %v12635_v55  ;;  %v7643_v58 = vand.u32 4294901760, %v12792_v28 }
 0xbfa   :  { %10427 = vmatpush3.bf16.msra.mxu1 %v10424_v48  ;;  %9743 = vmatprep.mubr.f32.mxu0 %v7632_v21  ;;  %v7633_v0 = vand.u32 4294901760, %v7632_v21  ;;  %v7745_v48 = vand.u32 4294901760, %v12668_v15  ;;  %v7740_v16 = vand.u32 4294901760, %v7739_v43 }
 0xbfb   :  { %9744 = vmatmul.mubr.f32.gmra.mrb[30].mxu0 %v12792_v28  ;;  %10429 = vmatprep.subr.bf16.mxu1 %v10428_v41  ;;  %v7644_v62 = vsub.f32 %v12792_v28, %v7643_v58 }
 0xbfc   :  { %10499 = vmatpush3.bf16.msra.mxu0 %v12635_v55  ;;  %9778 = vmatprep.mubr.f32.mxu0 %v7613_v8  ;;  %v7634_v2 = vsub.f32 %v7632_v21, %v7633_v0  ;;  %v7746_v24 = vsub.f32 %v12668_v15, %v7745_v48  ;;  %v10440_v8 = vpack.c.bf16 %v7733_v13, %v7726_v7 }
 0xbfd   :  { %10501 = vmatprep.subr.bf16.mxu0 %v12651_v50  ;;  %v7645_v52 = vand.u32 4294901760, %v7644_v62  ;;  %v10520_v15 = vpack.c.bf16 %v7675_v12, %v7668_v3  ;;  %v10540_v53 = vpack.c.bf16 %v7745_v48, %v7738_v23 }
 0xbfe   :  { %10431 = vmatpush3.bf16.msra.mxu1 %v10428_v41  ;;  %v7635_v45 = vand.u32 4294901760, %v7634_v2  ;;  %v7747_v35 = vand.u32 4294901760, %v7746_v24 }
 0xbff   :  { %10433 = vmatprep.subr.bf16.mxu1 %v10432_v1 }
 0xc00   :  { %10503 = vmatpush3.bf16.msra.mxu0 %v12651_v50  ;;  %9667 = vmatprep.mubr.f32.mxu1 %v7635_v45  ;;  %v10444_v31 = vpack.c.bf16 %v7747_v35, %v7740_v16 }
 0xc01   :  { %9668 = vmatmul.mubr.f32.gmra.mrb[34].mxu1 %v7645_v52  ;;  %10505 = vmatprep.subr.bf16.mxu0 %v12661_v59 }
 0xc02   :  { %10435 = vmatpush3.bf16.msra.mxu1 %v10432_v1  ;;  %9702 = vmatprep.mubr.f32.mxu1 %v12734_v14 }
 0xc03   :  { %10437 = vmatprep.subr.bf16.mxu1 %v10436_v9 }
 0xc04   :  { %10507 = vmatpush3.bf16.msra.mxu0 %v12661_v59 }
 0xc05   :  { %10509 = vmatprep.subr.bf16.mxu0 %v12671_v27 }
 0xc06   :  { %10439 = vmatpush3.bf16.msra.mxu1 %v10436_v9 }
 0xc07   :  { %10441 = vmatprep.subr.bf16.mxu1 %v10440_v8 }
 0xc08   :  { %10511 = vmatpush3.bf16.msra.mxu0 %v12671_v27 }
 0xc09   :  { %10513 = vmatprep.subr.bf16.mxu0 %v12688_v54 }
 0xc0a   :  { %10443 = vmatpush3.bf16.msra.mxu1 %v10440_v8 }
 0xc0b   :  { %10445 = vmatprep.subr.bf16.mxu1 %v10444_v31 }
 0xc0c   :  { %10515 = vmatpush3.bf16.msra.mxu0 %v12688_v54 }
 0xc0d   :  { %10517 = vmatprep.subr.bf16.mxu0 %v12709_v30 }
 0xc0e   :  { %10447 = vmatpush3.bf16.msra.mxu1 %v10444_v31 }
 0xc0f   :  { %9779 = vmatmul.mubr.f32.vlgmr.msra.gmra.mrb[28].mxu0 %v7623_v17  ;;  %10449 = vmatprep.subr.bf16.mxu1 %v12711_v5 }
 0xc10   :  { %9781 = vmatprep.mubr.f32.mxu0 %v7633_v0  ;;  %10519 = vmatpush3.bf16.msra.mxu0 %v12709_v30 }
 0xc11   :  { %10521 = vmatprep.subr.bf16.mxu0 %v10520_v15 }
 0xc12   :  { %10451 = vmatpush3.bf16.msra.mxu1 %v12711_v5 }
 0xc13   :  { %9782 = vmatmul.mubr.f32.gmra.mrb[30].mxu0 %v7643_v58 }
 0xc14   :  { %10523 = vmatpush3.bf16.msra.mxu0 %v10520_v15  ;;  %9816 = vmatprep.mubr.f32.mxu0 %v12734_v14 }
 0xc15   :  { %9703 = vmatmul.mubr.f32.vlgmr.msra.gmra.mrb[32].mxu1 %v12730_v33  ;;  %10525 = vmatprep.subr.bf16.mxu0 %v10524_v51 }
 0xc16   :  { %9705 = vmatprep.mubr.f32.mxu1 %v12781_v39 }
 0xc18   :  { %10527 = vmatpush3.bf16.msra.mxu0 %v10524_v51 }
 0xc19   :  { %9706 = vmatmul.mubr.f32.gmra.mrb[34].mxu1 %v12777_v22  ;;  %10529 = vmatprep.subr.bf16.mxu0 %v10528_v11 }
 0xc1c   :  { %10531 = vmatpush3.bf16.msra.mxu0 %v10528_v11 }
 0xc1d   :  { %10533 = vmatprep.subr.bf16.mxu0 %v10532_v57 }
 0xc20   :  { %10535 = vmatpush3.bf16.msra.mxu0 %v10532_v57 }
 0xc21   :  { %10537 = vmatprep.subr.bf16.mxu0 %v10536_v56 }
 0xc24   :  { %10539 = vmatpush3.bf16.msra.mxu0 %v10536_v56 }
 0xc25   :  { %10541 = vmatprep.subr.bf16.mxu0 %v10540_v53 }
 0xc28   :  { %10543 = vmatpush3.bf16.msra.mxu0 %v10540_v53 }
 0xc29   :  { %10545 = vmatprep.subr.bf16.mxu0 %v12713_v4 }
 0xc2c   :  { %10547 = vmatpush3.bf16.msra.mxu0 %v12713_v4 }
 0xc2d   :  { %10549 = vmatprep.subr.bf16.mxu0 %v12591_v32 }
 0xc2f   :  { %9817 = vmatmul.mubr.f32.vlgmr.msra.gmra.mrb[28].mxu0 %v12730_v33 }
 0xc30   :  { %9819 = vmatprep.mubr.f32.mxu0 %v12781_v39  ;;  %10551 = vmatpush3.bf16.msra.mxu0 %v12591_v32 }
 0xc31   :  { %10553 = vmatprep.subr.bf16.mxu0 %v12599_v26 }
 0xc33   :  { %9820 = vmatmul.mubr.f32.gmra.mrb[30].mxu0 %v12777_v22 }
 0xc34   :  { %10555 = vmatpush3.bf16.msra.mxu0 %v12599_v26  ;;  %9854 = vmatprep.mubr.f32.mxu0 %v12734_v14 }
 0xc35   :  { %10557 = vmatprep.subr.bf16.mxu0 %v12619_v60 }
 0xc38   :  { %10559 = vmatpush3.bf16.msra.mxu0 %v12619_v60 }
 0xc39   :  { %10561 = vmatprep.subr.bf16.mxu0 %v12635_v55 }
 0xc3c   :  { %10563 = vmatpush3.bf16.msra.mxu0 %v12635_v55 }
 0xc3d   :  { %10565 = vmatprep.subr.bf16.mxu0 %v12651_v50 }
 0xc40   :  { %10567 = vmatpush3.bf16.msra.mxu0 %v12651_v50 }
 0xc41   :  { %10569 = vmatprep.subr.bf16.mxu0 %v12661_v59 }
 0xc44   :  { %10571 = vmatpush3.bf16.msra.mxu0 %v12661_v59 }
 0xc45   :  { %10573 = vmatprep.subr.bf16.mxu0 %v12671_v27 }
 0xc48   :  { %10575 = vmatpush3.bf16.msra.mxu0 %v12671_v27 }
 0xc49   :  { %10577 = vmatprep.subr.bf16.mxu0 %v12688_v54 }
 0xc4c   :  { %10579 = vmatpush3.bf16.msra.mxu0 %v12688_v54 }
 0xc4f   :  { %9855 = vmatmul.mubr.f32.vlgmr.msra.gmra.mrb[28].mxu0 %v12730_v33 }
 0xc50   :  { %9857 = vmatprep.mubr.f32.mxu0 %v12781_v39 }
 0xc53   :  { %9858 = vmatmul.mubr.f32.gmra.mrb[30].mxu0 %v12777_v22 }
 0xce8   :  { %v9704_v32 = vpop.f32.mrb[32].mxu1 }
 0xce9   :  { %v7798_v26 = vpop.f32.mrb[33].mxu1  ;;  %v10604_v55 = vadd.f32 %v9704_v32, %v8323_v25 }
 0xcea   :  { %v10606_v37 = vadd.f32 %v8323_v25, %v7798_v26 }
 0xcec   :  { %v9707_v60 = vpop.f32.mrb[34].mxu1 }
 0xced   :  { %v7810_v61 = vpop.f32.mrb[35].mxu1  ;;  %v10608_v59 = vadd.f32 %v9707_v60, %v8323_v25 }
 0xcee   :  { %v10610_v27 = vadd.f32 %v8323_v25, %v7810_v61 }
 0xd22   :  { %v9856_v36 = vpop.f32.mrb[28].mxu0 }
 0xd23   :  { %v10605_v50 = vadd.f32 %v10604_v55, %v9856_v36  ;;  %v8278_v49 = vpop.f32.mrb[29].mxu0 }
 0xd24   :  { %v10607_v29 = vadd.f32 %v10606_v37, %v8278_v49 }
 0xd25   :  { %8301 = vst.msk [vmem:[#allocation10 + $0x8] sm:$0xff] %vm118_vm0, %v10605_v50 }
 0xd26   :  { %8300 = vst.msk [vmem:[#allocation10] sm:$0xff] %vm118_vm0, %v10607_v29  ;;  %v9859_v54 = vpop.f32.mrb[30].mxu0 }
 0xd27   :  { %v10609_v30 = vadd.f32 %v10608_v59, %v9859_v54  ;;  %v8290_v5 = vpop.f32.mrb[31].mxu0 }
 0xd28   :  { %v10611_v4 = vadd.f32 %v10610_v27, %v8290_v5 }
 0xd29   :  { %8303 = vst.msk [vmem:[#allocation10 + $0x18] sm:$0xff] %vm118_vm0, %v10609_v30 }
 0xd2a   :  { %8302 = vst.msk [vmem:[#allocation10 + $0x10] sm:$0xff] %vm118_vm0, %v10611_v4 }
 0xd2b   :  { %11058 = shalt.err (!%p11055_p8)
}
 0xd2c   :  { %s11059_s8 = scalar_lea.hbm %s12905_s7, 512 }
 0xd2d   :  { %p11060_p9 = scmp.ne.s32.totalorder %s12905_s7, %s11059_s8  ;;  %p11063_p10 = scmp.lt.u32.totalorder %s11059_s8, %s12905_s7 }
 0xd2f   :  { %p11065_p11 = pnand %p11063_p10, %p11060_p9 }
 0xd31   :  { %11068 = shalt.err (!%p11065_p11)
}
 0xd32   :  { %8315 = dma.vmem_to_hbm [thread:$0]  %s8310_s19, 512, %s12905_s7, [#allocation4], %s11079_s13, %s11079_s13, %s11080_s14  }
 0xd33   :  { %11075 = dma.done.wait [#allocation4], 512  }
 0xd34   :  { %11076 = vsyncadd [#allocation4], 4294966784 }
 0xd35   :  { %8319 = vsyncpa [#allocation3], 1 }
 0xd36   :  { %8320 = vsyncpa [#allocation6], 1 }
 0xd37   :  { %8321 = vsyncpa [#allocation9], 1 }
 0xd38   :  { %8322 = vsyncpa [#allocation4], 1 }

</bundles_post_ra>
